<compile_context>
chip_gen: v6e
topology: v6e:2x2x1
jax: 0.10.0
libtpu: 0.0.40
codegen_flags: <defaults>
</compile_context>

<pallas_src>
import functools

import jax
import jax.numpy as jnp
from jax.experimental import pallas as pl
from jax.experimental.pallas import tpu as pltpu

EPS = 1e-5                    # PyTorch BatchNorm2d default eps
NEG_BIG = -1e30               # logits fill for padded vocab columns
MAX_CHUNK = 8                 # LSTM static unroll factor (time steps / grid step)
VMEM_LIMIT = 32 * 1024 * 1024 # explicit scoped-VMEM budget (safe on v5e/v6e/v7x)


def _round_up(x, m):
    return (x + m - 1) // m * m


def _to_ifog(w, hidden):
    """Reorder PyTorch LSTM gate columns (i,f,g,o) -> (i,f,o,g).

    Lets the kernel evaluate sigmoid on a single contiguous [:, :3H] slice and
    tanh on [:, 3H:4H] (halves EUP work on the recurrent critical path).
    """
    del hidden
    i, f, g, o = jnp.split(w, 4, axis=-1)
    return jnp.concatenate([i, f, o, g], axis=-1)


# ----------------------------------------------------------------------------
# Kernel 1: conv (im2col matmul, bf16 MXU) + bias + ReLU + folded BatchNorm
# ----------------------------------------------------------------------------
def conv_bn_kernel(p_ref, w_ref, b_ref, scale_ref, shift_ref, o_ref):
    y = jnp.dot(p_ref[...], w_ref[...], preferred_element_type=jnp.float32)
    y = jnp.maximum(y + b_ref[...], 0.0)                  # conv bias + ReLU
    o_ref[...] = (y * scale_ref[...] + shift_ref[...]).astype(o_ref.dtype)


def conv_bn(patches, w, bias, scale, shift, tile_n=1024, out_dtype=jnp.bfloat16):
    N, K = patches.shape
    Cout = w.shape[1]
    tile = min(tile_n, _round_up(N, 8))
    Np = _round_up(N, tile)
    pp = jnp.pad(patches, ((0, Np - N), (0, 0))) if Np != N else patches
    out = pl.pallas_call(
        conv_bn_kernel,
        out_shape=jax.ShapeDtypeStruct((Np, Cout), out_dtype),
        grid=(Np // tile,),
        in_specs=[pl.BlockSpec((tile, K), lambda i: (i, 0)),
                  pl.BlockSpec((K, Cout), lambda i: (0, 0)),
                  pl.BlockSpec((1, Cout), lambda i: (0, 0)),
                  pl.BlockSpec((1, Cout), lambda i: (0, 0)),
                  pl.BlockSpec((1, Cout), lambda i: (0, 0))],
        out_specs=pl.BlockSpec((tile, Cout), lambda i: (i, 0)),
        compiler_params=pltpu.CompilerParams(
            dimension_semantics=("parallel",),
            vmem_limit_bytes=VMEM_LIMIT),
    )(pp.astype(jnp.bfloat16), w.astype(jnp.bfloat16), bias, scale, shift)
    return out[:N] if Np != N else out
    # TODO(synk): pack conv output lane-dense (rows, F'*32) to avoid masked
    #             32-lane stores for very large spectrogram inputs.


def im2col_nhwc(x_nhwc, k=3, s=2, p=1):
    """Glue: 3x3 stride-2 pad-1 patches from an NHWC tensor.

    Column ordering is ci*9 + kh*3 + kw (matches PyTorch conv weight reshape).
    Channel-last in/out removes the NCHW transpose between the two conv blocks.
    """
    B, H, W, C = x_nhwc.shape
    xp = jnp.pad(x_nhwc, ((0, 0), (p, p), (p, p), (0, 0)))
    Ho = (H + 2 * p - k) // s + 1
    Wo = (W + 2 * p - k) // s + 1
    rows = []
    for kh in range(k):
        cols = [xp[:, kh:kh + s * Ho:s, kw:kw + s * Wo:s, :] for kw in range(k)]
        rows.append(jnp.stack(cols, axis=3))               # (B,Ho,Wo,kw,C)
    pat = jnp.stack(rows, axis=3)                          # (B,Ho,Wo,kh,kw,C)
    pat = jnp.transpose(pat, (0, 1, 2, 5, 3, 4))           # (B,Ho,Wo,C,kh,kw)
    return pat.reshape(B * Ho * Wo, C * k * k), Ho, Wo


# ----------------------------------------------------------------------------
# Kernel 2: fused bidirectional LSTM layer
#   grid = (2 directions ["parallel"], T/CHUNK time blocks ["arbitrary"])
#   Input arrives as `n_parts` feature parts (1 for the conv feature, 2 halves
#   [fwd|bwd] for stacked layers) so no concatenation is ever materialized.
#   h/c live in per-direction VMEM scratch; CHUNK timesteps are unrolled.
# ----------------------------------------------------------------------------
def lstm_bidir_kernel(x_ref, wih_ref, whh_ref, b_ref, o_ref, h_sc, c_sc,
                      *, hidden, chunk, n_parts, part_dim, batch,
                      t_real, t_padded):
    H = hidden
    B = batch
    blk = pl.program_id(1)
    n_blk = t_padded // chunk
    needs_mask = t_padded != t_real

    wih = wih_ref[0]                         # (n_parts*part_dim, 4H) bf16
    whh = whh_ref[0]                         # (H, 4H)                bf16
    bias = b_ref[0]                          # (1, 4H)                f32

    # Hoisted input projection: one MXU matmul per part per chunk
    # (M = chunk*B instead of B), bias folded in once per chunk.
    nb = chunk * B
    gx = jnp.dot(x_ref[0].reshape(nb, part_dim), wih[:part_dim, :],
                 preferred_element_type=jnp.float32)
    for p in range(1, n_parts):
        gx = gx + jnp.dot(x_ref[p].reshape(nb, part_dim),
                          wih[p * part_dim:(p + 1) * part_dim, :],
                          preferred_element_type=jnp.float32)
    gx = gx + bias                           # (chunk*B, 4H) f32

    def run_direction(dd, order):
        @pl.when(blk == 0)
        def _():
            z = jnp.zeros((B, H), jnp.float32)
            h_sc[dd] = z
            c_sc[dd] = z

        base_t = (blk if dd == 0 else (n_blk - 1 - blk)) * chunk
        h = h_sc[dd]
        c = c_sc[dd]
        for lt in order:                     # static unroll over the chunk
            # only the recurrent matmul remains on the serial critical path
            g = gx[lt * B:(lt + 1) * B, :] + jnp.dot(
                h.astype(jnp.bfloat16), whh, preferred_element_type=jnp.float32)
            # gate columns pre-permuted to (i, f, o, g): sigmoid over 3H,
            # tanh over H (half the EUP work of sigmoid+tanh over 4H).
            s = jax.nn.sigmoid(g[:, :3 * H])
            i_g = s[:, 0 * H:1 * H]
            f_g = s[:, 1 * H:2 * H]
            o_g = s[:, 2 * H:3 * H]
            g_g = jnp.tanh(g[:, 3 * H:4 * H])
            c_new = f_g * c + i_g * g_g
            h_new = o_g * jnp.tanh(c_new)
            if needs_mask:                   # padded timesteps: freeze state
                valid = (base_t + lt) < t_real
                c = jnp.where(valid, c_new, c)
                h = jnp.where(valid, h_new, h)
            else:
                c = c_new
                h = h_new
            o_ref[0, lt] = h.astype(o_ref.dtype)
        h_sc[dd] = h
        c_sc[dd] = c

    # TODO(synk): the two unrolled direction bodies could be collapsed into one
    # loop with dynamic indexing to halve the static code footprint.
    @pl.when(pl.program_id(0) == 0)
    def _():
        run_direction(0, list(range(chunk)))               # forward in time

    @pl.when(pl.program_id(0) == 1)
    def _():
        run_direction(1, list(range(chunk - 1, -1, -1)))   # reversed in time


def lstm_bidir(x_parts, w_ih, w_hh, b, hidden, chunk, t_real):
    """x_parts: (n_parts, Tp, Bp, Dp) bf16.  Returns (2, Tp, Bp, H) bf16."""
    n_parts, Tp, Bp, Dp = x_parts.shape
    H = hidden
    n_blk = Tp // chunk
    Dtot = w_ih.shape[1]
    assert Dtot == n_parts * Dp

    def t_map(d, c):
        # forward (d=0): time block c ; backward (d=1): time block n_blk-1-c
        return c + d * (n_blk - 1 - 2 * c)

    kernel = functools.partial(
        lstm_bidir_kernel, hidden=H, chunk=chunk, n_parts=n_parts,
        part_dim=Dp, batch=Bp, t_real=t_real, t_padded=Tp)

    return pl.pallas_call(
        kernel,
        out_shape=jax.ShapeDtypeStruct((2, Tp, Bp, H), jnp.bfloat16),
        grid_spec=pltpu.PrefetchScalarGridSpec(
            num_scalar_prefetch=0,
            grid=(2, n_blk),
            in_specs=[
                pl.BlockSpec((n_parts, chunk, Bp, Dp),
                             lambda d, c: (0, t_map(d, c), 0, 0)),
                # time-invariant weights: single-buffered to save VMEM (v7x)
                pl.BlockSpec((1, Dtot, 4 * H), lambda d, c: (d, 0, 0),
                             pipeline_mode=pl.Buffered(1)),
                pl.BlockSpec((1, H, 4 * H), lambda d, c: (d, 0, 0),
                             pipeline_mode=pl.Buffered(1)),
                pl.BlockSpec((1, 1, 4 * H), lambda d, c: (d, 0, 0),
                             pipeline_mode=pl.Buffered(1)),
            ],
            out_specs=pl.BlockSpec((1, chunk, Bp, H),
                                   lambda d, c: (d, t_map(d, c), 0, 0)),
            scratch_shapes=[pltpu.VMEM((2, Bp, H), jnp.float32),
                            pltpu.VMEM((2, Bp, H), jnp.float32)]),
        compiler_params=pltpu.CompilerParams(
            dimension_semantics=("parallel", "arbitrary"),
            vmem_limit_bytes=VMEM_LIMIT),
    )(x_parts, w_ih.astype(jnp.bfloat16), w_hh.astype(jnp.bfloat16), b)


# ----------------------------------------------------------------------------
# Kernel 3: final Linear + log_softmax (two input halves -> no concat; vocab
#           axis padded to 128 lanes for unmasked stores)
# ----------------------------------------------------------------------------
def fc_logsoftmax_kernel(xf_ref, xb_ref, wf_ref, wb_ref, b_ref, o_ref):
    logits = (jnp.dot(xf_ref[...], wf_ref[...], preferred_element_type=jnp.float32)
              + jnp.dot(xb_ref[...], wb_ref[...], preferred_element_type=jnp.float32)
              + b_ref[...])
    m = jnp.max(logits, axis=-1, keepdims=True)
    z = logits - m
    lse = jnp.log(jnp.sum(jnp.exp(z), axis=-1, keepdims=True))
    o_ref[...] = z - lse


def fc_logsoftmax(x_fwd, x_bwd, w, b, tile_n=256):
    N, H = x_fwd.shape
    O = w.shape[1]
    Opad = _round_up(O, 128)                 # lane-dense output stores
    wf, wb = w[:H], w[H:]
    if Opad != O:
        wf = jnp.pad(wf, ((0, 0), (0, Opad - O)))
        wb = jnp.pad(wb, ((0, 0), (0, Opad - O)))
        # padded columns get a huge negative bias so exp() underflows to 0 and
        # the log_softmax normalization is unaffected.
        b = jnp.pad(b, ((0, 0), (0, Opad - O)), constant_values=NEG_BIG)
    tile = min(tile_n, _round_up(N, 8))
    Np = _round_up(N, tile)
    if Np != N:
        x_fwd = jnp.pad(x_fwd, ((0, Np - N), (0, 0)))
        x_bwd = jnp.pad(x_bwd, ((0, Np - N), (0, 0)))
    out = pl.pallas_call(
        fc_logsoftmax_kernel,
        out_shape=jax.ShapeDtypeStruct((Np, Opad), jnp.float32),
        grid=(Np // tile,),
        in_specs=[pl.BlockSpec((tile, H), lambda i: (i, 0)),
                  pl.BlockSpec((tile, H), lambda i: (i, 0)),
                  pl.BlockSpec((H, Opad), lambda i: (0, 0),
                               pipeline_mode=pl.Buffered(1)),
                  pl.BlockSpec((H, Opad), lambda i: (0, 0),
                               pipeline_mode=pl.Buffered(1)),
                  pl.BlockSpec((1, Opad), lambda i: (0, 0),
                               pipeline_mode=pl.Buffered(1))],
        out_specs=pl.BlockSpec((tile, Opad), lambda i: (i, 0)),
        compiler_params=pltpu.CompilerParams(
            dimension_semantics=("parallel",),
            vmem_limit_bytes=VMEM_LIMIT),
    )(x_fwd.astype(jnp.bfloat16), x_bwd.astype(jnp.bfloat16),
      wf.astype(jnp.bfloat16), wb.astype(jnp.bfloat16), b)
    return out[:N, :O]


# ----------------------------------------------------------------------------
# Parameter init (deterministic, synthetic; PyTorch (i,f,g,o) gate layout)
# ----------------------------------------------------------------------------
def init_params(input_dim, hidden_dim, output_dim, num_layers=3, seed=0):
    base = jax.random.PRNGKey(seed)
    ctr = [0]

    def nxt(shape, scale=0.1, positive=False):
        ctr[0] += 1
        k = jax.random.fold_in(base, ctr[0])
        v = scale * jax.random.normal(k, shape, dtype=jnp.float32)
        if positive:
            v = jnp.abs(v) + 0.5
        return v

    p = {}
    # Conv block 1: Conv2d(1, 32, 3, s=2, p=1), ReLU, BatchNorm2d(32)
    p["conv1_w"] = nxt((32, 1, 3, 3))
    p["conv1_b"] = nxt((32,))
    p["bn1_gamma"] = 1.0 + nxt((32,))
    p["bn1_beta"] = nxt((32,))
    p["bn1_mean"] = nxt((32,))
    p["bn1_var"] = nxt((32,), positive=True)
    # Conv block 2: Conv2d(32, 32, 3, s=2, p=1), ReLU, BatchNorm2d(32)
    p["conv2_w"] = nxt((32, 32, 3, 3))
    p["conv2_b"] = nxt((32,))
    p["bn2_gamma"] = 1.0 + nxt((32,))
    p["bn2_beta"] = nxt((32,))
    p["bn2_mean"] = nxt((32,))
    p["bn2_var"] = nxt((32,), positive=True)
    # Bidirectional LSTM: weights stacked (dir, ...) so one kernel handles both
    lstm = []
    in_size = 32 * (input_dim // 4)
    for _ in range(num_layers):
        w_ih = jnp.stack([nxt((in_size, 4 * hidden_dim)) for _ in range(2)])
        w_hh = jnp.stack([nxt((hidden_dim, 4 * hidden_dim)) for _ in range(2)])
        b = jnp.stack([(nxt((4 * hidden_dim,)) + nxt((4 * hidden_dim,)))
                       .reshape(1, -1) for _ in range(2)])
        lstm.append(dict(w_ih=w_ih, w_hh=w_hh, b=b))
        in_size = 2 * hidden_dim
    p["lstm"] = lstm
    # fc: Linear(2H, output_dim)
    p["fc_w"] = nxt((2 * hidden_dim, output_dim))
    p["fc_b"] = nxt((output_dim,)).reshape(1, -1)
    return p


# ----------------------------------------------------------------------------
# Full forward (matches ASR_CTC_Model.forward, inference semantics)
# ----------------------------------------------------------------------------
def asr_ctc_forward(x_btf, params, hidden_dim):
    B, T, F = x_btf.shape

    # ---- conv stack (channel-last, BN folded into scale/shift, bf16 out) ----
    x = x_btf[..., None]                                       # (B,T,F,1) NHWC
    p1, T1, F1 = im2col_nhwc(x)
    w1 = params["conv1_w"].reshape(32, -1).T
    s1 = params["bn1_gamma"] * jax.lax.rsqrt(params["bn1_var"] + EPS)
    sh1 = params["bn1_beta"] - params["bn1_mean"] * s1
    y1 = conv_bn(p1, w1, params["conv1_b"][None, :], s1[None, :], sh1[None, :])
    x1 = y1.reshape(B, T1, F1, 32)                             # stays NHWC

    p2, T2, F2 = im2col_nhwc(x1)
    w2 = params["conv2_w"].reshape(32, -1).T
    s2 = params["bn2_gamma"] * jax.lax.rsqrt(params["bn2_var"] + EPS)
    sh2 = params["bn2_beta"] - params["bn2_mean"] * s2
    y2 = conv_bn(p2, w2, params["conv2_b"][None, :], s2[None, :], sh2[None, :])

    # permute(0,2,1,3).reshape(B,T',C*F') — produced time-major (T',B,C*F') bf16
    feat = y2.reshape(B, T2, F2, 32).transpose(1, 0, 3, 2).reshape(T2, B, 32 * F2)

    # ---- pad time to a chunk multiple and batch to the 8-sublane width ------
    chunk = min(MAX_CHUNK, T2)
    T2p = _round_up(T2, chunk)
    Bp = _round_up(B, 8)
    feat = jnp.pad(feat, ((0, T2p - T2), (0, Bp - B), (0, 0)))
    h_parts = feat.astype(jnp.bfloat16)[None]                  # (1,T2p,Bp,D)

    # conv_dropout / inter-layer LSTM dropout: identity in eval mode
    for layer_p in params["lstm"]:
        w_ih = _to_ifog(layer_p["w_ih"], hidden_dim)
        w_hh = _to_ifog(layer_p["w_hh"], hidden_dim)
        b = _to_ifog(layer_p["b"], hidden_dim)
        h_parts = lstm_bidir(h_parts, w_ih, w_hh, b, hidden_dim, chunk, T2)
        # h_parts: (2, T2p, Bp, H) bf16, consumed split (no concatenate)

    # fc_dropout: identity in eval mode; fc consumes the two halves directly
    xf = h_parts[0].reshape(T2p * Bp, hidden_dim)
    xb = h_parts[1].reshape(T2p * Bp, hidden_dim)
    logp = fc_logsoftmax(xf, xb, params["fc_w"], params["fc_b"])
    logp = logp.reshape(T2p, Bp, -1)[:T2, :B]
    return logp.transpose(1, 0, 2)                             # (B,T2,O) log-probs


if __name__ == "__main__":
    input_dim = 16     # frequency bins F
    hidden_dim = 32
    output_dim = 16
    B, T = 2, 16       # batch, time frames

    params = init_params(input_dim, hidden_dim, output_dim, num_layers=3, seed=0)
    x = jax.random.normal(jax.random.PRNGKey(0), (B, T, input_dim),
                          dtype=jnp.float32)

    fwd = jax.jit(functools.partial(asr_ctc_forward, hidden_dim=hidden_dim))
    out = fwd(x, params)
    out = jax.block_until_ready(out)

    T_out = ((T - 1) // 2 + 1 - 1) // 2 + 1                    # two stride-2 convs
    assert out.shape == (B, T_out, output_dim), out.shape
    assert bool(jnp.all(jnp.isfinite(out)))
    # log_softmax rows must sum to ~1 in probability space
    assert bool(jnp.allclose(jnp.sum(jnp.exp(out), axis=-1), 1.0, atol=1e-4))
    print("KERNEL_OK")
</pallas_src>

<mosaic_0001>
module attributes {stable_mosaic.version = 11 : i64} {
  func.func @conv_bn_kernel(%arg0: i32, %arg1: memref<128x9xbf16, #tpu.memory_space<vmem>>, %arg2: memref<9x32xbf16, #tpu.memory_space<vmem>>, %arg3: memref<1x32xf32, #tpu.memory_space<vmem>>, %arg4: memref<1x32xf32, #tpu.memory_space<vmem>>, %arg5: memref<1x32xf32, #tpu.memory_space<vmem>>, %arg6: memref<128x32xbf16, #tpu.memory_space<vmem>>) attributes {dimension_semantics = [#tpu.dimension_semantics<parallel>], iteration_bounds = array<i64: 1>, scalar_prefetch = 0 : i64, scratch_operands = 0 : i64, tpu.core_type = #tpu.core_type<tc>, window_params = [{transform_indices = @transform_0, window_bounds = array<i64: 128, 9>}, {pipeline_mode = #tpu.pipeline_mode<synchronous>, transform_indices = @transform_1, window_bounds = array<i64: 9, 32>}, {pipeline_mode = #tpu.pipeline_mode<synchronous>, transform_indices = @transform_2, window_bounds = array<i64: 1, 32>}, {pipeline_mode = #tpu.pipeline_mode<synchronous>, transform_indices = @transform_3, window_bounds = array<i64: 1, 32>}, {pipeline_mode = #tpu.pipeline_mode<synchronous>, transform_indices = @transform_4, window_bounds = array<i64: 1, 32>}, {transform_indices = @transform_5, window_bounds = array<i64: 128, 32>}]} {
    %c0 = arith.constant 0 : index
    %c0_0 = arith.constant 0 : index
    %0 = vector.load %arg1[%c0, %c0_0] : memref<128x9xbf16, #tpu.memory_space<vmem>>, vector<128x9xbf16>
    %c0_1 = arith.constant 0 : index
    %c0_2 = arith.constant 0 : index
    %1 = vector.load %arg2[%c0_1, %c0_2] : memref<9x32xbf16, #tpu.memory_space<vmem>>, vector<9x32xbf16>
    %cst = arith.constant dense<0.000000e+00> : vector<128x32xf32>
    %2 = tpu.matmul %0, %1, %cst {dimension_numbers = #tpu.dot_dimension_numbers<[1], [0], [0], [1], [0, 0, 1, 1], [], []>} : vector<128x9xbf16>, vector<9x32xbf16>, vector<128x32xf32> -> vector<128x32xf32>
    %c0_3 = arith.constant 0 : index
    %c0_4 = arith.constant 0 : index
    %3 = vector.load %arg3[%c0_3, %c0_4] : memref<1x32xf32, #tpu.memory_space<vmem>>, vector<1x32xf32>
    %4 = vector.broadcast %3 : vector<1x32xf32> to vector<128x32xf32>
    %5 = arith.addf %2, %4 : vector<128x32xf32>
    %cst_5 = arith.constant 0.000000e+00 : f32
    %6 = vector.broadcast %cst_5 : f32 to vector<128x32xf32>
    %7 = arith.maximumf %5, %6 : vector<128x32xf32>
    %c0_6 = arith.constant 0 : index
    %c0_7 = arith.constant 0 : index
    %8 = vector.load %arg4[%c0_6, %c0_7] : memref<1x32xf32, #tpu.memory_space<vmem>>, vector<1x32xf32>
    %9 = vector.broadcast %8 : vector<1x32xf32> to vector<128x32xf32>
    %10 = arith.mulf %7, %9 : vector<128x32xf32>
    %c0_8 = arith.constant 0 : index
    %c0_9 = arith.constant 0 : index
    %11 = vector.load %arg5[%c0_8, %c0_9] : memref<1x32xf32, #tpu.memory_space<vmem>>, vector<1x32xf32>
    %12 = vector.broadcast %11 : vector<1x32xf32> to vector<128x32xf32>
    %13 = arith.addf %10, %12 : vector<128x32xf32>
    %14 = arith.truncf %13 : vector<128x32xf32> to vector<128x32xbf16>
    %c0_10 = arith.constant 0 : index
    %c0_11 = arith.constant 0 : index
    %15 = vector.load %arg6[%c0_10, %c0_11] : memref<128x32xbf16, #tpu.memory_space<vmem>>, vector<128x32xbf16>
    tpu.vector_store %arg6[%c0_10, %c0_11], %14 {strides = array<i32>} : memref<128x32xbf16, #tpu.memory_space<vmem>>, vector<128x32xbf16>,
    return
  }
  func.func @transform_0(%arg0: i32) -> (i32, i32) {
    %c0_i32 = arith.constant 0 : i32
    %c0_i32_0 = arith.constant 0 : i32
    return %arg0, %c0_i32 : i32, i32
  }
  func.func @transform_1(%arg0: i32) -> (i32, i32) {
    %c0_i32 = arith.constant 0 : i32
    %c0_i32_0 = arith.constant 0 : i32
    %c0_i32_1 = arith.constant 0 : i32
    return %c0_i32, %c0_i32_0 : i32, i32
  }
  func.func @transform_2(%arg0: i32) -> (i32, i32) {
    %c0_i32 = arith.constant 0 : i32
    %c0_i32_0 = arith.constant 0 : i32
    %c0_i32_1 = arith.constant 0 : i32
    return %c0_i32, %c0_i32_0 : i32, i32
  }
  func.func @transform_3(%arg0: i32) -> (i32, i32) {
    %c0_i32 = arith.constant 0 : i32
    %c0_i32_0 = arith.constant 0 : i32
    %c0_i32_1 = arith.constant 0 : i32
    return %c0_i32, %c0_i32_0 : i32, i32
  }
  func.func @transform_4(%arg0: i32) -> (i32, i32) {
    %c0_i32 = arith.constant 0 : i32
    %c0_i32_0 = arith.constant 0 : i32
    %c0_i32_1 = arith.constant 0 : i32
    return %c0_i32, %c0_i32_0 : i32, i32
  }
  func.func @transform_5(%arg0: i32) -> (i32, i32) {
    %c0_i32 = arith.constant 0 : i32
    %c0_i32_0 = arith.constant 0 : i32
    return %arg0, %c0_i32 : i32, i32
  }
}

module attributes {stable_mosaic.version = 11 : i64} {
  func.func @conv_bn_kernel(%arg0: i32, %arg1: memref<32x288xbf16, #tpu.memory_space<vmem>>, %arg2: memref<288x32xbf16, #tpu.memory_space<vmem>>, %arg3: memref<1x32xf32, #tpu.memory_space<vmem>>, %arg4: memref<1x32xf32, #tpu.memory_space<vmem>>, %arg5: memref<1x32xf32, #tpu.memory_space<vmem>>, %arg6: memref<32x32xbf16, #tpu.memory_space<vmem>>) attributes {dimension_semantics = [#tpu.dimension_semantics<parallel>], iteration_bounds = array<i64: 1>, scalar_prefetch = 0 : i64, scratch_operands = 0 : i64, tpu.core_type = #tpu.core_type<tc>, window_params = [{transform_indices = @transform_0, window_bounds = array<i64: 32, 288>}, {pipeline_mode = #tpu.pipeline_mode<synchronous>, transform_indices = @transform_1, window_bounds = array<i64: 288, 32>}, {pipeline_mode = #tpu.pipeline_mode<synchronous>, transform_indices = @transform_2, window_bounds = array<i64: 1, 32>}, {pipeline_mode = #tpu.pipeline_mode<synchronous>, transform_indices = @transform_3, window_bounds = array<i64: 1, 32>}, {pipeline_mode = #tpu.pipeline_mode<synchronous>, transform_indices = @transform_4, window_bounds = array<i64: 1, 32>}, {transform_indices = @transform_5, window_bounds = array<i64: 32, 32>}]} {
    %c0 = arith.constant 0 : index
    %c0_0 = arith.constant 0 : index
    %0 = vector.load %arg1[%c0, %c0_0] : memref<32x288xbf16, #tpu.memory_space<vmem>>, vector<32x288xbf16>
    %c0_1 = arith.constant 0 : index
    %c0_2 = arith.constant 0 : index
    %1 = vector.load %arg2[%c0_1, %c0_2] : memref<288x32xbf16, #tpu.memory_space<vmem>>, vector<288x32xbf16>
    %cst = arith.constant dense<0.000000e+00> : vector<32x32xf32>
    %2 = tpu.matmul %0, %1, %cst {dimension_numbers = #tpu.dot_dimension_numbers<[1], [0], [0], [1], [0, 0, 1, 1], [], []>} : vector<32x288xbf16>, vector<288x32xbf16>, vector<32x32xf32> -> vector<32x32xf32>
    %c0_3 = arith.constant 0 : index
    %c0_4 = arith.constant 0 : index
    %3 = vector.load %arg3[%c0_3, %c0_4] : memref<1x32xf32, #tpu.memory_space<vmem>>, vector<1x32xf32>
    %4 = vector.broadcast %3 : vector<1x32xf32> to vector<32x32xf32>
    %5 = arith.addf %2, %4 : vector<32x32xf32>
    %cst_5 = arith.constant 0.000000e+00 : f32
    %6 = vector.broadcast %cst_5 : f32 to vector<32x32xf32>
    %7 = arith.maximumf %5, %6 : vector<32x32xf32>
    %c0_6 = arith.constant 0 : index
    %c0_7 = arith.constant 0 : index
    %8 = vector.load %arg4[%c0_6, %c0_7] : memref<1x32xf32, #tpu.memory_space<vmem>>, vector<1x32xf32>
    %9 = vector.broadcast %8 : vector<1x32xf32> to vector<32x32xf32>
    %10 = arith.mulf %7, %9 : vector<32x32xf32>
    %c0_8 = arith.constant 0 : index
    %c0_9 = arith.constant 0 : index
    %11 = vector.load %arg5[%c0_8, %c0_9] : memref<1x32xf32, #tpu.memory_space<vmem>>, vector<1x32xf32>
    %12 = vector.broadcast %11 : vector<1x32xf32> to vector<32x32xf32>
    %13 = arith.addf %10, %12 : vector<32x32xf32>
    %14 = arith.truncf %13 : vector<32x32xf32> to vector<32x32xbf16>
    %c0_10 = arith.constant 0 : index
    %c0_11 = arith.constant 0 : index
    %15 = vector.load %arg6[%c0_10, %c0_11] : memref<32x32xbf16, #tpu.memory_space<vmem>>, vector<32x32xbf16>
    tpu.vector_store %arg6[%c0_10, %c0_11], %14 {strides = array<i32>} : memref<32x32xbf16, #tpu.memory_space<vmem>>, vector<32x32xbf16>,
    return
  }
  func.func @transform_0(%arg0: i32) -> (i32, i32) {
    %c0_i32 = arith.constant 0 : i32
    %c0_i32_0 = arith.constant 0 : i32
    return %arg0, %c0_i32 : i32, i32
  }
  func.func @transform_1(%arg0: i32) -> (i32, i32) {
    %c0_i32 = arith.constant 0 : i32
    %c0_i32_0 = arith.constant 0 : i32
    %c0_i32_1 = arith.constant 0 : i32
    return %c0_i32, %c0_i32_0 : i32, i32
  }
  func.func @transform_2(%arg0: i32) -> (i32, i32) {
    %c0_i32 = arith.constant 0 : i32
    %c0_i32_0 = arith.constant 0 : i32
    %c0_i32_1 = arith.constant 0 : i32
    return %c0_i32, %c0_i32_0 : i32, i32
  }
  func.func @transform_3(%arg0: i32) -> (i32, i32) {
    %c0_i32 = arith.constant 0 : i32
    %c0_i32_0 = arith.constant 0 : i32
    %c0_i32_1 = arith.constant 0 : i32
    return %c0_i32, %c0_i32_0 : i32, i32
  }
  func.func @transform_4(%arg0: i32) -> (i32, i32) {
    %c0_i32 = arith.constant 0 : i32
    %c0_i32_0 = arith.constant 0 : i32
    %c0_i32_1 = arith.constant 0 : i32
    return %c0_i32, %c0_i32_0 : i32, i32
  }
  func.func @transform_5(%arg0: i32) -> (i32, i32) {
    %c0_i32 = arith.constant 0 : i32
    %c0_i32_0 = arith.constant 0 : i32
    return %arg0, %c0_i32 : i32, i32
  }
}

module attributes {stable_mosaic.version = 11 : i64} {
  func.func @lstm_bidir_kernel(%arg0: i32, %arg1: i32, %arg2: memref<1x4x8x128xbf16, #tpu.memory_space<vmem>>, %arg3: memref<1x128x128xbf16, #tpu.memory_space<vmem>>, %arg4: memref<1x32x128xbf16, #tpu.memory_space<vmem>>, %arg5: memref<1x1x128xf32, #tpu.memory_space<vmem>>, %arg6: memref<1x4x8x32xbf16, #tpu.memory_space<vmem>>, %arg7: memref<2x8x32xf32, #tpu.memory_space<vmem>>, %arg8: memref<2x8x32xf32, #tpu.memory_space<vmem>>) attributes {dimension_semantics = [#tpu.dimension_semantics<parallel>, #tpu.dimension_semantics<arbitrary>], iteration_bounds = array<i64: 2, 1>, scalar_prefetch = 0 : i64, scratch_operands = 2 : i64, tpu.core_type = #tpu.core_type<tc>, window_params = [{transform_indices = @transform_0, window_bounds = array<i64: 1, 4, 8, 128>}, {pipeline_mode = #tpu.pipeline_mode<synchronous>, transform_indices = @transform_1, window_bounds = array<i64: 1, 128, 128>}, {pipeline_mode = #tpu.pipeline_mode<synchronous>, transform_indices = @transform_2, window_bounds = array<i64: 1, 32, 128>}, {pipeline_mode = #tpu.pipeline_mode<synchronous>, transform_indices = @transform_3, window_bounds = array<i64: 1, 1, 128>}, {transform_indices = @transform_4, window_bounds = array<i64: 1, 4, 8, 32>}]} {
    %c0 = arith.constant 0 : index
    %c0_0 = arith.constant 0 : index
    %c0_1 = arith.constant 0 : index
    %0 = vector.load %arg3[%c0, %c0_0, %c0_1] : memref<1x128x128xbf16, #tpu.memory_space<vmem>>, vector<1x128x128xbf16>
    %1 = vector.shape_cast %0 : vector<1x128x128xbf16> to vector<128x128xbf16>
    %c0_2 = arith.constant 0 : index
    %c0_3 = arith.constant 0 : index
    %c0_4 = arith.constant 0 : index
    %2 = vector.load %arg4[%c0_2, %c0_3, %c0_4] : memref<1x32x128xbf16, #tpu.memory_space<vmem>>, vector<1x32x128xbf16>
    %3 = vector.shape_cast %2 : vector<1x32x128xbf16> to vector<32x128xbf16>
    %c0_5 = arith.constant 0 : index
    %c0_6 = arith.constant 0 : index
    %c0_7 = arith.constant 0 : index
    %4 = vector.load %arg5[%c0_5, %c0_6, %c0_7] : memref<1x1x128xf32, #tpu.memory_space<vmem>>, vector<1x1x128xf32>
    %5 = vector.shape_cast %4 : vector<1x1x128xf32> to vector<1x128xf32>
    %c0_8 = arith.constant 0 : index
    %c0_9 = arith.constant 0 : index
    %c0_10 = arith.constant 0 : index
    %c0_11 = arith.constant 0 : index
    %6 = vector.load %arg2[%c0_8, %c0_9, %c0_10, %c0_11] : memref<1x4x8x128xbf16, #tpu.memory_space<vmem>>, vector<1x4x8x128xbf16>
    %7 = vector.shape_cast %6 : vector<1x4x8x128xbf16> to vector<4x8x128xbf16>
    %8 = vector.shape_cast %7 : vector<4x8x128xbf16> to vector<32x128xbf16>
    %cst = arith.constant dense<0.000000e+00> : vector<32x128xf32>
    %9 = tpu.matmul %8, %1, %cst {dimension_numbers = #tpu.dot_dimension_numbers<[1], [0], [0], [1], [0, 0, 1, 1], [], []>} : vector<32x128xbf16>, vector<128x128xbf16>, vector<32x128xf32> -> vector<32x128xf32>
    %10 = vector.broadcast %5 : vector<1x128xf32> to vector<32x128xf32>
    %11 = arith.addf %9, %10 : vector<32x128xf32>
    %c0_i32 = arith.constant 0 : i32
    %12 = arith.cmpi eq, %arg0, %c0_i32 : i32
    %13 = arith.extui %12 : i1 to i32
    %c0_i32_12 = arith.constant 0 : i32
    %14 = arith.cmpi ne, %13, %c0_i32_12 : i32
    scf.if %14 {
      %c0_i32_14 = arith.constant 0 : i32
      %18 = arith.cmpi eq, %arg1, %c0_i32_14 : i32
      %19 = arith.extui %18 : i1 to i32
      %c0_i32_15 = arith.constant 0 : i32
      %20 = arith.cmpi ne, %19, %c0_i32_15 : i32
      scf.if %20 {
        %cst_49 = arith.constant 0.000000e+00 : f32
        %127 = vector.broadcast %cst_49 : f32 to vector<8x32xf32>
        %c0_50 = arith.constant 0 : index
        %c0_51 = arith.constant 0 : index
        %c0_52 = arith.constant 0 : index
        %128 = vector.load %arg7[%c0_50, %c0_51, %c0_52] : memref<2x8x32xf32, #tpu.memory_space<vmem>>, vector<1x8x32xf32>
        %129 = vector.shape_cast %128 : vector<1x8x32xf32> to vector<8x32xf32>
        %130 = vector.shape_cast %127 : vector<8x32xf32> to vector<1x8x32xf32>
        tpu.vector_store %arg7[%c0_50, %c0_51, %c0_52], %130 {strides = array<i32>} : memref<2x8x32xf32, #tpu.memory_space<vmem>>, vector<1x8x32xf32>,
        %c0_53 = arith.constant 0 : index
        %c0_54 = arith.constant 0 : index
        %c0_55 = arith.constant 0 : index
        %131 = vector.load %arg8[%c0_53, %c0_54, %c0_55] : memref<2x8x32xf32, #tpu.memory_space<vmem>>, vector<1x8x32xf32>
        %132 = vector.shape_cast %131 : vector<1x8x32xf32> to vector<8x32xf32>
        %133 = vector.shape_cast %127 : vector<8x32xf32> to vector<1x8x32xf32>
        tpu.vector_store %arg8[%c0_53, %c0_54, %c0_55], %133 {strides = array<i32>} : memref<2x8x32xf32, #tpu.memory_space<vmem>>, vector<1x8x32xf32>,
      } else {
      }
      %c0_16 = arith.constant 0 : index
      %c0_17 = arith.constant 0 : index
      %c0_18 = arith.constant 0 : index
      %21 = vector.load %arg7[%c0_16, %c0_17, %c0_18] : memref<2x8x32xf32, #tpu.memory_space<vmem>>, vector<1x8x32xf32>
      %22 = vector.shape_cast %21 : vector<1x8x32xf32> to vector<8x32xf32>
      %c0_19 = arith.constant 0 : index
      %c0_20 = arith.constant 0 : index
      %c0_21 = arith.constant 0 : index
      %23 = vector.load %arg8[%c0_19, %c0_20, %c0_21] : memref<2x8x32xf32, #tpu.memory_space<vmem>>, vector<1x8x32xf32>
      %24 = vector.shape_cast %23 : vector<1x8x32xf32> to vector<8x32xf32>
      %25 = vector.extract_strided_slice %11 {offsets = [0, 0], sizes = [8, 128], strides = [1, 1]} : vector<32x128xf32> to vector<8x128xf32>
      %26 = arith.truncf %22 : vector<8x32xf32> to vector<8x32xbf16>
      %cst_22 = arith.constant dense<0.000000e+00> : vector<8x128xf32>
      %27 = tpu.matmul %26, %3, %cst_22 {dimension_numbers = #tpu.dot_dimension_numbers<[1], [0], [0], [1], [0, 0, 1, 1], [], []>} : vector<8x32xbf16>, vector<32x128xbf16>, vector<8x128xf32> -> vector<8x128xf32>
      %28 = arith.addf %25, %27 : vector<8x128xf32>
      %29 = vector.extract_strided_slice %28 {offsets = [0, 0], sizes = [8, 96], strides = [1, 1]} : vector<8x128xf32> to vector<8x96xf32>
      %30 = arith.negf %29 : vector<8x96xf32>
      %31 = math.exp %30 : vector<8x96xf32>
      %cst_23 = arith.constant 1.000000e+00 : f32
      %32 = vector.broadcast %cst_23 : f32 to vector<8x96xf32>
      %33 = arith.addf %32, %31 : vector<8x96xf32>
      %34 = arith.divf %32, %33 : vector<8x96xf32>
      %35 = vector.extract_strided_slice %34 {offsets = [0, 0], sizes = [8, 32], strides = [1, 1]} : vector<8x96xf32> to vector<8x32xf32>
      %36 = vector.extract_strided_slice %34 {offsets = [0, 32], sizes = [8, 32], strides = [1, 1]} : vector<8x96xf32> to vector<8x32xf32>
      %37 = vector.extract_strided_slice %34 {offsets = [0, 64], sizes = [8, 32], strides = [1, 1]} : vector<8x96xf32> to vector<8x32xf32>
      %38 = vector.extract_strided_slice %28 {offsets = [0, 96], sizes = [8, 32], strides = [1, 1]} : vector<8x128xf32> to vector<8x32xf32>
      %39 = math.tanh %38 : vector<8x32xf32>
      %40 = arith.mulf %36, %24 : vector<8x32xf32>
      %41 = arith.mulf %35, %39 : vector<8x32xf32>
      %42 = arith.addf %40, %41 : vector<8x32xf32>
      %43 = math.tanh %42 : vector<8x32xf32>
      %44 = arith.mulf %37, %43 : vector<8x32xf32>
      %45 = arith.truncf %44 : vector<8x32xf32> to vector<8x32xbf16>
      %c0_24 = arith.constant 0 : index
      %c0_25 = arith.constant 0 : index
      %c0_26 = arith.constant 0 : index
      %c0_27 = arith.constant 0 : index
      %46 = vector.load %arg6[%c0_24, %c0_25, %c0_26, %c0_27] : memref<1x4x8x32xbf16, #tpu.memory_space<vmem>>, vector<1x1x8x32xbf16>
      %47 = vector.shape_cast %46 : vector<1x1x8x32xbf16> to vector<8x32xbf16>
      %48 = vector.shape_cast %45 : vector<8x32xbf16> to vector<1x1x8x32xbf16>
      tpu.vector_store %arg6[%c0_24, %c0_25, %c0_26, %c0_27], %48 {strides = array<i32>} : memref<1x4x8x32xbf16, #tpu.memory_space<vmem>>, vector<1x1x8x32xbf16>,
      %49 = vector.extract_strided_slice %11 {offsets = [8, 0], sizes = [8, 128], strides = [1, 1]} : vector<32x128xf32> to vector<8x128xf32>
      %50 = arith.truncf %44 : vector<8x32xf32> to vector<8x32xbf16>
      %cst_28 = arith.constant dense<0.000000e+00> : vector<8x128xf32>
      %51 = tpu.matmul %50, %3, %cst_28 {dimension_numbers = #tpu.dot_dimension_numbers<[1], [0], [0], [1], [0, 0, 1, 1], [], []>} : vector<8x32xbf16>, vector<32x128xbf16>, vector<8x128xf32> -> vector<8x128xf32>
      %52 = arith.addf %49, %51 : vector<8x128xf32>
      %53 = vector.extract_strided_slice %52 {offsets = [0, 0], sizes = [8, 96], strides = [1, 1]} : vector<8x128xf32> to vector<8x96xf32>
      %54 = arith.negf %53 : vector<8x96xf32>
      %55 = math.exp %54 : vector<8x96xf32>
      %cst_29 = arith.constant 1.000000e+00 : f32
      %56 = vector.broadcast %cst_29 : f32 to vector<8x96xf32>
      %57 = arith.addf %56, %55 : vector<8x96xf32>
      %58 = arith.divf %56, %57 : vector<8x96xf32>
      %59 = vector.extract_strided_slice %58 {offsets = [0, 0], sizes = [8, 32], strides = [1, 1]} : vector<8x96xf32> to vector<8x32xf32>
      %60 = vector.extract_strided_slice %58 {offsets = [0, 32], sizes = [8, 32], strides = [1, 1]} : vector<8x96xf32> to vector<8x32xf32>
      %61 = vector.extract_strided_slice %58 {offsets = [0, 64], sizes = [8, 32], strides = [1, 1]} : vector<8x96xf32> to vector<8x32xf32>
      %62 = vector.extract_strided_slice %52 {offsets = [0, 96], sizes = [8, 32], strides = [1, 1]} : vector<8x128xf32> to vector<8x32xf32>
      %63 = math.tanh %62 : vector<8x32xf32>
      %64 = arith.mulf %60, %42 : vector<8x32xf32>
      %65 = arith.mulf %59, %63 : vector<8x32xf32>
      %66 = arith.addf %64, %65 : vector<8x32xf32>
      %67 = math.tanh %66 : vector<8x32xf32>
      %68 = arith.mulf %61, %67 : vector<8x32xf32>
      %69 = arith.truncf %68 : vector<8x32xf32> to vector<8x32xbf16>
      %c0_30 = arith.constant 0 : index
      %c1 = arith.constant 1 : index
      %c0_31 = arith.constant 0 : index
      %c0_32 = arith.constant 0 : index
      %70 = vector.load %arg6[%c0_30, %c1, %c0_31, %c0_32] : memref<1x4x8x32xbf16, #tpu.memory_space<vmem>>, vector<1x1x8x32xbf16>
      %71 = vector.shape_cast %70 : vector<1x1x8x32xbf16> to vector<8x32xbf16>
      %72 = vector.shape_cast %69 : vector<8x32xbf16> to vector<1x1x8x32xbf16>
      tpu.vector_store %arg6[%c0_30, %c1, %c0_31, %c0_32], %72 {strides = array<i32>} : memref<1x4x8x32xbf16, #tpu.memory_space<vmem>>, vector<1x1x8x32xbf16>,
      %73 = vector.extract_strided_slice %11 {offsets = [16, 0], sizes = [8, 128], strides = [1, 1]} : vector<32x128xf32> to vector<8x128xf32>
      %74 = arith.truncf %68 : vector<8x32xf32> to vector<8x32xbf16>
      %cst_33 = arith.constant dense<0.000000e+00> : vector<8x128xf32>
      %75 = tpu.matmul %74, %3, %cst_33 {dimension_numbers = #tpu.dot_dimension_numbers<[1], [0], [0], [1], [0, 0, 1, 1], [], []>} : vector<8x32xbf16>, vector<32x128xbf16>, vector<8x128xf32> -> vector<8x128xf32>
      %76 = arith.addf %73, %75 : vector<8x128xf32>
      %77 = vector.extract_strided_slice %76 {offsets = [0, 0], sizes = [8, 96], strides = [1, 1]} : vector<8x128xf32> to vector<8x96xf32>
      %78 = arith.negf %77 : vector<8x96xf32>
      %79 = math.exp %78 : vector<8x96xf32>
      %cst_34 = arith.constant 1.000000e+00 : f32
      %80 = vector.broadcast %cst_34 : f32 to vector<8x96xf32>
      %81 = arith.addf %80, %79 : vector<8x96xf32>
      %82 = arith.divf %80, %81 : vector<8x96xf32>
      %83 = vector.extract_strided_slice %82 {offsets = [0, 0], sizes = [8, 32], strides = [1, 1]} : vector<8x96xf32> to vector<8x32xf32>
      %84 = vector.extract_strided_slice %82 {offsets = [0, 32], sizes = [8, 32], strides = [1, 1]} : vector<8x96xf32> to vector<8x32xf32>
      %85 = vector.extract_strided_slice %82 {offsets = [0, 64], sizes = [8, 32], strides = [1, 1]} : vector<8x96xf32> to vector<8x32xf32>
      %86 = vector.extract_strided_slice %76 {offsets = [0, 96], sizes = [8, 32], strides = [1, 1]} : vector<8x128xf32> to vector<8x32xf32>
      %87 = math.tanh %86 : vector<8x32xf32>
      %88 = arith.mulf %84, %66 : vector<8x32xf32>
      %89 = arith.mulf %83, %87 : vector<8x32xf32>
      %90 = arith.addf %88, %89 : vector<8x32xf32>
      %91 = math.tanh %90 : vector<8x32xf32>
      %92 = arith.mulf %85, %91 : vector<8x32xf32>
      %93 = arith.truncf %92 : vector<8x32xf32> to vector<8x32xbf16>
      %c0_35 = arith.constant 0 : index
      %c2 = arith.constant 2 : index
      %c0_36 = arith.constant 0 : index
      %c0_37 = arith.constant 0 : index
      %94 = vector.load %arg6[%c0_35, %c2, %c0_36, %c0_37] : memref<1x4x8x32xbf16, #tpu.memory_space<vmem>>, vector<1x1x8x32xbf16>
      %95 = vector.shape_cast %94 : vector<1x1x8x32xbf16> to vector<8x32xbf16>
      %96 = vector.shape_cast %93 : vector<8x32xbf16> to vector<1x1x8x32xbf16>
      tpu.vector_store %arg6[%c0_35, %c2, %c0_36, %c0_37], %96 {strides = array<i32>} : memref<1x4x8x32xbf16, #tpu.memory_space<vmem>>, vector<1x1x8x32xbf16>,
      %97 = vector.extract_strided_slice %11 {offsets = [24, 0], sizes = [8, 128], strides = [1, 1]} : vector<32x128xf32> to vector<8x128xf32>
      %98 = arith.truncf %92 : vector<8x32xf32> to vector<8x32xbf16>
      %cst_38 = arith.constant dense<0.000000e+00> : vector<8x128xf32>
      %99 = tpu.matmul %98, %3, %cst_38 {dimension_numbers = #tpu.dot_dimension_numbers<[1], [0], [0], [1], [0, 0, 1, 1], [], []>} : vector<8x32xbf16>, vector<32x128xbf16>, vector<8x128xf32> -> vector<8x128xf32>
      %100 = arith.addf %97, %99 : vector<8x128xf32>
      %101 = vector.extract_strided_slice %100 {offsets = [0, 0], sizes = [8, 96], strides = [1, 1]} : vector<8x128xf32> to vector<8x96xf32>
      %102 = arith.negf %101 : vector<8x96xf32>
      %103 = math.exp %102 : vector<8x96xf32>
      %cst_39 = arith.constant 1.000000e+00 : f32
      %104 = vector.broadcast %cst_39 : f32 to vector<8x96xf32>
      %105 = arith.addf %104, %103 : vector<8x96xf32>
      %106 = arith.divf %104, %105 : vector<8x96xf32>
      %107 = vector.extract_strided_slice %106 {offsets = [0, 0], sizes = [8, 32], strides = [1, 1]} : vector<8x96xf32> to vector<8x32xf32>
      %108 = vector.extract_strided_slice %106 {offsets = [0, 32], sizes = [8, 32], strides = [1, 1]} : vector<8x96xf32> to vector<8x32xf32>
      %109 = vector.extract_strided_slice %106 {offsets = [0, 64], sizes = [8, 32], strides = [1, 1]} : vector<8x96xf32> to vector<8x32xf32>
      %110 = vector.extract_strided_slice %100 {offsets = [0, 96], sizes = [8, 32], strides = [1, 1]} : vector<8x128xf32> to vector<8x32xf32>
      %111 = math.tanh %110 : vector<8x32xf32>
      %112 = arith.mulf %108, %90 : vector<8x32xf32>
      %113 = arith.mulf %107, %111 : vector<8x32xf32>
      %114 = arith.addf %112, %113 : vector<8x32xf32>
      %115 = math.tanh %114 : vector<8x32xf32>
      %116 = arith.mulf %109, %115 : vector<8x32xf32>
      %117 = arith.truncf %116 : vector<8x32xf32> to vector<8x32xbf16>
      %c0_40 = arith.constant 0 : index
      %c3 = arith.constant 3 : index
      %c0_41 = arith.constant 0 : index
      %c0_42 = arith.constant 0 : index
      %118 = vector.load %arg6[%c0_40, %c3, %c0_41, %c0_42] : memref<1x4x8x32xbf16, #tpu.memory_space<vmem>>, vector<1x1x8x32xbf16>
      %119 = vector.shape_cast %118 : vector<1x1x8x32xbf16> to vector<8x32xbf16>
      %120 = vector.shape_cast %117 : vector<8x32xbf16> to vector<1x1x8x32xbf16>
      tpu.vector_store %arg6[%c0_40, %c3, %c0_41, %c0_42], %120 {strides = array<i32>} : memref<1x4x8x32xbf16, #tpu.memory_space<vmem>>, vector<1x1x8x32xbf16>,
      %c0_43 = arith.constant 0 : index
      %c0_44 = arith.constant 0 : index
      %c0_45 = arith.constant 0 : index
      %121 = vector.load %arg7[%c0_43, %c0_44, %c0_45] : memref<2x8x32xf32, #tpu.memory_space<vmem>>, vector<1x8x32xf32>
      %122 = vector.shape_cast %121 : vector<1x8x32xf32> to vector<8x32xf32>
      %123 = vector.shape_cast %116 : vector<8x32xf32> to vector<1x8x32xf32>
      tpu.vector_store %arg7[%c0_43, %c0_44, %c0_45], %123 {strides = array<i32>} : memref<2x8x32xf32, #tpu.memory_space<vmem>>, vector<1x8x32xf32>,
      %c0_46 = arith.constant 0 : index
      %c0_47 = arith.constant 0 : index
      %c0_48 = arith.constant 0 : index
      %124 = vector.load %arg8[%c0_46, %c0_47, %c0_48] : memref<2x8x32xf32, #tpu.memory_space<vmem>>, vector<1x8x32xf32>
      %125 = vector.shape_cast %124 : vector<1x8x32xf32> to vector<8x32xf32>
      %126 = vector.shape_cast %114 : vector<8x32xf32> to vector<1x8x32xf32>
      tpu.vector_store %arg8[%c0_46, %c0_47, %c0_48], %126 {strides = array<i32>} : memref<2x8x32xf32, #tpu.memory_space<vmem>>, vector<1x8x32xf32>,
    } else {
    }
    %c1_i32 = arith.constant 1 : i32
    %15 = arith.cmpi eq, %arg0, %c1_i32 : i32
    %16 = arith.extui %15 : i1 to i32
    %c0_i32_13 = arith.constant 0 : i32
    %17 = arith.cmpi ne, %16, %c0_i32_13 : i32
    scf.if %17 {
      %c0_i32_14 = arith.constant 0 : i32
      %18 = arith.cmpi eq, %arg1, %c0_i32_14 : i32
      %19 = arith.extui %18 : i1 to i32
      %c0_i32_15 = arith.constant 0 : i32
      %20 = arith.cmpi ne, %19, %c0_i32_15 : i32
      scf.if %20 {
        %cst_49 = arith.constant 0.000000e+00 : f32
        %127 = vector.broadcast %cst_49 : f32 to vector<8x32xf32>
        %c1_50 = arith.constant 1 : index
        %c0_51 = arith.constant 0 : index
        %c0_52 = arith.constant 0 : index
        %128 = vector.load %arg7[%c1_50, %c0_51, %c0_52] : memref<2x8x32xf32, #tpu.memory_space<vmem>>, vector<1x8x32xf32>
        %129 = vector.shape_cast %128 : vector<1x8x32xf32> to vector<8x32xf32>
        %130 = vector.shape_cast %127 : vector<8x32xf32> to vector<1x8x32xf32>
        tpu.vector_store %arg7[%c1_50, %c0_51, %c0_52], %130 {strides = array<i32>} : memref<2x8x32xf32, #tpu.memory_space<vmem>>, vector<1x8x32xf32>,
        %c1_53 = arith.constant 1 : index
        %c0_54 = arith.constant 0 : index
        %c0_55 = arith.constant 0 : index
        %131 = vector.load %arg8[%c1_53, %c0_54, %c0_55] : memref<2x8x32xf32, #tpu.memory_space<vmem>>, vector<1x8x32xf32>
        %132 = vector.shape_cast %131 : vector<1x8x32xf32> to vector<8x32xf32>
        %133 = vector.shape_cast %127 : vector<8x32xf32> to vector<1x8x32xf32>
        tpu.vector_store %arg8[%c1_53, %c0_54, %c0_55], %133 {strides = array<i32>} : memref<2x8x32xf32, #tpu.memory_space<vmem>>, vector<1x8x32xf32>,
      } else {
      }
      %c1 = arith.constant 1 : index
      %c0_16 = arith.constant 0 : index
      %c0_17 = arith.constant 0 : index
      %21 = vector.load %arg7[%c1, %c0_16, %c0_17] : memref<2x8x32xf32, #tpu.memory_space<vmem>>, vector<1x8x32xf32>
      %22 = vector.shape_cast %21 : vector<1x8x32xf32> to vector<8x32xf32>
      %c1_18 = arith.constant 1 : index
      %c0_19 = arith.constant 0 : index
      %c0_20 = arith.constant 0 : index
      %23 = vector.load %arg8[%c1_18, %c0_19, %c0_20] : memref<2x8x32xf32, #tpu.memory_space<vmem>>, vector<1x8x32xf32>
      %24 = vector.shape_cast %23 : vector<1x8x32xf32> to vector<8x32xf32>
      %25 = vector.extract_strided_slice %11 {offsets = [24, 0], sizes = [8, 128], strides = [1, 1]} : vector<32x128xf32> to vector<8x128xf32>
      %26 = arith.truncf %22 : vector<8x32xf32> to vector<8x32xbf16>
      %cst_21 = arith.constant dense<0.000000e+00> : vector<8x128xf32>
      %27 = tpu.matmul %26, %3, %cst_21 {dimension_numbers = #tpu.dot_dimension_numbers<[1], [0], [0], [1], [0, 0, 1, 1], [], []>} : vector<8x32xbf16>, vector<32x128xbf16>, vector<8x128xf32> -> vector<8x128xf32>
      %28 = arith.addf %25, %27 : vector<8x128xf32>
      %29 = vector.extract_strided_slice %28 {offsets = [0, 0], sizes = [8, 96], strides = [1, 1]} : vector<8x128xf32> to vector<8x96xf32>
      %30 = arith.negf %29 : vector<8x96xf32>
      %31 = math.exp %30 : vector<8x96xf32>
      %cst_22 = arith.constant 1.000000e+00 : f32
      %32 = vector.broadcast %cst_22 : f32 to vector<8x96xf32>
      %33 = arith.addf %32, %31 : vector<8x96xf32>
      %34 = arith.divf %32, %33 : vector<8x96xf32>
      %35 = vector.extract_strided_slice %34 {offsets = [0, 0], sizes = [8, 32], strides = [1, 1]} : vector<8x96xf32> to vector<8x32xf32>
      %36 = vector.extract_strided_slice %34 {offsets = [0, 32], sizes = [8, 32], strides = [1, 1]} : vector<8x96xf32> to vector<8x32xf32>
      %37 = vector.extract_strided_slice %34 {offsets = [0, 64], sizes = [8, 32], strides = [1, 1]} : vector<8x96xf32> to vector<8x32xf32>
      %38 = vector.extract_strided_slice %28 {offsets = [0, 96], sizes = [8, 32], strides = [1, 1]} : vector<8x128xf32> to vector<8x32xf32>
      %39 = math.tanh %38 : vector<8x32xf32>
      %40 = arith.mulf %36, %24 : vector<8x32xf32>
      %41 = arith.mulf %35, %39 : vector<8x32xf32>
      %42 = arith.addf %40, %41 : vector<8x32xf32>
      %43 = math.tanh %42 : vector<8x32xf32>
      %44 = arith.mulf %37, %43 : vector<8x32xf32>
      %45 = arith.truncf %44 : vector<8x32xf32> to vector<8x32xbf16>
      %c0_23 = arith.constant 0 : index
      %c3 = arith.constant 3 : index
      %c0_24 = arith.constant 0 : index
      %c0_25 = arith.constant 0 : index
      %46 = vector.load %arg6[%c0_23, %c3, %c0_24, %c0_25] : memref<1x4x8x32xbf16, #tpu.memory_space<vmem>>, vector<1x1x8x32xbf16>
      %47 = vector.shape_cast %46 : vector<1x1x8x32xbf16> to vector<8x32xbf16>
      %48 = vector.shape_cast %45 : vector<8x32xbf16> to vector<1x1x8x32xbf16>
      tpu.vector_store %arg6[%c0_23, %c3, %c0_24, %c0_25], %48 {strides = array<i32>} : memref<1x4x8x32xbf16, #tpu.memory_space<vmem>>, vector<1x1x8x32xbf16>,
      %49 = vector.extract_strided_slice %11 {offsets = [16, 0], sizes = [8, 128], strides = [1, 1]} : vector<32x128xf32> to vector<8x128xf32>
      %50 = arith.truncf %44 : vector<8x32xf32> to vector<8x32xbf16>
      %cst_26 = arith.constant dense<0.000000e+00> : vector<8x128xf32>
      %51 = tpu.matmul %50, %3, %cst_26 {dimension_numbers = #tpu.dot_dimension_numbers<[1], [0], [0], [1], [0, 0, 1, 1], [], []>} : vector<8x32xbf16>, vector<32x128xbf16>, vector<8x128xf32> -> vector<8x128xf32>
      %52 = arith.addf %49, %51 : vector<8x128xf32>
      %53 = vector.extract_strided_slice %52 {offsets = [0, 0], sizes = [8, 96], strides = [1, 1]} : vector<8x128xf32> to vector<8x96xf32>
      %54 = arith.negf %53 : vector<8x96xf32>
      %55 = math.exp %54 : vector<8x96xf32>
      %cst_27 = arith.constant 1.000000e+00 : f32
      %56 = vector.broadcast %cst_27 : f32 to vector<8x96xf32>
      %57 = arith.addf %56, %55 : vector<8x96xf32>
      %58 = arith.divf %56, %57 : vector<8x96xf32>
      %59 = vector.extract_strided_slice %58 {offsets = [0, 0], sizes = [8, 32], strides = [1, 1]} : vector<8x96xf32> to vector<8x32xf32>
      %60 = vector.extract_strided_slice %58 {offsets = [0, 32], sizes = [8, 32], strides = [1, 1]} : vector<8x96xf32> to vector<8x32xf32>
      %61 = vector.extract_strided_slice %58 {offsets = [0, 64], sizes = [8, 32], strides = [1, 1]} : vector<8x96xf32> to vector<8x32xf32>
      %62 = vector.extract_strided_slice %52 {offsets = [0, 96], sizes = [8, 32], strides = [1, 1]} : vector<8x128xf32> to vector<8x32xf32>
      %63 = math.tanh %62 : vector<8x32xf32>
      %64 = arith.mulf %60, %42 : vector<8x32xf32>
      %65 = arith.mulf %59, %63 : vector<8x32xf32>
      %66 = arith.addf %64, %65 : vector<8x32xf32>
      %67 = math.tanh %66 : vector<8x32xf32>
      %68 = arith.mulf %61, %67 : vector<8x32xf32>
      %69 = arith.truncf %68 : vector<8x32xf32> to vector<8x32xbf16>
      %c0_28 = arith.constant 0 : index
      %c2 = arith.constant 2 : index
      %c0_29 = arith.constant 0 : index
      %c0_30 = arith.constant 0 : index
      %70 = vector.load %arg6[%c0_28, %c2, %c0_29, %c0_30] : memref<1x4x8x32xbf16, #tpu.memory_space<vmem>>, vector<1x1x8x32xbf16>
      %71 = vector.shape_cast %70 : vector<1x1x8x32xbf16> to vector<8x32xbf16>
      %72 = vector.shape_cast %69 : vector<8x32xbf16> to vector<1x1x8x32xbf16>
      tpu.vector_store %arg6[%c0_28, %c2, %c0_29, %c0_30], %72 {strides = array<i32>} : memref<1x4x8x32xbf16, #tpu.memory_space<vmem>>, vector<1x1x8x32xbf16>,
      %73 = vector.extract_strided_slice %11 {offsets = [8, 0], sizes = [8, 128], strides = [1, 1]} : vector<32x128xf32> to vector<8x128xf32>
      %74 = arith.truncf %68 : vector<8x32xf32> to vector<8x32xbf16>
      %cst_31 = arith.constant dense<0.000000e+00> : vector<8x128xf32>
      %75 = tpu.matmul %74, %3, %cst_31 {dimension_numbers = #tpu.dot_dimension_numbers<[1], [0], [0], [1], [0, 0, 1, 1], [], []>} : vector<8x32xbf16>, vector<32x128xbf16>, vector<8x128xf32> -> vector<8x128xf32>
      %76 = arith.addf %73, %75 : vector<8x128xf32>
      %77 = vector.extract_strided_slice %76 {offsets = [0, 0], sizes = [8, 96], strides = [1, 1]} : vector<8x128xf32> to vector<8x96xf32>
      %78 = arith.negf %77 : vector<8x96xf32>
      %79 = math.exp %78 : vector<8x96xf32>
      %cst_32 = arith.constant 1.000000e+00 : f32
      %80 = vector.broadcast %cst_32 : f32 to vector<8x96xf32>
      %81 = arith.addf %80, %79 : vector<8x96xf32>
      %82 = arith.divf %80, %81 : vector<8x96xf32>
      %83 = vector.extract_strided_slice %82 {offsets = [0, 0], sizes = [8, 32], strides = [1, 1]} : vector<8x96xf32> to vector<8x32xf32>
      %84 = vector.extract_strided_slice %82 {offsets = [0, 32], sizes = [8, 32], strides = [1, 1]} : vector<8x96xf32> to vector<8x32xf32>
      %85 = vector.extract_strided_slice %82 {offsets = [0, 64], sizes = [8, 32], strides = [1, 1]} : vector<8x96xf32> to vector<8x32xf32>
      %86 = vector.extract_strided_slice %76 {offsets = [0, 96], sizes = [8, 32], strides = [1, 1]} : vector<8x128xf32> to vector<8x32xf32>
      %87 = math.tanh %86 : vector<8x32xf32>
      %88 = arith.mulf %84, %66 : vector<8x32xf32>
      %89 = arith.mulf %83, %87 : vector<8x32xf32>
      %90 = arith.addf %88, %89 : vector<8x32xf32>
      %91 = math.tanh %90 : vector<8x32xf32>
      %92 = arith.mulf %85, %91 : vector<8x32xf32>
      %93 = arith.truncf %92 : vector<8x32xf32> to vector<8x32xbf16>
      %c0_33 = arith.constant 0 : index
      %c1_34 = arith.constant 1 : index
      %c0_35 = arith.constant 0 : index
      %c0_36 = arith.constant 0 : index
      %94 = vector.load %arg6[%c0_33, %c1_34, %c0_35, %c0_36] : memref<1x4x8x32xbf16, #tpu.memory_space<vmem>>, vector<1x1x8x32xbf16>
      %95 = vector.shape_cast %94 : vector<1x1x8x32xbf16> to vector<8x32xbf16>
      %96 = vector.shape_cast %93 : vector<8x32xbf16> to vector<1x1x8x32xbf16>
      tpu.vector_store %arg6[%c0_33, %c1_34, %c0_35, %c0_36], %96 {strides = array<i32>} : memref<1x4x8x32xbf16, #tpu.memory_space<vmem>>, vector<1x1x8x32xbf16>,
      %97 = vector.extract_strided_slice %11 {offsets = [0, 0], sizes = [8, 128], strides = [1, 1]} : vector<32x128xf32> to vector<8x128xf32>
      %98 = arith.truncf %92 : vector<8x32xf32> to vector<8x32xbf16>
      %cst_37 = arith.constant dense<0.000000e+00> : vector<8x128xf32>
      %99 = tpu.matmul %98, %3, %cst_37 {dimension_numbers = #tpu.dot_dimension_numbers<[1], [0], [0], [1], [0, 0, 1, 1], [], []>} : vector<8x32xbf16>, vector<32x128xbf16>, vector<8x128xf32> -> vector<8x128xf32>
      %100 = arith.addf %97, %99 : vector<8x128xf32>
      %101 = vector.extract_strided_slice %100 {offsets = [0, 0], sizes = [8, 96], strides = [1, 1]} : vector<8x128xf32> to vector<8x96xf32>
      %102 = arith.negf %101 : vector<8x96xf32>
      %103 = math.exp %102 : vector<8x96xf32>
      %cst_38 = arith.constant 1.000000e+00 : f32
      %104 = vector.broadcast %cst_38 : f32 to vector<8x96xf32>
      %105 = arith.addf %104, %103 : vector<8x96xf32>
      %106 = arith.divf %104, %105 : vector<8x96xf32>
      %107 = vector.extract_strided_slice %106 {offsets = [0, 0], sizes = [8, 32], strides = [1, 1]} : vector<8x96xf32> to vector<8x32xf32>
      %108 = vector.extract_strided_slice %106 {offsets = [0, 32], sizes = [8, 32], strides = [1, 1]} : vector<8x96xf32> to vector<8x32xf32>
      %109 = vector.extract_strided_slice %106 {offsets = [0, 64], sizes = [8, 32], strides = [1, 1]} : vector<8x96xf32> to vector<8x32xf32>
      %110 = vector.extract_strided_slice %100 {offsets = [0, 96], sizes = [8, 32], strides = [1, 1]} : vector<8x128xf32> to vector<8x32xf32>
      %111 = math.tanh %110 : vector<8x32xf32>
      %112 = arith.mulf %108, %90 : vector<8x32xf32>
      %113 = arith.mulf %107, %111 : vector<8x32xf32>
      %114 = arith.addf %112, %113 : vector<8x32xf32>
      %115 = math.tanh %114 : vector<8x32xf32>
      %116 = arith.mulf %109, %115 : vector<8x32xf32>
      %117 = arith.truncf %116 : vector<8x32xf32> to vector<8x32xbf16>
      %c0_39 = arith.constant 0 : index
      %c0_40 = arith.constant 0 : index
      %c0_41 = arith.constant 0 : index
      %c0_42 = arith.constant 0 : index
      %118 = vector.load %arg6[%c0_39, %c0_40, %c0_41, %c0_42] : memref<1x4x8x32xbf16, #tpu.memory_space<vmem>>, vector<1x1x8x32xbf16>
      %119 = vector.shape_cast %118 : vector<1x1x8x32xbf16> to vector<8x32xbf16>
      %120 = vector.shape_cast %117 : vector<8x32xbf16> to vector<1x1x8x32xbf16>
      tpu.vector_store %arg6[%c0_39, %c0_40, %c0_41, %c0_42], %120 {strides = array<i32>} : memref<1x4x8x32xbf16, #tpu.memory_space<vmem>>, vector<1x1x8x32xbf16>,
      %c1_43 = arith.constant 1 : index
      %c0_44 = arith.constant 0 : index
      %c0_45 = arith.constant 0 : index
      %121 = vector.load %arg7[%c1_43, %c0_44, %c0_45] : memref<2x8x32xf32, #tpu.memory_space<vmem>>, vector<1x8x32xf32>
      %122 = vector.shape_cast %121 : vector<1x8x32xf32> to vector<8x32xf32>
      %123 = vector.shape_cast %116 : vector<8x32xf32> to vector<1x8x32xf32>
      tpu.vector_store %arg7[%c1_43, %c0_44, %c0_45], %123 {strides = array<i32>} : memref<2x8x32xf32, #tpu.memory_space<vmem>>, vector<1x8x32xf32>,
      %c1_46 = arith.constant 1 : index
      %c0_47 = arith.constant 0 : index
      %c0_48 = arith.constant 0 : index
      %124 = vector.load %arg8[%c1_46, %c0_47, %c0_48] : memref<2x8x32xf32, #tpu.memory_space<vmem>>, vector<1x8x32xf32>
      %125 = vector.shape_cast %124 : vector<1x8x32xf32> to vector<8x32xf32>
      %126 = vector.shape_cast %114 : vector<8x32xf32> to vector<1x8x32xf32>
      tpu.vector_store %arg8[%c1_46, %c0_47, %c0_48], %126 {strides = array<i32>} : memref<2x8x32xf32, #tpu.memory_space<vmem>>, vector<1x8x32xf32>,
    } else {
    }
    return
  }
  func.func @transform_0(%arg0: i32, %arg1: i32) -> (i32, i32, i32, i32) {
    %c2_i32 = arith.constant 2 : i32
    %0 = arith.muli %c2_i32, %arg1 : i32
    %c0_i32 = arith.constant 0 : i32
    %1 = arith.subi %c0_i32, %0 : i32
    %2 = arith.muli %arg0, %1 : i32
    %3 = arith.addi %arg1, %2 : i32
    %c0_i32_0 = arith.constant 0 : i32
    %c0_i32_1 = arith.constant 0 : i32
    %c0_i32_2 = arith.constant 0 : i32
    %c0_i32_3 = arith.constant 0 : i32
    return %c0_i32_0, %3, %c0_i32_1, %c0_i32_2 : i32, i32, i32, i32
  }
  func.func @transform_1(%arg0: i32, %arg1: i32) -> (i32, i32, i32) {
    %c0_i32 = arith.constant 0 : i32
    %c0_i32_0 = arith.constant 0 : i32
    %c0_i32_1 = arith.constant 0 : i32
    return %arg0, %c0_i32, %c0_i32_0 : i32, i32, i32
  }
  func.func @transform_2(%arg0: i32, %arg1: i32) -> (i32, i32, i32) {
    %c0_i32 = arith.constant 0 : i32
    %c0_i32_0 = arith.constant 0 : i32
    %c0_i32_1 = arith.constant 0 : i32
    return %arg0, %c0_i32, %c0_i32_0 : i32, i32, i32
  }
  func.func @transform_3(%arg0: i32, %arg1: i32) -> (i32, i32, i32) {
    %c0_i32 = arith.constant 0 : i32
    %c0_i32_0 = arith.constant 0 : i32
    %c0_i32_1 = arith.constant 0 : i32
    return %arg0, %c0_i32, %c0_i32_0 : i32, i32, i32
  }
  func.func @transform_4(%arg0: i32, %arg1: i32) -> (i32, i32, i32, i32) {
    %c2_i32 = arith.constant 2 : i32
    %0 = arith.muli %c2_i32, %arg1 : i32
    %c0_i32 = arith.constant 0 : i32
    %1 = arith.subi %c0_i32, %0 : i32
    %2 = arith.muli %arg0, %1 : i32
    %3 = arith.addi %arg1, %2 : i32
    %c0_i32_0 = arith.constant 0 : i32
    %c0_i32_1 = arith.constant 0 : i32
    %c0_i32_2 = arith.constant 0 : i32
    return %arg0, %3, %c0_i32_0, %c0_i32_1 : i32, i32, i32, i32
  }
}

module attributes {stable_mosaic.version = 11 : i64} {
  func.func @lstm_bidir_kernel(%arg0: i32, %arg1: i32, %arg2: memref<2x4x8x32xbf16, #tpu.memory_space<vmem>>, %arg3: memref<1x64x128xbf16, #tpu.memory_space<vmem>>, %arg4: memref<1x32x128xbf16, #tpu.memory_space<vmem>>, %arg5: memref<1x1x128xf32, #tpu.memory_space<vmem>>, %arg6: memref<1x4x8x32xbf16, #tpu.memory_space<vmem>>, %arg7: memref<2x8x32xf32, #tpu.memory_space<vmem>>, %arg8: memref<2x8x32xf32, #tpu.memory_space<vmem>>) attributes {dimension_semantics = [#tpu.dimension_semantics<parallel>, #tpu.dimension_semantics<arbitrary>], iteration_bounds = array<i64: 2, 1>, scalar_prefetch = 0 : i64, scratch_operands = 2 : i64, tpu.core_type = #tpu.core_type<tc>, window_params = [{transform_indices = @transform_0, window_bounds = array<i64: 2, 4, 8, 32>}, {pipeline_mode = #tpu.pipeline_mode<synchronous>, transform_indices = @transform_1, window_bounds = array<i64: 1, 64, 128>}, {pipeline_mode = #tpu.pipeline_mode<synchronous>, transform_indices = @transform_2, window_bounds = array<i64: 1, 32, 128>}, {pipeline_mode = #tpu.pipeline_mode<synchronous>, transform_indices = @transform_3, window_bounds = array<i64: 1, 1, 128>}, {transform_indices = @transform_4, window_bounds = array<i64: 1, 4, 8, 32>}]} {
    %c0 = arith.constant 0 : index
    %c0_0 = arith.constant 0 : index
    %c0_1 = arith.constant 0 : index
    %0 = vector.load %arg3[%c0, %c0_0, %c0_1] : memref<1x64x128xbf16, #tpu.memory_space<vmem>>, vector<1x64x128xbf16>
    %1 = vector.shape_cast %0 : vector<1x64x128xbf16> to vector<64x128xbf16>
    %c0_2 = arith.constant 0 : index
    %c0_3 = arith.constant 0 : index
    %c0_4 = arith.constant 0 : index
    %2 = vector.load %arg4[%c0_2, %c0_3, %c0_4] : memref<1x32x128xbf16, #tpu.memory_space<vmem>>, vector<1x32x128xbf16>
    %3 = vector.shape_cast %2 : vector<1x32x128xbf16> to vector<32x128xbf16>
    %c0_5 = arith.constant 0 : index
    %c0_6 = arith.constant 0 : index
    %c0_7 = arith.constant 0 : index
    %4 = vector.load %arg5[%c0_5, %c0_6, %c0_7] : memref<1x1x128xf32, #tpu.memory_space<vmem>>, vector<1x1x128xf32>
    %5 = vector.shape_cast %4 : vector<1x1x128xf32> to vector<1x128xf32>
    %c0_8 = arith.constant 0 : index
    %c0_9 = arith.constant 0 : index
    %c0_10 = arith.constant 0 : index
    %c0_11 = arith.constant 0 : index
    %6 = vector.load %arg2[%c0_8, %c0_9, %c0_10, %c0_11] : memref<2x4x8x32xbf16, #tpu.memory_space<vmem>>, vector<1x4x8x32xbf16>
    %7 = vector.shape_cast %6 : vector<1x4x8x32xbf16> to vector<4x8x32xbf16>
    %8 = vector.shape_cast %7 : vector<4x8x32xbf16> to vector<32x32xbf16>
    %9 = vector.extract_strided_slice %1 {offsets = [0, 0], sizes = [32, 128], strides = [1, 1]} : vector<64x128xbf16> to vector<32x128xbf16>
    %cst = arith.constant dense<0.000000e+00> : vector<32x128xf32>
    %10 = tpu.matmul %8, %9, %cst {dimension_numbers = #tpu.dot_dimension_numbers<[1], [0], [0], [1], [0, 0, 1, 1], [], []>} : vector<32x32xbf16>, vector<32x128xbf16>, vector<32x128xf32> -> vector<32x128xf32>
    %c1 = arith.constant 1 : index
    %c0_12 = arith.constant 0 : index
    %c0_13 = arith.constant 0 : index
    %c0_14 = arith.constant 0 : index
    %11 = vector.load %arg2[%c1, %c0_12, %c0_13, %c0_14] : memref<2x4x8x32xbf16, #tpu.memory_space<vmem>>, vector<1x4x8x32xbf16>
    %12 = vector.shape_cast %11 : vector<1x4x8x32xbf16> to vector<4x8x32xbf16>
    %13 = vector.shape_cast %12 : vector<4x8x32xbf16> to vector<32x32xbf16>
    %14 = vector.extract_strided_slice %1 {offsets = [32, 0], sizes = [32, 128], strides = [1, 1]} : vector<64x128xbf16> to vector<32x128xbf16>
    %cst_15 = arith.constant dense<0.000000e+00> : vector<32x128xf32>
    %15 = tpu.matmul %13, %14, %cst_15 {dimension_numbers = #tpu.dot_dimension_numbers<[1], [0], [0], [1], [0, 0, 1, 1], [], []>} : vector<32x32xbf16>, vector<32x128xbf16>, vector<32x128xf32> -> vector<32x128xf32>
    %16 = arith.addf %10, %15 : vector<32x128xf32>
    %17 = vector.broadcast %5 : vector<1x128xf32> to vector<32x128xf32>
    %18 = arith.addf %16, %17 : vector<32x128xf32>
    %c0_i32 = arith.constant 0 : i32
    %19 = arith.cmpi eq, %arg0, %c0_i32 : i32
    %20 = arith.extui %19 : i1 to i32
    %c0_i32_16 = arith.constant 0 : i32
    %21 = arith.cmpi ne, %20, %c0_i32_16 : i32
    scf.if %21 {
      %c0_i32_18 = arith.constant 0 : i32
      %25 = arith.cmpi eq, %arg1, %c0_i32_18 : i32
      %26 = arith.extui %25 : i1 to i32
      %c0_i32_19 = arith.constant 0 : i32
      %27 = arith.cmpi ne, %26, %c0_i32_19 : i32
      scf.if %27 {
        %cst_54 = arith.constant 0.000000e+00 : f32
        %134 = vector.broadcast %cst_54 : f32 to vector<8x32xf32>
        %c0_55 = arith.constant 0 : index
        %c0_56 = arith.constant 0 : index
        %c0_57 = arith.constant 0 : index
        %135 = vector.load %arg7[%c0_55, %c0_56, %c0_57] : memref<2x8x32xf32, #tpu.memory_space<vmem>>, vector<1x8x32xf32>
        %136 = vector.shape_cast %135 : vector<1x8x32xf32> to vector<8x32xf32>
        %137 = vector.shape_cast %134 : vector<8x32xf32> to vector<1x8x32xf32>
        tpu.vector_store %arg7[%c0_55, %c0_56, %c0_57], %137 {strides = array<i32>} : memref<2x8x32xf32, #tpu.memory_space<vmem>>, vector<1x8x32xf32>,
        %c0_58 = arith.constant 0 : index
        %c0_59 = arith.constant 0 : index
        %c0_60 = arith.constant 0 : index
        %138 = vector.load %arg8[%c0_58, %c0_59, %c0_60] : memref<2x8x32xf32, #tpu.memory_space<vmem>>, vector<1x8x32xf32>
        %139 = vector.shape_cast %138 : vector<1x8x32xf32> to vector<8x32xf32>
        %140 = vector.shape_cast %134 : vector<8x32xf32> to vector<1x8x32xf32>
        tpu.vector_store %arg8[%c0_58, %c0_59, %c0_60], %140 {strides = array<i32>} : memref<2x8x32xf32, #tpu.memory_space<vmem>>, vector<1x8x32xf32>,
      } else {
      }
      %c0_20 = arith.constant 0 : index
      %c0_21 = arith.constant 0 : index
      %c0_22 = arith.constant 0 : index
      %28 = vector.load %arg7[%c0_20, %c0_21, %c0_22] : memref<2x8x32xf32, #tpu.memory_space<vmem>>, vector<1x8x32xf32>
      %29 = vector.shape_cast %28 : vector<1x8x32xf32> to vector<8x32xf32>
      %c0_23 = arith.constant 0 : index
      %c0_24 = arith.constant 0 : index
      %c0_25 = arith.constant 0 : index
      %30 = vector.load %arg8[%c0_23, %c0_24, %c0_25] : memref<2x8x32xf32, #tpu.memory_space<vmem>>, vector<1x8x32xf32>
      %31 = vector.shape_cast %30 : vector<1x8x32xf32> to vector<8x32xf32>
      %32 = vector.extract_strided_slice %18 {offsets = [0, 0], sizes = [8, 128], strides = [1, 1]} : vector<32x128xf32> to vector<8x128xf32>
      %33 = arith.truncf %29 : vector<8x32xf32> to vector<8x32xbf16>
      %cst_26 = arith.constant dense<0.000000e+00> : vector<8x128xf32>
      %34 = tpu.matmul %33, %3, %cst_26 {dimension_numbers = #tpu.dot_dimension_numbers<[1], [0], [0], [1], [0, 0, 1, 1], [], []>} : vector<8x32xbf16>, vector<32x128xbf16>, vector<8x128xf32> -> vector<8x128xf32>
      %35 = arith.addf %32, %34 : vector<8x128xf32>
      %36 = vector.extract_strided_slice %35 {offsets = [0, 0], sizes = [8, 96], strides = [1, 1]} : vector<8x128xf32> to vector<8x96xf32>
      %37 = arith.negf %36 : vector<8x96xf32>
      %38 = math.exp %37 : vector<8x96xf32>
      %cst_27 = arith.constant 1.000000e+00 : f32
      %39 = vector.broadcast %cst_27 : f32 to vector<8x96xf32>
      %40 = arith.addf %39, %38 : vector<8x96xf32>
      %41 = arith.divf %39, %40 : vector<8x96xf32>
      %42 = vector.extract_strided_slice %41 {offsets = [0, 0], sizes = [8, 32], strides = [1, 1]} : vector<8x96xf32> to vector<8x32xf32>
      %43 = vector.extract_strided_slice %41 {offsets = [0, 32], sizes = [8, 32], strides = [1, 1]} : vector<8x96xf32> to vector<8x32xf32>
      %44 = vector.extract_strided_slice %41 {offsets = [0, 64], sizes = [8, 32], strides = [1, 1]} : vector<8x96xf32> to vector<8x32xf32>
      %45 = vector.extract_strided_slice %35 {offsets = [0, 96], sizes = [8, 32], strides = [1, 1]} : vector<8x128xf32> to vector<8x32xf32>
      %46 = math.tanh %45 : vector<8x32xf32>
      %47 = arith.mulf %43, %31 : vector<8x32xf32>
      %48 = arith.mulf %42, %46 : vector<8x32xf32>
      %49 = arith.addf %47, %48 : vector<8x32xf32>
      %50 = math.tanh %49 : vector<8x32xf32>
      %51 = arith.mulf %44, %50 : vector<8x32xf32>
      %52 = arith.truncf %51 : vector<8x32xf32> to vector<8x32xbf16>
      %c0_28 = arith.constant 0 : index
      %c0_29 = arith.constant 0 : index
      %c0_30 = arith.constant 0 : index
      %c0_31 = arith.constant 0 : index
      %53 = vector.load %arg6[%c0_28, %c0_29, %c0_30, %c0_31] : memref<1x4x8x32xbf16, #tpu.memory_space<vmem>>, vector<1x1x8x32xbf16>
      %54 = vector.shape_cast %53 : vector<1x1x8x32xbf16> to vector<8x32xbf16>
      %55 = vector.shape_cast %52 : vector<8x32xbf16> to vector<1x1x8x32xbf16>
      tpu.vector_store %arg6[%c0_28, %c0_29, %c0_30, %c0_31], %55 {strides = array<i32>} : memref<1x4x8x32xbf16, #tpu.memory_space<vmem>>, vector<1x1x8x32xbf16>,
      %56 = vector.extract_strided_slice %18 {offsets = [8, 0], sizes = [8, 128], strides = [1, 1]} : vector<32x128xf32> to vector<8x128xf32>
      %57 = arith.truncf %51 : vector<8x32xf32> to vector<8x32xbf16>
      %cst_32 = arith.constant dense<0.000000e+00> : vector<8x128xf32>
      %58 = tpu.matmul %57, %3, %cst_32 {dimension_numbers = #tpu.dot_dimension_numbers<[1], [0], [0], [1], [0, 0, 1, 1], [], []>} : vector<8x32xbf16>, vector<32x128xbf16>, vector<8x128xf32> -> vector<8x128xf32>
      %59 = arith.addf %56, %58 : vector<8x128xf32>
      %60 = vector.extract_strided_slice %59 {offsets = [0, 0], sizes = [8, 96], strides = [1, 1]} : vector<8x128xf32> to vector<8x96xf32>
      %61 = arith.negf %60 : vector<8x96xf32>
      %62 = math.exp %61 : vector<8x96xf32>
      %cst_33 = arith.constant 1.000000e+00 : f32
      %63 = vector.broadcast %cst_33 : f32 to vector<8x96xf32>
      %64 = arith.addf %63, %62 : vector<8x96xf32>
      %65 = arith.divf %63, %64 : vector<8x96xf32>
      %66 = vector.extract_strided_slice %65 {offsets = [0, 0], sizes = [8, 32], strides = [1, 1]} : vector<8x96xf32> to vector<8x32xf32>
      %67 = vector.extract_strided_slice %65 {offsets = [0, 32], sizes = [8, 32], strides = [1, 1]} : vector<8x96xf32> to vector<8x32xf32>
      %68 = vector.extract_strided_slice %65 {offsets = [0, 64], sizes = [8, 32], strides = [1, 1]} : vector<8x96xf32> to vector<8x32xf32>
      %69 = vector.extract_strided_slice %59 {offsets = [0, 96], sizes = [8, 32], strides = [1, 1]} : vector<8x128xf32> to vector<8x32xf32>
      %70 = math.tanh %69 : vector<8x32xf32>
      %71 = arith.mulf %67, %49 : vector<8x32xf32>
      %72 = arith.mulf %66, %70 : vector<8x32xf32>
      %73 = arith.addf %71, %72 : vector<8x32xf32>
      %74 = math.tanh %73 : vector<8x32xf32>
      %75 = arith.mulf %68, %74 : vector<8x32xf32>
      %76 = arith.truncf %75 : vector<8x32xf32> to vector<8x32xbf16>
      %c0_34 = arith.constant 0 : index
      %c1_35 = arith.constant 1 : index
      %c0_36 = arith.constant 0 : index
      %c0_37 = arith.constant 0 : index
      %77 = vector.load %arg6[%c0_34, %c1_35, %c0_36, %c0_37] : memref<1x4x8x32xbf16, #tpu.memory_space<vmem>>, vector<1x1x8x32xbf16>
      %78 = vector.shape_cast %77 : vector<1x1x8x32xbf16> to vector<8x32xbf16>
      %79 = vector.shape_cast %76 : vector<8x32xbf16> to vector<1x1x8x32xbf16>
      tpu.vector_store %arg6[%c0_34, %c1_35, %c0_36, %c0_37], %79 {strides = array<i32>} : memref<1x4x8x32xbf16, #tpu.memory_space<vmem>>, vector<1x1x8x32xbf16>,
      %80 = vector.extract_strided_slice %18 {offsets = [16, 0], sizes = [8, 128], strides = [1, 1]} : vector<32x128xf32> to vector<8x128xf32>
      %81 = arith.truncf %75 : vector<8x32xf32> to vector<8x32xbf16>
      %cst_38 = arith.constant dense<0.000000e+00> : vector<8x128xf32>
      %82 = tpu.matmul %81, %3, %cst_38 {dimension_numbers = #tpu.dot_dimension_numbers<[1], [0], [0], [1], [0, 0, 1, 1], [], []>} : vector<8x32xbf16>, vector<32x128xbf16>, vector<8x128xf32> -> vector<8x128xf32>
      %83 = arith.addf %80, %82 : vector<8x128xf32>
      %84 = vector.extract_strided_slice %83 {offsets = [0, 0], sizes = [8, 96], strides = [1, 1]} : vector<8x128xf32> to vector<8x96xf32>
      %85 = arith.negf %84 : vector<8x96xf32>
      %86 = math.exp %85 : vector<8x96xf32>
      %cst_39 = arith.constant 1.000000e+00 : f32
      %87 = vector.broadcast %cst_39 : f32 to vector<8x96xf32>
      %88 = arith.addf %87, %86 : vector<8x96xf32>
      %89 = arith.divf %87, %88 : vector<8x96xf32>
      %90 = vector.extract_strided_slice %89 {offsets = [0, 0], sizes = [8, 32], strides = [1, 1]} : vector<8x96xf32> to vector<8x32xf32>
      %91 = vector.extract_strided_slice %89 {offsets = [0, 32], sizes = [8, 32], strides = [1, 1]} : vector<8x96xf32> to vector<8x32xf32>
      %92 = vector.extract_strided_slice %89 {offsets = [0, 64], sizes = [8, 32], strides = [1, 1]} : vector<8x96xf32> to vector<8x32xf32>
      %93 = vector.extract_strided_slice %83 {offsets = [0, 96], sizes = [8, 32], strides = [1, 1]} : vector<8x128xf32> to vector<8x32xf32>
      %94 = math.tanh %93 : vector<8x32xf32>
      %95 = arith.mulf %91, %73 : vector<8x32xf32>
      %96 = arith.mulf %90, %94 : vector<8x32xf32>
      %97 = arith.addf %95, %96 : vector<8x32xf32>
      %98 = math.tanh %97 : vector<8x32xf32>
      %99 = arith.mulf %92, %98 : vector<8x32xf32>
      %100 = arith.truncf %99 : vector<8x32xf32> to vector<8x32xbf16>
      %c0_40 = arith.constant 0 : index
      %c2 = arith.constant 2 : index
      %c0_41 = arith.constant 0 : index
      %c0_42 = arith.constant 0 : index
      %101 = vector.load %arg6[%c0_40, %c2, %c0_41, %c0_42] : memref<1x4x8x32xbf16, #tpu.memory_space<vmem>>, vector<1x1x8x32xbf16>
      %102 = vector.shape_cast %101 : vector<1x1x8x32xbf16> to vector<8x32xbf16>
      %103 = vector.shape_cast %100 : vector<8x32xbf16> to vector<1x1x8x32xbf16>
      tpu.vector_store %arg6[%c0_40, %c2, %c0_41, %c0_42], %103 {strides = array<i32>} : memref<1x4x8x32xbf16, #tpu.memory_space<vmem>>, vector<1x1x8x32xbf16>,
      %104 = vector.extract_strided_slice %18 {offsets = [24, 0], sizes = [8, 128], strides = [1, 1]} : vector<32x128xf32> to vector<8x128xf32>
      %105 = arith.truncf %99 : vector<8x32xf32> to vector<8x32xbf16>
      %cst_43 = arith.constant dense<0.000000e+00> : vector<8x128xf32>
      %106 = tpu.matmul %105, %3, %cst_43 {dimension_numbers = #tpu.dot_dimension_numbers<[1], [0], [0], [1], [0, 0, 1, 1], [], []>} : vector<8x32xbf16>, vector<32x128xbf16>, vector<8x128xf32> -> vector<8x128xf32>
      %107 = arith.addf %104, %106 : vector<8x128xf32>
      %108 = vector.extract_strided_slice %107 {offsets = [0, 0], sizes = [8, 96], strides = [1, 1]} : vector<8x128xf32> to vector<8x96xf32>
      %109 = arith.negf %108 : vector<8x96xf32>
      %110 = math.exp %109 : vector<8x96xf32>
      %cst_44 = arith.constant 1.000000e+00 : f32
      %111 = vector.broadcast %cst_44 : f32 to vector<8x96xf32>
      %112 = arith.addf %111, %110 : vector<8x96xf32>
      %113 = arith.divf %111, %112 : vector<8x96xf32>
      %114 = vector.extract_strided_slice %113 {offsets = [0, 0], sizes = [8, 32], strides = [1, 1]} : vector<8x96xf32> to vector<8x32xf32>
      %115 = vector.extract_strided_slice %113 {offsets = [0, 32], sizes = [8, 32], strides = [1, 1]} : vector<8x96xf32> to vector<8x32xf32>
      %116 = vector.extract_strided_slice %113 {offsets = [0, 64], sizes = [8, 32], strides = [1, 1]} : vector<8x96xf32> to vector<8x32xf32>
      %117 = vector.extract_strided_slice %107 {offsets = [0, 96], sizes = [8, 32], strides = [1, 1]} : vector<8x128xf32> to vector<8x32xf32>
      %118 = math.tanh %117 : vector<8x32xf32>
      %119 = arith.mulf %115, %97 : vector<8x32xf32>
      %120 = arith.mulf %114, %118 : vector<8x32xf32>
      %121 = arith.addf %119, %120 : vector<8x32xf32>
      %122 = math.tanh %121 : vector<8x32xf32>
      %123 = arith.mulf %116, %122 : vector<8x32xf32>
      %124 = arith.truncf %123 : vector<8x32xf32> to vector<8x32xbf16>
      %c0_45 = arith.constant 0 : index
      %c3 = arith.constant 3 : index
      %c0_46 = arith.constant 0 : index
      %c0_47 = arith.constant 0 : index
      %125 = vector.load %arg6[%c0_45, %c3, %c0_46, %c0_47] : memref<1x4x8x32xbf16, #tpu.memory_space<vmem>>, vector<1x1x8x32xbf16>
      %126 = vector.shape_cast %125 : vector<1x1x8x32xbf16> to vector<8x32xbf16>
      %127 = vector.shape_cast %124 : vector<8x32xbf16> to vector<1x1x8x32xbf16>
      tpu.vector_store %arg6[%c0_45, %c3, %c0_46, %c0_47], %127 {strides = array<i32>} : memref<1x4x8x32xbf16, #tpu.memory_space<vmem>>, vector<1x1x8x32xbf16>,
      %c0_48 = arith.constant 0 : index
      %c0_49 = arith.constant 0 : index
      %c0_50 = arith.constant 0 : index
      %128 = vector.load %arg7[%c0_48, %c0_49, %c0_50] : memref<2x8x32xf32, #tpu.memory_space<vmem>>, vector<1x8x32xf32>
      %129 = vector.shape_cast %128 : vector<1x8x32xf32> to vector<8x32xf32>
      %130 = vector.shape_cast %123 : vector<8x32xf32> to vector<1x8x32xf32>
      tpu.vector_store %arg7[%c0_48, %c0_49, %c0_50], %130 {strides = array<i32>} : memref<2x8x32xf32, #tpu.memory_space<vmem>>, vector<1x8x32xf32>,
      %c0_51 = arith.constant 0 : index
      %c0_52 = arith.constant 0 : index
      %c0_53 = arith.constant 0 : index
      %131 = vector.load %arg8[%c0_51, %c0_52, %c0_53] : memref<2x8x32xf32, #tpu.memory_space<vmem>>, vector<1x8x32xf32>
      %132 = vector.shape_cast %131 : vector<1x8x32xf32> to vector<8x32xf32>
      %133 = vector.shape_cast %121 : vector<8x32xf32> to vector<1x8x32xf32>
      tpu.vector_store %arg8[%c0_51, %c0_52, %c0_53], %133 {strides = array<i32>} : memref<2x8x32xf32, #tpu.memory_space<vmem>>, vector<1x8x32xf32>,
    } else {
    }
    %c1_i32 = arith.constant 1 : i32
    %22 = arith.cmpi eq, %arg0, %c1_i32 : i32
    %23 = arith.extui %22 : i1 to i32
    %c0_i32_17 = arith.constant 0 : i32
    %24 = arith.cmpi ne, %23, %c0_i32_17 : i32
    scf.if %24 {
      %c0_i32_18 = arith.constant 0 : i32
      %25 = arith.cmpi eq, %arg1, %c0_i32_18 : i32
      %26 = arith.extui %25 : i1 to i32
      %c0_i32_19 = arith.constant 0 : i32
      %27 = arith.cmpi ne, %26, %c0_i32_19 : i32
      scf.if %27 {
        %cst_54 = arith.constant 0.000000e+00 : f32
        %134 = vector.broadcast %cst_54 : f32 to vector<8x32xf32>
        %c1_55 = arith.constant 1 : index
        %c0_56 = arith.constant 0 : index
        %c0_57 = arith.constant 0 : index
        %135 = vector.load %arg7[%c1_55, %c0_56, %c0_57] : memref<2x8x32xf32, #tpu.memory_space<vmem>>, vector<1x8x32xf32>
        %136 = vector.shape_cast %135 : vector<1x8x32xf32> to vector<8x32xf32>
        %137 = vector.shape_cast %134 : vector<8x32xf32> to vector<1x8x32xf32>
        tpu.vector_store %arg7[%c1_55, %c0_56, %c0_57], %137 {strides = array<i32>} : memref<2x8x32xf32, #tpu.memory_space<vmem>>, vector<1x8x32xf32>,
        %c1_58 = arith.constant 1 : index
        %c0_59 = arith.constant 0 : index
        %c0_60 = arith.constant 0 : index
        %138 = vector.load %arg8[%c1_58, %c0_59, %c0_60] : memref<2x8x32xf32, #tpu.memory_space<vmem>>, vector<1x8x32xf32>
        %139 = vector.shape_cast %138 : vector<1x8x32xf32> to vector<8x32xf32>
        %140 = vector.shape_cast %134 : vector<8x32xf32> to vector<1x8x32xf32>
        tpu.vector_store %arg8[%c1_58, %c0_59, %c0_60], %140 {strides = array<i32>} : memref<2x8x32xf32, #tpu.memory_space<vmem>>, vector<1x8x32xf32>,
      } else {
      }
      %c1_20 = arith.constant 1 : index
      %c0_21 = arith.constant 0 : index
      %c0_22 = arith.constant 0 : index
      %28 = vector.load %arg7[%c1_20, %c0_21, %c0_22] : memref<2x8x32xf32, #tpu.memory_space<vmem>>, vector<1x8x32xf32>
      %29 = vector.shape_cast %28 : vector<1x8x32xf32> to vector<8x32xf32>
      %c1_23 = arith.constant 1 : index
      %c0_24 = arith.constant 0 : index
      %c0_25 = arith.constant 0 : index
      %30 = vector.load %arg8[%c1_23, %c0_24, %c0_25] : memref<2x8x32xf32, #tpu.memory_space<vmem>>, vector<1x8x32xf32>
      %31 = vector.shape_cast %30 : vector<1x8x32xf32> to vector<8x32xf32>
      %32 = vector.extract_strided_slice %18 {offsets = [24, 0], sizes = [8, 128], strides = [1, 1]} : vector<32x128xf32> to vector<8x128xf32>
      %33 = arith.truncf %29 : vector<8x32xf32> to vector<8x32xbf16>
      %cst_26 = arith.constant dense<0.000000e+00> : vector<8x128xf32>
      %34 = tpu.matmul %33, %3, %cst_26 {dimension_numbers = #tpu.dot_dimension_numbers<[1], [0], [0], [1], [0, 0, 1, 1], [], []>} : vector<8x32xbf16>, vector<32x128xbf16>, vector<8x128xf32> -> vector<8x128xf32>
      %35 = arith.addf %32, %34 : vector<8x128xf32>
      %36 = vector.extract_strided_slice %35 {offsets = [0, 0], sizes = [8, 96], strides = [1, 1]} : vector<8x128xf32> to vector<8x96xf32>
      %37 = arith.negf %36 : vector<8x96xf32>
      %38 = math.exp %37 : vector<8x96xf32>
      %cst_27 = arith.constant 1.000000e+00 : f32
      %39 = vector.broadcast %cst_27 : f32 to vector<8x96xf32>
      %40 = arith.addf %39, %38 : vector<8x96xf32>
      %41 = arith.divf %39, %40 : vector<8x96xf32>
      %42 = vector.extract_strided_slice %41 {offsets = [0, 0], sizes = [8, 32], strides = [1, 1]} : vector<8x96xf32> to vector<8x32xf32>
      %43 = vector.extract_strided_slice %41 {offsets = [0, 32], sizes = [8, 32], strides = [1, 1]} : vector<8x96xf32> to vector<8x32xf32>
      %44 = vector.extract_strided_slice %41 {offsets = [0, 64], sizes = [8, 32], strides = [1, 1]} : vector<8x96xf32> to vector<8x32xf32>
      %45 = vector.extract_strided_slice %35 {offsets = [0, 96], sizes = [8, 32], strides = [1, 1]} : vector<8x128xf32> to vector<8x32xf32>
      %46 = math.tanh %45 : vector<8x32xf32>
      %47 = arith.mulf %43, %31 : vector<8x32xf32>
      %48 = arith.mulf %42, %46 : vector<8x32xf32>
      %49 = arith.addf %47, %48 : vector<8x32xf32>
      %50 = math.tanh %49 : vector<8x32xf32>
      %51 = arith.mulf %44, %50 : vector<8x32xf32>
      %52 = arith.truncf %51 : vector<8x32xf32> to vector<8x32xbf16>
      %c0_28 = arith.constant 0 : index
      %c3 = arith.constant 3 : index
      %c0_29 = arith.constant 0 : index
      %c0_30 = arith.constant 0 : index
      %53 = vector.load %arg6[%c0_28, %c3, %c0_29, %c0_30] : memref<1x4x8x32xbf16, #tpu.memory_space<vmem>>, vector<1x1x8x32xbf16>
      %54 = vector.shape_cast %53 : vector<1x1x8x32xbf16> to vector<8x32xbf16>
      %55 = vector.shape_cast %52 : vector<8x32xbf16> to vector<1x1x8x32xbf16>
      tpu.vector_store %arg6[%c0_28, %c3, %c0_29, %c0_30], %55 {strides = array<i32>} : memref<1x4x8x32xbf16, #tpu.memory_space<vmem>>, vector<1x1x8x32xbf16>,
      %56 = vector.extract_strided_slice %18 {offsets = [16, 0], sizes = [8, 128], strides = [1, 1]} : vector<32x128xf32> to vector<8x128xf32>
      %57 = arith.truncf %51 : vector<8x32xf32> to vector<8x32xbf16>
      %cst_31 = arith.constant dense<0.000000e+00> : vector<8x128xf32>
      %58 = tpu.matmul %57, %3, %cst_31 {dimension_numbers = #tpu.dot_dimension_numbers<[1], [0], [0], [1], [0, 0, 1, 1], [], []>} : vector<8x32xbf16>, vector<32x128xbf16>, vector<8x128xf32> -> vector<8x128xf32>
      %59 = arith.addf %56, %58 : vector<8x128xf32>
      %60 = vector.extract_strided_slice %59 {offsets = [0, 0], sizes = [8, 96], strides = [1, 1]} : vector<8x128xf32> to vector<8x96xf32>
      %61 = arith.negf %60 : vector<8x96xf32>
      %62 = math.exp %61 : vector<8x96xf32>
      %cst_32 = arith.constant 1.000000e+00 : f32
      %63 = vector.broadcast %cst_32 : f32 to vector<8x96xf32>
      %64 = arith.addf %63, %62 : vector<8x96xf32>
      %65 = arith.divf %63, %64 : vector<8x96xf32>
      %66 = vector.extract_strided_slice %65 {offsets = [0, 0], sizes = [8, 32], strides = [1, 1]} : vector<8x96xf32> to vector<8x32xf32>
      %67 = vector.extract_strided_slice %65 {offsets = [0, 32], sizes = [8, 32], strides = [1, 1]} : vector<8x96xf32> to vector<8x32xf32>
      %68 = vector.extract_strided_slice %65 {offsets = [0, 64], sizes = [8, 32], strides = [1, 1]} : vector<8x96xf32> to vector<8x32xf32>
      %69 = vector.extract_strided_slice %59 {offsets = [0, 96], sizes = [8, 32], strides = [1, 1]} : vector<8x128xf32> to vector<8x32xf32>
      %70 = math.tanh %69 : vector<8x32xf32>
      %71 = arith.mulf %67, %49 : vector<8x32xf32>
      %72 = arith.mulf %66, %70 : vector<8x32xf32>
      %73 = arith.addf %71, %72 : vector<8x32xf32>
      %74 = math.tanh %73 : vector<8x32xf32>
      %75 = arith.mulf %68, %74 : vector<8x32xf32>
      %76 = arith.truncf %75 : vector<8x32xf32> to vector<8x32xbf16>
      %c0_33 = arith.constant 0 : index
      %c2 = arith.constant 2 : index
      %c0_34 = arith.constant 0 : index
      %c0_35 = arith.constant 0 : index
      %77 = vector.load %arg6[%c0_33, %c2, %c0_34, %c0_35] : memref<1x4x8x32xbf16, #tpu.memory_space<vmem>>, vector<1x1x8x32xbf16>
      %78 = vector.shape_cast %77 : vector<1x1x8x32xbf16> to vector<8x32xbf16>
      %79 = vector.shape_cast %76 : vector<8x32xbf16> to vector<1x1x8x32xbf16>
      tpu.vector_store %arg6[%c0_33, %c2, %c0_34, %c0_35], %79 {strides = array<i32>} : memref<1x4x8x32xbf16, #tpu.memory_space<vmem>>, vector<1x1x8x32xbf16>,
      %80 = vector.extract_strided_slice %18 {offsets = [8, 0], sizes = [8, 128], strides = [1, 1]} : vector<32x128xf32> to vector<8x128xf32>
      %81 = arith.truncf %75 : vector<8x32xf32> to vector<8x32xbf16>
      %cst_36 = arith.constant dense<0.000000e+00> : vector<8x128xf32>
      %82 = tpu.matmul %81, %3, %cst_36 {dimension_numbers = #tpu.dot_dimension_numbers<[1], [0], [0], [1], [0, 0, 1, 1], [], []>} : vector<8x32xbf16>, vector<32x128xbf16>, vector<8x128xf32> -> vector<8x128xf32>
      %83 = arith.addf %80, %82 : vector<8x128xf32>
      %84 = vector.extract_strided_slice %83 {offsets = [0, 0], sizes = [8, 96], strides = [1, 1]} : vector<8x128xf32> to vector<8x96xf32>
      %85 = arith.negf %84 : vector<8x96xf32>
      %86 = math.exp %85 : vector<8x96xf32>
      %cst_37 = arith.constant 1.000000e+00 : f32
      %87 = vector.broadcast %cst_37 : f32 to vector<8x96xf32>
      %88 = arith.addf %87, %86 : vector<8x96xf32>
      %89 = arith.divf %87, %88 : vector<8x96xf32>
      %90 = vector.extract_strided_slice %89 {offsets = [0, 0], sizes = [8, 32], strides = [1, 1]} : vector<8x96xf32> to vector<8x32xf32>
      %91 = vector.extract_strided_slice %89 {offsets = [0, 32], sizes = [8, 32], strides = [1, 1]} : vector<8x96xf32> to vector<8x32xf32>
      %92 = vector.extract_strided_slice %89 {offsets = [0, 64], sizes = [8, 32], strides = [1, 1]} : vector<8x96xf32> to vector<8x32xf32>
      %93 = vector.extract_strided_slice %83 {offsets = [0, 96], sizes = [8, 32], strides = [1, 1]} : vector<8x128xf32> to vector<8x32xf32>
      %94 = math.tanh %93 : vector<8x32xf32>
      %95 = arith.mulf %91, %73 : vector<8x32xf32>
      %96 = arith.mulf %90, %94 : vector<8x32xf32>
      %97 = arith.addf %95, %96 : vector<8x32xf32>
      %98 = math.tanh %97 : vector<8x32xf32>
      %99 = arith.mulf %92, %98 : vector<8x32xf32>
      %100 = arith.truncf %99 : vector<8x32xf32> to vector<8x32xbf16>
      %c0_38 = arith.constant 0 : index
      %c1_39 = arith.constant 1 : index
      %c0_40 = arith.constant 0 : index
      %c0_41 = arith.constant 0 : index
      %101 = vector.load %arg6[%c0_38, %c1_39, %c0_40, %c0_41] : memref<1x4x8x32xbf16, #tpu.memory_space<vmem>>, vector<1x1x8x32xbf16>
      %102 = vector.shape_cast %101 : vector<1x1x8x32xbf16> to vector<8x32xbf16>
      %103 = vector.shape_cast %100 : vector<8x32xbf16> to vector<1x1x8x32xbf16>
      tpu.vector_store %arg6[%c0_38, %c1_39, %c0_40, %c0_41], %103 {strides = array<i32>} : memref<1x4x8x32xbf16, #tpu.memory_space<vmem>>, vector<1x1x8x32xbf16>,
      %104 = vector.extract_strided_slice %18 {offsets = [0, 0], sizes = [8, 128], strides = [1, 1]} : vector<32x128xf32> to vector<8x128xf32>
      %105 = arith.truncf %99 : vector<8x32xf32> to vector<8x32xbf16>
      %cst_42 = arith.constant dense<0.000000e+00> : vector<8x128xf32>
      %106 = tpu.matmul %105, %3, %cst_42 {dimension_numbers = #tpu.dot_dimension_numbers<[1], [0], [0], [1], [0, 0, 1, 1], [], []>} : vector<8x32xbf16>, vector<32x128xbf16>, vector<8x128xf32> -> vector<8x128xf32>
      %107 = arith.addf %104, %106 : vector<8x128xf32>
      %108 = vector.extract_strided_slice %107 {offsets = [0, 0], sizes = [8, 96], strides = [1, 1]} : vector<8x128xf32> to vector<8x96xf32>
      %109 = arith.negf %108 : vector<8x96xf32>
      %110 = math.exp %109 : vector<8x96xf32>
      %cst_43 = arith.constant 1.000000e+00 : f32
      %111 = vector.broadcast %cst_43 : f32 to vector<8x96xf32>
      %112 = arith.addf %111, %110 : vector<8x96xf32>
      %113 = arith.divf %111, %112 : vector<8x96xf32>
      %114 = vector.extract_strided_slice %113 {offsets = [0, 0], sizes = [8, 32], strides = [1, 1]} : vector<8x96xf32> to vector<8x32xf32>
      %115 = vector.extract_strided_slice %113 {offsets = [0, 32], sizes = [8, 32], strides = [1, 1]} : vector<8x96xf32> to vector<8x32xf32>
      %116 = vector.extract_strided_slice %113 {offsets = [0, 64], sizes = [8, 32], strides = [1, 1]} : vector<8x96xf32> to vector<8x32xf32>
      %117 = vector.extract_strided_slice %107 {offsets = [0, 96], sizes = [8, 32], strides = [1, 1]} : vector<8x128xf32> to vector<8x32xf32>
      %118 = math.tanh %117 : vector<8x32xf32>
      %119 = arith.mulf %115, %97 : vector<8x32xf32>
      %120 = arith.mulf %114, %118 : vector<8x32xf32>
      %121 = arith.addf %119, %120 : vector<8x32xf32>
      %122 = math.tanh %121 : vector<8x32xf32>
      %123 = arith.mulf %116, %122 : vector<8x32xf32>
      %124 = arith.truncf %123 : vector<8x32xf32> to vector<8x32xbf16>
      %c0_44 = arith.constant 0 : index
      %c0_45 = arith.constant 0 : index
      %c0_46 = arith.constant 0 : index
      %c0_47 = arith.constant 0 : index
      %125 = vector.load %arg6[%c0_44, %c0_45, %c0_46, %c0_47] : memref<1x4x8x32xbf16, #tpu.memory_space<vmem>>, vector<1x1x8x32xbf16>
      %126 = vector.shape_cast %125 : vector<1x1x8x32xbf16> to vector<8x32xbf16>
      %127 = vector.shape_cast %124 : vector<8x32xbf16> to vector<1x1x8x32xbf16>
      tpu.vector_store %arg6[%c0_44, %c0_45, %c0_46, %c0_47], %127 {strides = array<i32>} : memref<1x4x8x32xbf16, #tpu.memory_space<vmem>>, vector<1x1x8x32xbf16>,
      %c1_48 = arith.constant 1 : index
      %c0_49 = arith.constant 0 : index
      %c0_50 = arith.constant 0 : index
      %128 = vector.load %arg7[%c1_48, %c0_49, %c0_50] : memref<2x8x32xf32, #tpu.memory_space<vmem>>, vector<1x8x32xf32>
      %129 = vector.shape_cast %128 : vector<1x8x32xf32> to vector<8x32xf32>
      %130 = vector.shape_cast %123 : vector<8x32xf32> to vector<1x8x32xf32>
      tpu.vector_store %arg7[%c1_48, %c0_49, %c0_50], %130 {strides = array<i32>} : memref<2x8x32xf32, #tpu.memory_space<vmem>>, vector<1x8x32xf32>,
      %c1_51 = arith.constant 1 : index
      %c0_52 = arith.constant 0 : index
      %c0_53 = arith.constant 0 : index
      %131 = vector.load %arg8[%c1_51, %c0_52, %c0_53] : memref<2x8x32xf32, #tpu.memory_space<vmem>>, vector<1x8x32xf32>
      %132 = vector.shape_cast %131 : vector<1x8x32xf32> to vector<8x32xf32>
      %133 = vector.shape_cast %121 : vector<8x32xf32> to vector<1x8x32xf32>
      tpu.vector_store %arg8[%c1_51, %c0_52, %c0_53], %133 {strides = array<i32>} : memref<2x8x32xf32, #tpu.memory_space<vmem>>, vector<1x8x32xf32>,
    } else {
    }
    return
  }
  func.func @transform_0(%arg0: i32, %arg1: i32) -> (i32, i32, i32, i32) {
    %c2_i32 = arith.constant 2 : i32
    %0 = arith.muli %c2_i32, %arg1 : i32
    %c0_i32 = arith.constant 0 : i32
    %1 = arith.subi %c0_i32, %0 : i32
    %2 = arith.muli %arg0, %1 : i32
    %3 = arith.addi %arg1, %2 : i32
    %c0_i32_0 = arith.constant 0 : i32
    %c0_i32_1 = arith.constant 0 : i32
    %c0_i32_2 = arith.constant 0 : i32
    %c0_i32_3 = arith.constant 0 : i32
    return %c0_i32_0, %3, %c0_i32_1, %c0_i32_2 : i32, i32, i32, i32
  }
  func.func @transform_1(%arg0: i32, %arg1: i32) -> (i32, i32, i32) {
    %c0_i32 = arith.constant 0 : i32
    %c0_i32_0 = arith.constant 0 : i32
    %c0_i32_1 = arith.constant 0 : i32
    return %arg0, %c0_i32, %c0_i32_0 : i32, i32, i32
  }
  func.func @transform_2(%arg0: i32, %arg1: i32) -> (i32, i32, i32) {
    %c0_i32 = arith.constant 0 : i32
    %c0_i32_0 = arith.constant 0 : i32
    %c0_i32_1 = arith.constant 0 : i32
    return %arg0, %c0_i32, %c0_i32_0 : i32, i32, i32
  }
  func.func @transform_3(%arg0: i32, %arg1: i32) -> (i32, i32, i32) {
    %c0_i32 = arith.constant 0 : i32
    %c0_i32_0 = arith.constant 0 : i32
    %c0_i32_1 = arith.constant 0 : i32
    return %arg0, %c0_i32, %c0_i32_0 : i32, i32, i32
  }
  func.func @transform_4(%arg0: i32, %arg1: i32) -> (i32, i32, i32, i32) {
    %c2_i32 = arith.constant 2 : i32
    %0 = arith.muli %c2_i32, %arg1 : i32
    %c0_i32 = arith.constant 0 : i32
    %1 = arith.subi %c0_i32, %0 : i32
    %2 = arith.muli %arg0, %1 : i32
    %3 = arith.addi %arg1, %2 : i32
    %c0_i32_0 = arith.constant 0 : i32
    %c0_i32_1 = arith.constant 0 : i32
    %c0_i32_2 = arith.constant 0 : i32
    return %arg0, %3, %c0_i32_0, %c0_i32_1 : i32, i32, i32, i32
  }
}

module attributes {stable_mosaic.version = 11 : i64} {
  func.func @fc_logsoftmax_kernel(%arg0: i32, %arg1: memref<32x32xbf16, #tpu.memory_space<vmem>>, %arg2: memref<32x32xbf16, #tpu.memory_space<vmem>>, %arg3: memref<32x128xbf16, #tpu.memory_space<vmem>>, %arg4: memref<32x128xbf16, #tpu.memory_space<vmem>>, %arg5: memref<1x128xf32, #tpu.memory_space<vmem>>, %arg6: memref<32x128xf32, #tpu.memory_space<vmem>>) attributes {dimension_semantics = [#tpu.dimension_semantics<parallel>], iteration_bounds = array<i64: 1>, scalar_prefetch = 0 : i64, scratch_operands = 0 : i64, tpu.core_type = #tpu.core_type<tc>, window_params = [{transform_indices = @transform_0, window_bounds = array<i64: 32, 32>}, {transform_indices = @transform_1, window_bounds = array<i64: 32, 32>}, {pipeline_mode = #tpu.pipeline_mode<synchronous>, transform_indices = @transform_2, window_bounds = array<i64: 32, 128>}, {pipeline_mode = #tpu.pipeline_mode<synchronous>, transform_indices = @transform_3, window_bounds = array<i64: 32, 128>}, {pipeline_mode = #tpu.pipeline_mode<synchronous>, transform_indices = @transform_4, window_bounds = array<i64: 1, 128>}, {transform_indices = @transform_5, window_bounds = array<i64: 32, 128>}]} {
    %c0 = arith.constant 0 : index
    %c0_0 = arith.constant 0 : index
    %0 = vector.load %arg1[%c0, %c0_0] : memref<32x32xbf16, #tpu.memory_space<vmem>>, vector<32x32xbf16>
    %c0_1 = arith.constant 0 : index
    %c0_2 = arith.constant 0 : index
    %1 = vector.load %arg3[%c0_1, %c0_2] : memref<32x128xbf16, #tpu.memory_space<vmem>>, vector<32x128xbf16>
    %cst = arith.constant dense<0.000000e+00> : vector<32x128xf32>
    %2 = tpu.matmul %0, %1, %cst {dimension_numbers = #tpu.dot_dimension_numbers<[1], [0], [0], [1], [0, 0, 1, 1], [], []>} : vector<32x32xbf16>, vector<32x128xbf16>, vector<32x128xf32> -> vector<32x128xf32>
    %c0_3 = arith.constant 0 : index
    %c0_4 = arith.constant 0 : index
    %3 = vector.load %arg2[%c0_3, %c0_4] : memref<32x32xbf16, #tpu.memory_space<vmem>>, vector<32x32xbf16>
    %c0_5 = arith.constant 0 : index
    %c0_6 = arith.constant 0 : index
    %4 = vector.load %arg4[%c0_5, %c0_6] : memref<32x128xbf16, #tpu.memory_space<vmem>>, vector<32x128xbf16>
    %cst_7 = arith.constant dense<0.000000e+00> : vector<32x128xf32>
    %5 = tpu.matmul %3, %4, %cst_7 {dimension_numbers = #tpu.dot_dimension_numbers<[1], [0], [0], [1], [0, 0, 1, 1], [], []>} : vector<32x32xbf16>, vector<32x128xbf16>, vector<32x128xf32> -> vector<32x128xf32>
    %6 = arith.addf %2, %5 : vector<32x128xf32>
    %c0_8 = arith.constant 0 : index
    %c0_9 = arith.constant 0 : index
    %7 = vector.load %arg5[%c0_8, %c0_9] : memref<1x128xf32, #tpu.memory_space<vmem>>, vector<1x128xf32>
    %8 = vector.broadcast %7 : vector<1x128xf32> to vector<32x128xf32>
    %9 = arith.addf %6, %8 : vector<32x128xf32>
    %cst_10 = arith.constant dense<0xFF800000> : vector<32xf32>
    %10 = vector.multi_reduction <maximumf>, %9, %cst_10 [1] : vector<32x128xf32> to vector<32xf32>
    %11 = vector.shape_cast %10 : vector<32xf32> to vector<32x1xf32>
    %12 = vector.broadcast %11 : vector<32x1xf32> to vector<32x128xf32>
    %13 = arith.subf %9, %12 : vector<32x128xf32>
    %14 = math.exp %13 : vector<32x128xf32>
    %cst_11 = arith.constant dense<0.000000e+00> : vector<32xf32>
    %15 = vector.multi_reduction <add>, %14, %cst_11 [1] : vector<32x128xf32> to vector<32xf32>
    %16 = vector.shape_cast %15 : vector<32xf32> to vector<32x1xf32>
    %17 = math.log %16 : vector<32x1xf32>
    %18 = vector.broadcast %17 : vector<32x1xf32> to vector<32x128xf32>
    %19 = arith.subf %13, %18 : vector<32x128xf32>
    %c0_12 = arith.constant 0 : index
    %c0_13 = arith.constant 0 : index
    %20 = vector.load %arg6[%c0_12, %c0_13] : memref<32x128xf32, #tpu.memory_space<vmem>>, vector<32x128xf32>
    tpu.vector_store %arg6[%c0_12, %c0_13], %19 {strides = array<i32>} : memref<32x128xf32, #tpu.memory_space<vmem>>, vector<32x128xf32>,
    return
  }
  func.func @transform_0(%arg0: i32) -> (i32, i32) {
    %c0_i32 = arith.constant 0 : i32
    %c0_i32_0 = arith.constant 0 : i32
    return %arg0, %c0_i32 : i32, i32
  }
  func.func @transform_1(%arg0: i32) -> (i32, i32) {
    %c0_i32 = arith.constant 0 : i32
    %c0_i32_0 = arith.constant 0 : i32
    return %arg0, %c0_i32 : i32, i32
  }
  func.func @transform_2(%arg0: i32) -> (i32, i32) {
    %c0_i32 = arith.constant 0 : i32
    %c0_i32_0 = arith.constant 0 : i32
    %c0_i32_1 = arith.constant 0 : i32
    return %c0_i32, %c0_i32_0 : i32, i32
  }
  func.func @transform_3(%arg0: i32) -> (i32, i32) {
    %c0_i32 = arith.constant 0 : i32
    %c0_i32_0 = arith.constant 0 : i32
    %c0_i32_1 = arith.constant 0 : i32
    return %c0_i32, %c0_i32_0 : i32, i32
  }
  func.func @transform_4(%arg0: i32) -> (i32, i32) {
    %c0_i32 = arith.constant 0 : i32
    %c0_i32_0 = arith.constant 0 : i32
    %c0_i32_1 = arith.constant 0 : i32
    return %c0_i32, %c0_i32_0 : i32, i32
  }
  func.func @transform_5(%arg0: i32) -> (i32, i32) {
    %c0_i32 = arith.constant 0 : i32
    %c0_i32_0 = arith.constant 0 : i32
    return %arg0, %c0_i32 : i32, i32
  }
}

</mosaic_0001>

<bundles_post_ra>
// kernel: asr_ctc_forward.6
= control target key start
LH: loop header
LB: loop body
LE: loop exit
PB: predicated region body
PF: predicated region fallthrough
CT: control target
= control target key end

     0   :  { %vm116_vm0 = vcmask 1043456   ;;  %vm117_vm1 = vcmask 1044480   ;;  %vm91_vm2 = vcmask 72704   ;;  %v458_v1 = vmov 65535   ;;  %s651_s1 = inlined_call_operand.vmem [shape: bf16[9,32], index: 1, kind: input, shape index: {}]   ;;  %s652_s0 = inlined_call_operand.vmem [shape: bf16[128,9], index: 0, kind: input, shape index: {}]   ;;  %s653_s2 = inlined_call_operand.vmem [shape: f32[1,32], index: 2, kind: input, shape index: {}]   ;;  %s654_s3 = inlined_call_operand.vmem [shape: f32[1,32], index: 3, kind: input, shape index: {}]   ;;  %s655_s4 = inlined_call_operand.vmem [shape: f32[1,32], index: 4, kind: input, shape index: {}]   ;;  %s656_s5 = inlined_call_operand.vmem [shape: bf16[128,32], index: 5, kind: output, shape index: {}]  }
   0x1   :  { %v449_v0 = vld [vmem:[%s651_s1] sm:$0x1f]   ;;  %v118_v2 = vsel %vm116_vm0, 4294967295, %v458_v1  ;;  %v452_v7 = vld [vmem:[%s652_s0 + $0x8] sm:$0xff]   ;;  %v454_v9 = vld [vmem:[%s652_s0 + $0x10] sm:$0xff]   ;;  %vm346_vm3 = vcmask 257024  }
   0x2   :  { %v450_v3 = vld [vmem:[%s652_s0] sm:$0xff]   ;;  %v119_v4 = vsel %vm117_vm1, %v118_v2, 0  ;;  %v453_v8 = vld [vmem:[%s652_s0 + $0x28] sm:$0xff]   ;;  %v455_v10 = vld [vmem:[%s652_s0 + $0x30] sm:$0xff]  }
   0x3   :  { %v451_v5 = vld [vmem:[%s652_s0 + $0x20] sm:$0xff]   ;;  %v121_v6 = vand.u32 %v449_v0, %v119_v4  ;;  %430 = vmatprep.mubr.msk.bf16.mxu0 %vm91_vm2, %v450_v3  ;;  %v456_v11 = vld [vmem:[%s652_s0 + $0x18] sm:$0xff]  }
   0x4   :  { %438 = vmatprep.mubr.msk.bf16.mxu1 %vm91_vm2, %v451_v5  ;;  %v457_v12 = vld [vmem:[%s652_s0 + $0x38] sm:$0xff]   ;;  %v527_v13 = vld [vmem:[%s653_s2] ss:$0 sm:$0xff] }
   0x5   :  { %428 = vmatprep.subr.bf16.mxu0 %v121_v6  ;;  %446 = vmatprep.subr.bf16.mxu1 %v121_v6  ;;  %v534_v18 = vld [vmem:[%s654_s3] ss:$0 sm:$0xff] }
   0x6   :  { %429 = vmatpush3.bf16.msra.mxu0 %v121_v6  ;;  %447 = vmatpush3.bf16.msra.mxu1 %v121_v6  ;;  %v541_v25 = vld [vmem:[%s655_s4] ss:$0 sm:$0xff] }
   0x9   :  { %431 = vmatmul.mubr.msk.bf16.vlgmr.msra.gmra.mxu0 %vm91_vm2, %v452_v7  ;;  %439 = vmatmul.mubr.msk.bf16.vlgmr.msra.gmra.mxu1 %vm91_vm2, %v453_v8 }
   0xa   :  { %434 = vmatprep.mubr.msk.bf16.mxu0 %vm91_vm2, %v454_v9  ;;  %442 = vmatprep.mubr.msk.bf16.mxu1 %vm91_vm2, %v455_v10 }
  0x11   :  { %435 = vmatmul.mubr.msk.bf16.gmra.mxu0 %vm91_vm2, %v456_v11  ;;  %443 = vmatmul.mubr.msk.bf16.gmra.mxu1 %vm91_vm2, %v457_v12 }
  0xc9   :  { %v432_v14 = vpop.f32.mrf.mxu0  ;;  %v440_v15 = vpop.f32.mrf.mxu1 }
  0xca   :  { %v166_v16 = vadd.f32 %v432_v14, %v527_v13  ;;  %v198_v17 = vadd.f32 %v440_v15, %v527_v13 }
  0xcb   :  { %v157_v19 = vpop.f32.mrf.mxu0  ;;  %v189_v20 = vpop.f32.mrf.mxu1 }
  0xcc   :  { %v222_v21 = vmax.f32 %v166_v16, 0.0  ;;  %v230_v22 = vmax.f32 %v198_v17, 0.0  ;;  %v158_v23 = vadd.f32 %v527_v13, %v157_v19  ;;  %v190_v24 = vadd.f32 %v527_v13, %v189_v20 }
  0xcd   :  { %v433_v26 = vpop.f32.mrf.mxu0  ;;  %v441_v27 = vpop.f32.mrf.mxu1 }
  0xce   :  { %v245_v28 = vmul.f32 %v534_v18, %v222_v21  ;;  %v253_v29 = vmul.f32 %v534_v18, %v230_v22  ;;  %v220_v30 = vmax.f32 %v158_v23, 0.0  ;;  %v228_v31 = vmax.f32 %v190_v24, 0.0 }
  0xcf   :  { %v169_v32 = vadd.f32 %v433_v26, %v527_v13  ;;  %v201_v33 = vadd.f32 %v441_v27, %v527_v13  ;;  %v160_v34 = vpop.f32.mrf.mxu0  ;;  %v192_v35 = vpop.f32.mrf.mxu1 }
  0xd0   :  { %v268_v36 = vadd.f32 %v541_v25, %v245_v28  ;;  %v276_v37 = vadd.f32 %v541_v25, %v253_v29  ;;  %v243_v38 = vmul.f32 %v534_v18, %v220_v30  ;;  %v251_v39 = vmul.f32 %v534_v18, %v228_v31 }
  0xd1   :  { %v223_v40 = vmax.f32 %v169_v32, 0.0  ;;  %v231_v41 = vmax.f32 %v201_v33, 0.0  ;;  %v161_v42 = vadd.f32 %v527_v13, %v160_v34  ;;  %v193_v43 = vadd.f32 %v527_v13, %v192_v35  ;;  %v436_v44 = vpop.f32.mrf.mxu0  ;;  %v444_v45 = vpop.f32.mrf.mxu1 }
  0xd2   :  { %v405_v46 = vpack.c.bf16 %v268_v36, %v268_v36  ;;  %v413_v47 = vpack.c.bf16 %v276_v37, %v276_v37  ;;  %v266_v48 = vadd.f32 %v541_v25, %v243_v38  ;;  %v274_v49 = vadd.f32 %v541_v25, %v251_v39 }
  0xd3   :  { %v246_v50 = vmul.f32 %v534_v18, %v223_v40  ;;  %v254_v51 = vmul.f32 %v534_v18, %v231_v41  ;;  %v221_v52 = vmax.f32 %v161_v42, 0.0  ;;  %v229_v53 = vmax.f32 %v193_v43, 0.0  ;;  %v173_v54 = vpop.f32.mrf.mxu0  ;;  %v205_v55 = vpop.f32.mrf.mxu1 }
  0xd4   :  { %349 = vst.msk [vmem:[%s656_s5 + $0x8] sm:$0xf] %vm346_vm3, %v405_v46  ;;  %357 = vst.msk [vmem:[%s656_s5 + $0x28] sm:$0xf] %vm346_vm3, %v413_v47  ;;  %v403_v56 = vpack.c.bf16 %v266_v48, %v266_v48  ;;  %v411_v57 = vpack.c.bf16 %v274_v49, %v274_v49  ;;  %v182_v58 = vadd.f32 %v436_v44, %v527_v13 }
  0xd5   :  { %v214_v59 = vadd.f32 %v444_v45, %v527_v13  ;;  %v269_v60 = vadd.f32 %v541_v25, %v246_v50  ;;  %v277_v61 = vadd.f32 %v541_v25, %v254_v51  ;;  %v244_v62 = vmul.f32 %v534_v18, %v221_v52  ;;  %v437_v0 = vpop.f32.mrf.mxu0  ;;  %v445_v1 = vpop.f32.mrf.mxu1 }
  0xd6   :  { %v252_v63 = vmul.f32 %v534_v18, %v229_v53  ;;  %347 = vst.msk [vmem:[%s656_s5] sm:$0xf] %vm346_vm3, %v403_v56  ;;  %355 = vst.msk [vmem:[%s656_s5 + $0x20] sm:$0xf] %vm346_vm3, %v411_v57  ;;  %v226_v2 = vmax.f32 %v182_v58, 0.0  ;;  %v174_v4 = vadd.f32 %v527_v13, %v173_v54  ;;  %v206_v5 = vadd.f32 %v527_v13, %v205_v55 }
  0xd7   :  { %v234_v3 = vmax.f32 %v214_v59, 0.0  ;;  %v406_v6 = vpack.c.bf16 %v269_v60, %v269_v60  ;;  %v414_v7 = vpack.c.bf16 %v277_v61, %v277_v61  ;;  %v267_v8 = vadd.f32 %v541_v25, %v244_v62  ;;  %v176_v15 = vpop.f32.mrf.mxu0  ;;  %v208_v16 = vpop.f32.mrf.mxu1 }
  0xd8   :  { %v275_v9 = vadd.f32 %v541_v25, %v252_v63  ;;  %v249_v10 = vmul.f32 %v534_v18, %v226_v2  ;;  %v224_v12 = vmax.f32 %v174_v4, 0.0  ;;  %v232_v14 = vmax.f32 %v206_v5, 0.0 }
  0xd9   :  { %v257_v11 = vmul.f32 %v534_v18, %v234_v3  ;;  %350 = vst.msk [vmem:[%s656_s5 + $0xc] sm:$0xf] %vm346_vm3, %v406_v6  ;;  %358 = vst.msk [vmem:[%s656_s5 + $0x2c] sm:$0xf] %vm346_vm3, %v414_v7  ;;  %v404_v17 = vpack.c.bf16 %v267_v8, %v267_v8  ;;  %v185_v20 = vadd.f32 %v437_v0, %v527_v13 }
  0xda   :  { %v412_v19 = vpack.c.bf16 %v275_v9, %v275_v9  ;;  %v217_v21 = vadd.f32 %v445_v1, %v527_v13  ;;  %v272_v22 = vadd.f32 %v541_v25, %v249_v10  ;;  %v247_v24 = vmul.f32 %v534_v18, %v224_v12 }
  0xdb   :  { %v280_v23 = vadd.f32 %v541_v25, %v257_v11  ;;  %v255_v26 = vmul.f32 %v534_v18, %v232_v14  ;;  %348 = vst.msk [vmem:[%s656_s5 + $0x4] sm:$0xf] %vm346_vm3, %v404_v17  ;;  %v227_v27 = vmax.f32 %v185_v20, 0.0  ;;  %v177_v29 = vadd.f32 %v527_v13, %v176_v15 }
  0xdc   :  { %356 = vst.msk [vmem:[%s656_s5 + $0x24] sm:$0xf] %vm346_vm3, %v412_v19  ;;  %v235_v28 = vmax.f32 %v217_v21, 0.0  ;;  %v209_v30 = vadd.f32 %v527_v13, %v208_v16  ;;  %v409_v31 = vpack.c.bf16 %v272_v22, %v272_v22  ;;  %v270_v33 = vadd.f32 %v541_v25, %v247_v24 }
  0xdd   :  { %v417_v32 = vpack.c.bf16 %v280_v23, %v280_v23  ;;  %v278_v34 = vadd.f32 %v541_v25, %v255_v26  ;;  %v250_v35 = vmul.f32 %v534_v18, %v227_v27  ;;  %v225_v37 = vmax.f32 %v177_v29, 0.0 }
  0xde   :  { %v258_v36 = vmul.f32 %v534_v18, %v235_v28  ;;  %v233_v38 = vmax.f32 %v209_v30, 0.0  ;;  %353 = vst.msk [vmem:[%s656_s5 + $0x18] sm:$0xf] %vm346_vm3, %v409_v31  ;;  %v407_v13 = vpack.c.bf16 %v270_v33, %v270_v33 }
  0xdf   :  { %361 = vst.msk [vmem:[%s656_s5 + $0x38] sm:$0xf] %vm346_vm3, %v417_v32  ;;  %v415_v39 = vpack.c.bf16 %v278_v34, %v278_v34  ;;  %v273_v40 = vadd.f32 %v541_v25, %v250_v35  ;;  %v248_v42 = vmul.f32 %v534_v18, %v225_v37 }
  0xe0   :  { %v281_v41 = vadd.f32 %v541_v25, %v258_v36  ;;  %v256_v43 = vmul.f32 %v534_v18, %v233_v38  ;;  %351 = vst.msk [vmem:[%s656_s5 + $0x10] sm:$0xf] %vm346_vm3, %v407_v13 }
  0xe1   :  { %359 = vst.msk [vmem:[%s656_s5 + $0x30] sm:$0xf] %vm346_vm3, %v415_v39  ;;  %v410_v44 = vpack.c.bf16 %v273_v40, %v273_v40  ;;  %v271_v46 = vadd.f32 %v541_v25, %v248_v42 }
  0xe2   :  { %v418_v45 = vpack.c.bf16 %v281_v41, %v281_v41  ;;  %v279_v47 = vadd.f32 %v541_v25, %v256_v43 }
  0xe3   :  { %354 = vst.msk [vmem:[%s656_s5 + $0x1c] sm:$0xf] %vm346_vm3, %v410_v44  ;;  %v408_v18 = vpack.c.bf16 %v271_v46, %v271_v46 }
  0xe4   :  { %362 = vst.msk [vmem:[%s656_s5 + $0x3c] sm:$0xf] %vm346_vm3, %v418_v45  ;;  %v416_v48 = vpack.c.bf16 %v279_v47, %v279_v47 }
  0xe5   :  { %352 = vst.msk [vmem:[%s656_s5 + $0x14] sm:$0xf] %vm346_vm3, %v408_v18 }
  0xe6   :  { %360 = vst.msk [vmem:[%s656_s5 + $0x34] sm:$0xf] %vm346_vm3, %v416_v48 }

// kernel: asr_ctc_forward.7
= control target key start
LH: loop header
LB: loop body
LE: loop exit
PB: predicated region body
PF: predicated region fallthrough
CT: control target
= control target key end

     0   :  { %vm210_vm0 = vcmask 261120   ;;  %vm357_vm1 = vcmask 257024   ;;  %s596_s1 = inlined_call_operand.vmem [shape: bf16[288,32], index: 1, kind: input, shape index: {}]   ;;  %s597_s0 = inlined_call_operand.vmem [shape: bf16[32,288], index: 0, kind: input, shape index: {}]   ;;  %s598_s2 = inlined_call_operand.vmem [shape: f32[1,32], index: 2, kind: input, shape index: {}]   ;;  %s599_s3 = inlined_call_operand.vmem [shape: f32[1,32], index: 3, kind: input, shape index: {}]   ;;  %s600_s4 = inlined_call_operand.vmem [shape: f32[1,32], index: 4, kind: input, shape index: {}]   ;;  %s601_s5 = inlined_call_operand.vmem [shape: bf16[32,32], index: 5, kind: output, shape index: {}]  }
   0x1   :  { %v443_v0 = vld [vmem:[%s596_s1 + $0x78] sm:$0xff]   ;;  %v445_v2 = vld [vmem:[%s596_s1 + $0x70] sm:$0xff]   ;;  %v447_v4 = vld [vmem:[%s596_s1 + $0x68] sm:$0xff]  }
   0x2   :  { %v444_v1 = vld [vmem:[%s596_s1 + $0x38] sm:$0xff]   ;;  %403 = vmatprep.subr.bf16.mxu0 %v443_v0  ;;  %v446_v3 = vld [vmem:[%s596_s1 + $0x30] sm:$0xff]   ;;  %v448_v5 = vld [vmem:[%s596_s1 + $0x28] sm:$0xff]  }
   0x3   :  { %404 = vmatpush3.bf16.msra.mxu0 %v444_v1  ;;  %v449_v6 = vld [vmem:[%s596_s1 + $0x60] sm:$0xff]   ;;  %v451_v8 = vld [vmem:[%s596_s1 + $0x58] sm:$0xff]   ;;  %v458_v10 = vld [vmem:[%s596_s1 + $0x88] sm:$0xff]  }
   0x4   :  { %405 = vmatprep.subr.bf16.mxu0 %v445_v2  ;;  %v450_v7 = vld [vmem:[%s596_s1 + $0x20] sm:$0xff]   ;;  %v452_v9 = vld [vmem:[%s596_s1 + $0x18] sm:$0xff]   ;;  %v453_v11 = vld [vmem:[%s596_s1 + $0x50] sm:$0xff]   ;;  %435 = vmatprep.subr.bf16.mxu1 %v458_v10 }
   0x5   :  { %v454_v12 = vld [vmem:[%s596_s1 + $0x10] sm:$0xff]   ;;  %v455_v13 = vld [vmem:[%s596_s1 + $0x48] sm:$0xff]   ;;  %436 = vmatpush3.bf16.msra.mxu1 %v458_v10  ;;  %v463_v15 = vld [vmem:[%s596_s1 + $0x80] sm:$0xff]  }
   0x6   :  { %v462_v14 = vld [vmem:[%s597_s0 + $0x4] ss:$12 sps:$4 sm:$0xff]   ;;  %v464_v16 = vld [vmem:[%s597_s0 + $0x8] ss:$12 sps:$4 sm:$0xff]   ;;  %437 = vmatprep.subr.bf16.mxu1 %v463_v15  ;;  %v465_v17 = vld [vmem:[%s597_s0 + $0x20] ss:$12 sps:$4 sm:$0xff]  }
   0x7   :  { %406 = vmatpush3.bf16.msra.mxu0 %v446_v3  ;;  %249 = vmatprep.mubr.bf16.mxu0 %v462_v14  ;;  %v456_v18 = vld [vmem:[%s596_s1 + $0x8] sm:$0xff]   ;;  %v457_v19 = vld [vmem:[%s596_s1 + $0x40] sm:$0xff]  }
   0x8   :  { %407 = vmatprep.subr.bf16.mxu0 %v447_v4  ;;  %439 = vmatprep.mubr.msk.bf16.mxu1 %vm210_vm0, %v464_v16  ;;  %v459_v20 = vld [vmem:[%s596_s1] sm:$0xff]   ;;  %v466_v22 = vld [vmem:[%s597_s0 + $0x1c] ss:$12 sps:$4 sm:$0xff]  }
   0x9   :  { %438 = vmatpush3.bf16.msra.mxu1 %v463_v15  ;;  %v460_v21 = vld [vmem:[%s597_s0] ss:$12 sps:$4 sm:$0xff]   ;;  %v468_v23 = vld [vmem:[%s597_s0 + $0x18] ss:$12 sps:$4 sm:$0xff]  }
   0xa   :  { %v366_v28 = vld [vmem:[%s598_s2] ss:$0 sm:$0xff] }
   0xb   :  { %408 = vmatpush3.bf16.msra.mxu0 %v448_v5  ;;  %v393_v36 = vld [vmem:[%s599_s3] ss:$0 sm:$0xff] }
   0xc   :  { %409 = vmatprep.subr.bf16.mxu0 %v449_v6  ;;  %440 = vmatmul.mubr.msk.bf16.vlgmr.msra.gmra.mxu1 %vm210_vm0, %v465_v17  ;;  %v394_v41 = vld [vmem:[%s600_s4] ss:$0 sm:$0xff] }
   0xf   :  { %410 = vmatpush3.bf16.msra.mxu0 %v450_v7 }
  0x10   :  { %411 = vmatprep.subr.bf16.mxu0 %v451_v8 }
  0x13   :  { %412 = vmatpush3.bf16.msra.mxu0 %v452_v9 }
  0x14   :  { %413 = vmatprep.subr.bf16.mxu0 %v453_v11 }
  0x17   :  { %414 = vmatpush3.bf16.msra.mxu0 %v454_v12 }
  0x18   :  { %415 = vmatprep.subr.bf16.mxu0 %v455_v13 }
  0x1b   :  { %416 = vmatpush3.bf16.msra.mxu0 %v456_v18 }
  0x1c   :  { %417 = vmatprep.subr.bf16.mxu0 %v457_v19 }
  0x1f   :  { %418 = vmatpush3.bf16.msra.mxu0 %v459_v20 }
  0x22   :  { %250 = vmatmul.mubr.bf16.vlgmr.msra.gmra.mxu0 %v460_v21 }
  0x23   :  { %257 = vmatprep.mubr.bf16.mxu0 %v466_v22 }
  0x2a   :  { %258 = vmatmul.mubr.bf16.gmra.mxu0 %v468_v23 }
  0xcc   :  { %v441_v24 = vpop.f32.mrf.mxu1 }
  0xce   :  { %v300_v26 = vpop.f32.mrf.mxu1 }
  0xd0   :  { %v442_v31 = vpop.f32.mrf.mxu1 }
  0xd2   :  { %v303_v38 = vpop.f32.mrf.mxu1 }
  0xe2   :  { %v419_v25 = vpop.f32.mrf.mxu0 }
  0xe4   :  { %v420_v27 = vpop.f32.mrf.mxu0 }
  0xe5   :  { %v421_v29 = vadd.f32 %v420_v27, %v419_v25 }
  0xe6   :  { %v422_v30 = vpop.f32.mrf.mxu0 }
  0xe7   :  { %v252_v32 = vadd.f32 %v421_v29, %v366_v28 }
  0xe8   :  { %v423_v33 = vpop.f32.mrf.mxu0 }
  0xe9   :  { %v424_v34 = vadd.f32 %v423_v33, %v422_v30  ;;  %v301_v35 = vadd.f32 %v300_v26, %v252_v32 }
  0xea   :  { %v425_v37 = vpop.f32.mrf.mxu0 }
  0xeb   :  { %v315_v39 = vmax.f32 %v301_v35, 0.0  ;;  %v255_v40 = vadd.f32 %v424_v34, %v366_v28 }
  0xec   :  { %v426_v42 = vpop.f32.mrf.mxu0 }
  0xed   :  { %v326_v43 = vmul.f32 %v393_v36, %v315_v39  ;;  %v427_v44 = vadd.f32 %v426_v42, %v425_v37  ;;  %v304_v45 = vadd.f32 %v303_v38, %v255_v40 }
  0xee   :  { %v428_v46 = vpop.f32.mrf.mxu0 }
  0xef   :  { %v337_v47 = vadd.f32 %v394_v41, %v326_v43  ;;  %v260_v48 = vadd.f32 %v427_v44, %v366_v28  ;;  %v316_v49 = vmax.f32 %v304_v45, 0.0 }
  0xf0   :  { %v429_v50 = vpop.f32.mrf.mxu0 }
  0xf1   :  { %v399_v51 = vpack.c.bf16 %v337_v47, %v337_v47  ;;  %v309_v52 = vadd.f32 %v441_v24, %v260_v48  ;;  %v327_v53 = vmul.f32 %v393_v36, %v316_v49  ;;  %v430_v54 = vadd.f32 %v429_v50, %v428_v46 }
  0xf3   :  { %358 = vst.msk [vmem:[%s601_s5] sm:$0xf] %vm357_vm1, %v399_v51  ;;  %v317_v55 = vmax.f32 %v309_v52, 0.0  ;;  %v338_v56 = vadd.f32 %v394_v41, %v327_v53  ;;  %v263_v57 = vadd.f32 %v430_v54, %v366_v28 }
  0xf5   :  { %v328_v58 = vmul.f32 %v393_v36, %v317_v55  ;;  %v400_v59 = vpack.c.bf16 %v338_v56, %v338_v56  ;;  %v312_v60 = vadd.f32 %v442_v31, %v263_v57 }
  0xf7   :  { %v339_v61 = vadd.f32 %v394_v41, %v328_v58  ;;  %359 = vst.msk [vmem:[%s601_s5 + $0x4] sm:$0xf] %vm357_vm1, %v400_v59  ;;  %v318_v62 = vmax.f32 %v312_v60, 0.0 }
  0xf9   :  { %v401_v63 = vpack.c.bf16 %v339_v61, %v339_v61  ;;  %v329_v0 = vmul.f32 %v393_v36, %v318_v62 }
  0xfb   :  { %360 = vst.msk [vmem:[%s601_s5 + $0x8] sm:$0xf] %vm357_vm1, %v401_v63  ;;  %v340_v1 = vadd.f32 %v394_v41, %v329_v0 }
  0xfd   :  { %v402_v2 = vpack.c.bf16 %v340_v1, %v340_v1 }
  0xff   :  { %361 = vst.msk [vmem:[%s601_s5 + $0xc] sm:$0xf] %vm357_vm1, %v402_v2 }

// kernel: asr_ctc_forward.8
= control target key start
LH: loop header
LB: loop body
LE: loop exit
PB: predicated region body
PF: predicated region fallthrough
CT: control target
= control target key end

     0   :  { %s1672_s15 = smov 0   ;;  %s1674_s16 = smov 0   ;;  %s1852_s0 = inlined_call_operand.vmem [shape: bf16[1,4,8,128], index: 0, kind: input, shape index: {}]   ;;  %s1853_s1 = inlined_call_operand.vmem [shape: bf16[2,128,128], index: 1, kind: input, shape index: {}]   ;;  %s1854_s2 = inlined_call_operand.vmem [shape: bf16[2,32,128], index: 2, kind: input, shape index: {}]   ;;  %s1855_s3 = inlined_call_operand.vmem [shape: f32[2,1,128], index: 3, kind: input, shape index: {}]   ;;  %s1856_s4 = inlined_call_operand.vmem [shape: bf16[2,4,8,32], index: 4, kind: output, shape index: {}]  }
   0x1   :  { %s1676_s17 = smov 0  }
   0x2 LB: > { %s26_s18 = sadd.s32 1, %s1631_s16  ;;  %p1320_p0 = scmp.ge.s32.totalorder %s1635_s17, 1  ;;  %s1635_s17 = sphi %s1676_s17, %s14_s17   ;;  %s1631_s16 = sphi %s1674_s16, %s1858_s16   ;;  %s1627_s15 = sphi %s1672_s15, %s1857_s15  }
   0x3   : > { %p28_p1 = scmp.ge.s32.totalorder %s26_s18, 2  ;;  %p229_p2 = scmp.lt.s32.totalorder %s1635_s17, 3 }
   0x5   : > { %s1860_s18 = smov (%p28_p1, %s26_s18), 0  ;;  %p230_p3 = pnand %p1320_p0, %p229_p2 }
   0x6   : > { %p294_p4 = scmp.lt.s32.totalorder (!%p230_p3), %s1627_s15, 1  ;;  %p1338_p5 = scmp.ne.s32.totalorder (!%p230_p3), %s1627_s15, 0 }
   0x7   : > { %233 = sbr.rel (%p230_p3) target bundleno = 5817 (0x16b9), region = 36 }
   0xc   : > { %v1547_v0 = vld [vmem:[%s1852_s0] sm:$0xff]   ;;  %s1697_s21 = scalar_select %p294_p4, %s1627_s15, 1  ;;  %v1548_v13 = vld [vmem:[%s1852_s0 + $0x8] sm:$0xff]  }
   0xd   : > { %1437 = vmatprep.mubr.bf16.mxu0 %v1547_v0  ;;  %s1639_s12 = smov (!%p1338_p5), 32   ;;  %s1640_s13 = smov (!%p1338_p5), 64  }
   0xe   : > { %s1376_s22 = sshll.u32 %s1697_s21, 6  ;;  %s1377_s23 = sshll.u32 %s1697_s21, 4 }
   0xf   : > { %s298_s26 = scalar_lea.vmem %s1853_s1, %s1376_s22  ;;  %s303_s29 = scalar_lea.vmem %s1854_s2, %s1377_s23 }
  0x10   : > { %s1710_s6 = scalar_lea.vmem %s1856_s4, %s1377_s23  ;;  %v1712_v1 = vld [vmem:[%s303_s29] sm:$0xf]  ;;  %v1714_v2 = vld [vmem:[%s303_s29 + $0x4] sm:$0xf]  ;;  %v1716_v3 = vld [vmem:[%s303_s29 + $0x8] sm:$0xf]  ;;  %s306_s11 = scalar_lea.vmem %s1855_s3, %s1697_s21 }
  0x11   : > { %v1718_v4 = vld [vmem:[%s303_s29 + $0xc] sm:$0xf]  ;;  %v1539_v5 = vld [vmem:[%s298_s26 + $0x38] sm:$0xff]   ;;  %v1540_v6 = vld [vmem:[%s298_s26 + $0x30] sm:$0xff]   ;;  %s1641_s14 = smov (!%p1338_p5), 96  }
  0x12   : > { %1421 = vmatprep.subr.bf16.mxu0 %v1539_v5  ;;  %v1541_v7 = vld [vmem:[%s298_s26 + $0x28] sm:$0xff]   ;;  %v1542_v8 = vld [vmem:[%s298_s26 + $0x20] sm:$0xff]   ;;  %v1543_v9 = vld [vmem:[%s298_s26 + $0x18] sm:$0xff]  }
  0x13   : > { %1422 = vmatpush3.bf16.msra.mxu0 %v1539_v5  ;;  %v1544_v10 = vld [vmem:[%s298_s26 + $0x10] sm:$0xff]   ;;  %v1545_v11 = vld [vmem:[%s298_s26 + $0x8] sm:$0xff]   ;;  %v1546_v12 = vld [vmem:[%s298_s26] sm:$0xff]  }
  0x14   : > { %1423 = vmatprep.subr.bf16.mxu0 %v1540_v6  ;;  %v1327_v14 = vld [vmem:[%s306_s11] ss:$0 sm:$0xff] }
  0x17   : > { %1424 = vmatpush3.bf16.msra.mxu0 %v1540_v6 }
  0x18   : > { %1425 = vmatprep.subr.bf16.mxu0 %v1541_v7 }
  0x1b   : > { %1426 = vmatpush3.bf16.msra.mxu0 %v1541_v7 }
  0x1c   : > { %1427 = vmatprep.subr.bf16.mxu0 %v1542_v8 }
  0x1f   : > { %1428 = vmatpush3.bf16.msra.mxu0 %v1542_v8 }
  0x20   : > { %1429 = vmatprep.subr.bf16.mxu0 %v1543_v9 }
  0x23   : > { %1430 = vmatpush3.bf16.msra.mxu0 %v1543_v9 }
  0x24   : > { %1431 = vmatprep.subr.bf16.mxu0 %v1544_v10 }
  0x27   : > { %1432 = vmatpush3.bf16.msra.mxu0 %v1544_v10 }
  0x28   : > { %1433 = vmatprep.subr.bf16.mxu0 %v1545_v11 }
  0x2b   : > { %1434 = vmatpush3.bf16.msra.mxu0 %v1545_v11 }
  0x2c   : > { %1435 = vmatprep.subr.bf16.mxu0 %v1546_v12 }
  0x2f   : > { %1436 = vmatpush3.bf16.msra.mxu0 %v1546_v12 }
  0x32   : > { %1438 = vmatmul.mubr.bf16.vlgmr.msra.gmra.mxu0 %v1548_v13 }
  0xf2   : > { %v1439_v15 = vpop.f32.mrf.mxu0 }
  0xf3   : > { %v1727_v16 = vadd.f32 %v1439_v15, %v1327_v14 }
  0xf4   : > { %v451_v17 = vpop.f32.mrf.mxu0 }
  0xf5   : > { %v1729_v18 = vadd.f32 %v1327_v14, %v451_v17  ;;  %469 = sbr.rel (%p1338_p5) target bundleno = 3030 (0xbd6), region = 40 }
  0xf6   : > { %v1440_v19 = vpop.f32.mrf.mxu0 }
  0xf7   : > { %v1731_v20 = vadd.f32 %v1440_v19, %v1327_v14 }
  0xf8   : > { %v454_v21 = vpop.f32.mrf.mxu0 }
  0xf9   : > { %v1733_v22 = vadd.f32 %v1327_v14, %v454_v21 }
  0xfa   : > { %v1340_v23 = vcombine.low %v1716_v3, %v1718_v4  ;;  %v1637_v24 = vmov 0.0   ;;  %vm1638_vm0 = vmmov 0   ;;  %vm474_vm1 = vcmask 261120  }
  0xfb   : > { %1441 = vmatprep.subr.bf16.mxu0 %v1637_v24  ;;  %1445 = vmatprep.mubr.msk.bf16.mxu0 %vm1638_vm0, %v1637_v24  ;;  %v1339_v25 = vcombine.low %v1712_v1, %v1714_v2  ;;  %475 = vst.msk [vmem:[#allocation2] sm:$0xff] %vm474_vm1, %v1637_v24  ;;  %476 = vst.msk [vmem:[#allocation3] sm:$0xff] %vm474_vm1, %v1637_v24  ;;  %vm572_vm2 = vcmask 257024  }
  0xfc   : > { %1442 = vmatpush3.bf16.msra.mxu0 %v1340_v23  ;;  %1449 = vmatprep.subr.bf16.mxu1 %v1637_v24 }
  0xfd   : > { %1443 = vmatprep.subr.bf16.mxu0 %v1637_v24  ;;  %1450 = vmatpush3.bf16.msra.mxu1 %v1340_v23 }
  0xfe   : > { %1451 = vmatprep.subr.bf16.mxu1 %v1637_v24  ;;  %1453 = vmatprep.mubr.msk.bf16.mxu1 %vm1638_vm0, %v1637_v24 }
 0x100   : > { %1444 = vmatpush3.bf16.msra.mxu0 %v1339_v25 }
 0x101   : > { %1452 = vmatpush3.bf16.msra.mxu1 %v1339_v25  ;;  %1457 = vmatprep.subr.bf16.mxu0 %v1637_v24 }
 0x102   : > { %1465 = vmatprep.subr.bf16.mxu1 %v1637_v24  ;;  %v477_v26 = vld [vmem:[#allocation2] sm:$0xff]  ;;  %v478_v34 = vld [vmem:[#allocation3] sm:$0xff] }
 0x103   : > { %v479_v27 = vpack.c.bf16 %v477_v26, %v477_v26 }
 0x105   : > { %1446 = vmatmul.mubr.msk.bf16.vlgmr.msra.gmra.mxu0 %vm474_vm1, %v479_v27 }
 0x106   : > { %1458 = vmatpush3.bf16.msra.mxu0 %v1340_v23  ;;  %1461 = vmatprep.mubr.msk.bf16.mxu0 %vm1638_vm0, %v1637_v24 }
 0x107   : > { %1459 = vmatprep.subr.bf16.mxu0 %v1637_v24 }
 0x10a   : > { %1460 = vmatpush3.bf16.msra.mxu0 %v1339_v25 }
 0x1c5   : > { %v530_v28 = vpop.f32.mrf.mxu0 }
 0x1c6   : > { %v536_v29 = vadd.f32 %v530_v28, %v1729_v18 }
 0x1c7   : > { %v1447_v30 = vpop.f32.mrf.mxu0 }
 0x1c8   : > { %1549 = vtanh.f32 %v536_v29  ;;  %v1342_v35 = vmul.f32 -1.442695, %v536_v29 }
 0x1c9   : > { %v533_v31 = vpop.f32.mrf.mxu0 }
 0x1ca   : > { %1551 = vpow2.f32 %v1342_v35 }
 0x1cb   : > { %v1448_v32 = vpop.f32.mrf.mxu0 }
 0x1d5   : > { %v1550_v33 = vpop.eup %1549 }
 0x1d6   : > { %550 = vrot.lane.b32.xlu0 %v1550_v33, %s1639_s12 }
 0x1d7   : > { %v1552_v36 = vpop.eup %1551 }
 0x1d8   : > { %v540_v37 = vadd.f32 1.0, %v1552_v36 }
 0x1da   : > { %545 = vrot.lane.b32.xlu0 %v478_v34, %s1639_s12  ;;  %1553 = vrcp.f32 %v540_v37 }
 0x1e7   : > { %v1554_v38 = vpop.eup %1553 }
 0x248   : > { %v551_v39 = vpop.permute.xlu0 %550 }
 0x249   : > { %v553_v40 = vmul.f32 %v1554_v38, %v551_v39 }
 0x24b   : > { %555 = vrot.lane.b32.xlu1 %v553_v40, %s1639_s12 }
 0x24c   : > { %v546_v41 = vpop.permute.xlu0 %545 }
 0x24d   : > { %v548_v42 = vmul.f32 %v1554_v38, %v546_v41 }
 0x2bd   : > { %v556_v43 = vpop.permute.xlu1 %555 }
 0x2be   : > { %v558_v44 = vadd.f32 %v556_v43, %v548_v42 }
 0x2c0   : > { %1555 = vtanh.f32 %v558_v44 }
 0x2cd   : > { %v1556_v45 = vpop.eup %1555 }
 0x2ce   : > { %561 = vrot.lane.b32.xlu1 %v1556_v45, %s1639_s12 }
 0x340   : > { %v562_v46 = vpop.permute.xlu1 %561 }
 0x341   : > { %v564_v47 = vmul.f32 %v1554_v38, %v562_v46 }
 0x343   : > { %v1751_v48 = vpack.c.bf16 %v564_v47, %v564_v47 }
 0x345   : > { %574 = vrot.lane.b32.xlu0 %v1751_v48, %s1640_s13 }
 0x3b7   : > { %v575_v49 = vpop.permute.xlu0 %574 }
 0x3b8   : > { %1454 = vmatmul.mubr.msk.bf16.vlgmr.msra.gmra.mxu1 %vm474_vm1, %v575_v49 }
 0x3b9   : > { %1466 = vmatpush3.bf16.msra.mxu1 %v1340_v23  ;;  %1469 = vmatprep.mubr.msk.bf16.mxu1 %vm1638_vm0, %v1637_v24 }
 0x3ba   : > { %1467 = vmatprep.subr.bf16.mxu1 %v1637_v24 }
 0x3bd   : > { %1468 = vmatpush3.bf16.msra.mxu1 %v1339_v25 }
 0x478   : > { %v613_v50 = vpop.f32.mrf.mxu1 }
 0x479   : > { %v619_v51 = vadd.f32 %v613_v50, %v1733_v22 }
 0x47a   : > { %v1455_v52 = vpop.f32.mrf.mxu1 }
 0x47b   : > { %1557 = vtanh.f32 %v619_v51  ;;  %v1345_v56 = vmul.f32 -1.442695, %v619_v51 }
 0x47c   : > { %v616_v53 = vpop.f32.mrf.mxu1 }
 0x47d   : > { %1559 = vpow2.f32 %v1345_v56 }
 0x47e   : > { %v1456_v54 = vpop.f32.mrf.mxu1 }
 0x488   : > { %v1558_v55 = vpop.eup %1557 }
 0x489   : > { %629 = vrot.lane.b32.xlu1 %v1558_v55, %s1639_s12 }
 0x48a   : > { %v1560_v57 = vpop.eup %1559 }
 0x48b   : > { %v623_v58 = vadd.f32 1.0, %v1560_v57 }
 0x48d   : > { %1561 = vrcp.f32 %v623_v58 }
 0x49a   : > { %v1562_v59 = vpop.eup %1561 }
 0x49b   : > { %v627_v62 = vmul.f32 %v1562_v59, %v558_v44 }
 0x4fb   : > { %v630_v60 = vpop.permute.xlu1 %629 }
 0x4fc   : > { %v632_v61 = vmul.f32 %v1562_v59, %v630_v60 }
 0x4fe   : > { %634 = vrot.lane.b32.xlu0 %v632_v61, %s1639_s12 }
 0x570   : > { %v635_v63 = vpop.permute.xlu0 %634 }
 0x571   : > { %v637_v0 = vadd.f32 %v635_v63, %v627_v62 }
 0x573   : > { %1563 = vtanh.f32 %v637_v0 }
 0x580   : > { %v1564_v5 = vpop.eup %1563 }
 0x581   : > { %640 = vrot.lane.b32.xlu1 %v1564_v5, %s1639_s12 }
 0x5f3   : > { %v641_v6 = vpop.permute.xlu1 %640 }
 0x5f4   : > { %v643_v7 = vmul.f32 %v1562_v59, %v641_v6 }
 0x5f6   : > { %v644_v8 = vpack.c.bf16 %v643_v7, %v643_v7 }
 0x5f8   : > { %653 = vrot.lane.b32.xlu0 %v644_v8, %s1640_s13 }
 0x66a   : > { %v654_v9 = vpop.permute.xlu0 %653 }
 0x66b   : > { %1462 = vmatmul.mubr.msk.bf16.vlgmr.msra.gmra.mxu0 %vm474_vm1, %v654_v9 }
 0x72b   : > { %v692_v10 = vpop.f32.mrf.mxu0 }
 0x72c   : > { %v698_v11 = vadd.f32 %v692_v10, %v1727_v16 }
 0x72d   : > { %v1463_v12 = vpop.f32.mrf.mxu0 }
 0x72e   : > { %1565 = vtanh.f32 %v698_v11  ;;  %v1349_v17 = vmul.f32 -1.442695, %v698_v11 }
 0x72f   : > { %v695_v13 = vpop.f32.mrf.mxu0 }
 0x730   : > { %1567 = vpow2.f32 %v1349_v17 }
 0x731   : > { %v1464_v14 = vpop.f32.mrf.mxu0 }
 0x73b   : > { %v1566_v15 = vpop.eup %1565 }
 0x73c   : > { %708 = vrot.lane.b32.xlu1 %v1566_v15, %s1639_s12 }
 0x73d   : > { %v1568_v19 = vpop.eup %1567 }
 0x73e   : > { %v702_v21 = vadd.f32 1.0, %v1568_v19 }
 0x740   : > { %1569 = vrcp.f32 %v702_v21 }
 0x74d   : > { %v1570_v23 = vpop.eup %1569 }
 0x74e   : > { %v706_v26 = vmul.f32 %v1570_v23, %v637_v0 }
 0x7ae   : > { %v709_v24 = vpop.permute.xlu1 %708 }
 0x7af   : > { %v711_v25 = vmul.f32 %v1570_v23, %v709_v24 }
 0x7b1   : > { %713 = vrot.lane.b32.xlu0 %v711_v25, %s1639_s12 }
 0x823   : > { %v714_v27 = vpop.permute.xlu0 %713 }
 0x824   : > { %v716_v28 = vadd.f32 %v714_v27, %v706_v26 }
 0x826   : > { %1571 = vtanh.f32 %v716_v28 }
 0x833   : > { %v1572_v29 = vpop.eup %1571 }
 0x834   : > { %719 = vrot.lane.b32.xlu1 %v1572_v29, %s1639_s12 }
 0x8a6   : > { %v720_v30 = vpop.permute.xlu1 %719 }
 0x8a7   : > { %v722_v31 = vmul.f32 %v1570_v23, %v720_v30 }
 0x8a9   : > { %v723_v32 = vpack.c.bf16 %v722_v31, %v722_v31 }
 0x8ab   : > { %732 = vrot.lane.b32.xlu0 %v723_v32, %s1640_s13 }
 0x91d   : > { %v733_v33 = vpop.permute.xlu0 %732 }
 0x91e   : > { %1470 = vmatmul.mubr.msk.bf16.vlgmr.msra.gmra.mxu1 %vm474_vm1, %v733_v33 }
 0x9de   : > { %v771_v34 = vpop.f32.mrf.mxu1 }
 0x9df   : > { %v777_v35 = vadd.f32 %v771_v34, %v1731_v20 }
 0x9e0   : > { %v1471_v36 = vpop.f32.mrf.mxu1 }
 0x9e1   : > { %1573 = vtanh.f32 %v777_v35  ;;  %v1353_v40 = vmul.f32 -1.442695, %v777_v35 }
 0x9e2   : > { %v774_v37 = vpop.f32.mrf.mxu1 }
 0x9e3   : > { %1575 = vpow2.f32 %v1353_v40 }
 0x9e4   : > { %v1472_v38 = vpop.f32.mrf.mxu1 }
 0x9ee   : > { %v1574_v39 = vpop.eup %1573 }
 0x9ef   : > { %787 = vrot.lane.b32.xlu1 %v1574_v39, %s1639_s12 }
 0x9f0   : > { %v1576_v41 = vpop.eup %1575 }
 0x9f1   : > { %v781_v42 = vadd.f32 1.0, %v1576_v41 }
 0x9f3   : > { %1577 = vrcp.f32 %v781_v42 }
 0xa00   : > { %v1578_v43 = vpop.eup %1577 }
 0xa01   : > { %v785_v46 = vmul.f32 %v1578_v43, %v716_v28 }
 0xa61   : > { %v788_v44 = vpop.permute.xlu1 %787 }
 0xa62   : > { %v790_v45 = vmul.f32 %v1578_v43, %v788_v44 }
 0xa64   : > { %792 = vrot.lane.b32.xlu0 %v790_v45, %s1639_s12 }
 0xa68   : > { %569 = vrot.lane.b32.xlu0 %v1751_v48, %s1640_s13 }
 0xa6c   : > { %727 = vrot.lane.b32.xlu0 %v723_v32, %s1640_s13 }
 0xad6   : > { %v793_v47 = vpop.permute.xlu0 %792 }
 0xad7   : > { %v795_v49 = vadd.f32 %v793_v47, %v785_v46 }
 0xad9   : > { %1579 = vtanh.f32 %v795_v49 }
 0xada   : > { %v570_v50 = vpop.permute.xlu0 %569 }
 0xadb   : > { %573 = vst.msk [vmem:[%s1710_s6] sm:$0xf] %vm572_vm2, %v570_v50 }
 0xade   : > { %v728_v51 = vpop.permute.xlu0 %727 }
 0xadf   : > { %1351 = vst.msk [vmem:[%s1710_s6 + $0x8] sm:$0xf] %vm572_vm2, %v728_v51 }
 0xae6   : > { %v1580_v52 = vpop.eup %1579 }
 0xae7   : > { %798 = vrot.lane.b32.xlu1 %v1580_v52, %s1639_s12 }
 0xaeb   : > { %648 = vrot.lane.b32.xlu1 %v644_v8, %s1640_s13 }
 0xb59   : > { %v799_v48 = vpop.permute.xlu1 %798 }
 0xb5a   : > { %v801_v53 = vmul.f32 %v1578_v43, %v799_v48 }
 0xb5c   : > { %v1382_v54 = vpack.c.bf16 %v801_v53, %v801_v53  ;;  %812 = vrot.lane.b32.xlu0 %v801_v53, %s1640_s13 }
 0xb5d   : > { %v649_v55 = vpop.permute.xlu1 %648 }
 0xb5e   : > { %1347 = vst.msk [vmem:[%s1710_s6 + $0x4] sm:$0xf] %vm572_vm2, %v649_v55  ;;  %806 = vrot.lane.b32.xlu1 %v1382_v54, %s1640_s13 }
 0xb62   : > { %817 = vrot.lane.b32.xlu1 %v795_v49, %s1641_s14 }
 0xbce   : > { %v813_v56 = vpop.permute.xlu0 %812 }
 0xbcf   : > { %815 = vst.msk [vmem:[#allocation2] sm:$0xff] %vm474_vm1, %v813_v56 }
 0xbd0   : > { %v807_v57 = vpop.permute.xlu1 %806 }
 0xbd1   : > { %1355 = vst.msk [vmem:[%s1710_s6 + $0xc] sm:$0xf] %vm572_vm2, %v807_v57 }
 0xbd4   : > { %v818_v58 = vpop.permute.xlu1 %817 }
 0xbd5   : > { %820 = vst.msk [vmem:[#allocation3] sm:$0xff] %vm474_vm1, %v818_v58 }
 0xbd6 PF: > { %p1356_p6 = scmp.ne.s32.totalorder %s1627_s15, 1 }
 0xbd7   : > { %s1644_s15 = smov (!%p1356_p6), 32   ;;  %s1645_s19 = smov (!%p1356_p6), 64  }
 0xbd8   : > { %824 = sbr.rel (%p1356_p6) target bundleno = 5817 (0x16b9), region = 48  ;;  %s1646_s20 = smov (!%p1356_p6), 96  }
 0xbdd   : > { %v1358_v59 = vcombine.low %v1716_v3, %v1718_v4  ;;  %v1642_v60 = vmov 0.0   ;;  %vm1643_vm3 = vmmov 0   ;;  %vm830_vm4 = vcmask 261120  }
 0xbde   : > { %1473 = vmatprep.subr.bf16.mxu0 %v1642_v60  ;;  %1477 = vmatprep.mubr.msk.bf16.mxu0 %vm1643_vm3, %v1642_v60  ;;  %v1357_v61 = vcombine.low %v1712_v1, %v1714_v2  ;;  %831 = vst.msk [vmem:[#allocation2 + $0x8] sm:$0xff] %vm830_vm4, %v1642_v60  ;;  %833 = vst.msk [vmem:[#allocation3 + $0x8] sm:$0xff] %vm830_vm4, %v1642_v60  ;;  %vm932_vm5 = vcmask 257024  }
 0xbdf   : > { %1474 = vmatpush3.bf16.msra.mxu0 %v1358_v59  ;;  %1481 = vmatprep.subr.bf16.mxu1 %v1642_v60 }
 0xbe0   : > { %1475 = vmatprep.subr.bf16.mxu0 %v1642_v60  ;;  %1482 = vmatpush3.bf16.msra.mxu1 %v1358_v59 }
 0xbe1   : > { %1483 = vmatprep.subr.bf16.mxu1 %v1642_v60  ;;  %1485 = vmatprep.mubr.msk.bf16.mxu1 %vm1643_vm3, %v1642_v60 }
 0xbe3   : > { %1476 = vmatpush3.bf16.msra.mxu0 %v1357_v61 }
 0xbe4   : > { %1484 = vmatpush3.bf16.msra.mxu1 %v1357_v61  ;;  %1489 = vmatprep.subr.bf16.mxu0 %v1642_v60 }
 0xbe5   : > { %1497 = vmatprep.subr.bf16.mxu1 %v1642_v60  ;;  %v835_v3 = vld [vmem:[#allocation2 + $0x8] sm:$0xff]  ;;  %v837_v6 = vld [vmem:[#allocation3 + $0x8] sm:$0xff] }
 0xbe6   : > { %v838_v4 = vpack.c.bf16 %v835_v3, %v835_v3 }
 0xbe8   : > { %1478 = vmatmul.mubr.msk.bf16.vlgmr.msra.gmra.mxu0 %vm830_vm4, %v838_v4 }
 0xbe9   : > { %1490 = vmatpush3.bf16.msra.mxu0 %v1358_v59  ;;  %1493 = vmatprep.mubr.msk.bf16.mxu0 %vm1643_vm3, %v1642_v60 }
 0xbea   : > { %1491 = vmatprep.subr.bf16.mxu0 %v1642_v60 }
 0xbed   : > { %1492 = vmatpush3.bf16.msra.mxu0 %v1357_v61 }
 0xca8   : > { %v889_v1 = vpop.f32.mrf.mxu0 }
 0xca9   : > { %v895_v2 = vadd.f32 %v889_v1, %v1731_v20 }
 0xcaa   : > { %v1479_v62 = vpop.f32.mrf.mxu0 }
 0xcab   : > { %1581 = vtanh.f32 %v895_v2  ;;  %v1360_v7 = vmul.f32 -1.442695, %v895_v2 }
 0xcac   : > { %v892_v63 = vpop.f32.mrf.mxu0 }
 0xcad   : > { %1583 = vpow2.f32 %v1360_v7 }
 0xcae   : > { %v1480_v0 = vpop.f32.mrf.mxu0 }
 0xcb8   : > { %v1582_v5 = vpop.eup %1581 }
 0xcb9   : > { %909 = vrot.lane.b32.xlu0 %v1582_v5, %s1644_s15 }
 0xcba   : > { %v1584_v8 = vpop.eup %1583 }
 0xcbb   : > { %v899_v9 = vadd.f32 1.0, %v1584_v8 }
 0xcbd   : > { %904 = vrot.lane.b32.xlu0 %v837_v6, %s1644_s15  ;;  %1585 = vrcp.f32 %v899_v9 }
 0xcca   : > { %v1586_v10 = vpop.eup %1585 }
 0xd2b   : > { %v910_v11 = vpop.permute.xlu0 %909 }
 0xd2c   : > { %v912_v12 = vmul.f32 %v1586_v10, %v910_v11 }
 0xd2e   : > { %914 = vrot.lane.b32.xlu1 %v912_v12, %s1644_s15 }
 0xd2f   : > { %v905_v20 = vpop.permute.xlu0 %904 }
 0xd30   : > { %v907_v13 = vmul.f32 %v1586_v10, %v905_v20 }
 0xda0   : > { %v915_v14 = vpop.permute.xlu1 %914 }
 0xda1   : > { %v917_v15 = vadd.f32 %v915_v14, %v907_v13 }
 0xda3   : > { %1587 = vtanh.f32 %v917_v15 }
 0xdb0   : > { %v1588_v17 = vpop.eup %1587 }
 0xdb1   : > { %920 = vrot.lane.b32.xlu1 %v1588_v17, %s1644_s15 }
 0xe23   : > { %v921_v19 = vpop.permute.xlu1 %920 }
 0xe24   : > { %v923_v21 = vmul.f32 %v1586_v10, %v921_v19 }
 0xe26   : > { %v1805_v23 = vpack.c.bf16 %v923_v21, %v923_v21 }
 0xe28   : > { %934 = vrot.lane.b32.xlu0 %v1805_v23, %s1645_s19 }
 0xe9a   : > { %v935_v24 = vpop.permute.xlu0 %934 }
 0xe9b   : > { %1486 = vmatmul.mubr.msk.bf16.vlgmr.msra.gmra.mxu1 %vm830_vm4, %v935_v24 }
 0xe9c   : > { %1498 = vmatpush3.bf16.msra.mxu1 %v1358_v59  ;;  %1501 = vmatprep.mubr.msk.bf16.mxu1 %vm1643_vm3, %v1642_v60 }
 0xe9d   : > { %1499 = vmatprep.subr.bf16.mxu1 %v1642_v60 }
 0xea0   : > { %1500 = vmatpush3.bf16.msra.mxu1 %v1357_v61 }
 0xf5b   : > { %v973_v25 = vpop.f32.mrf.mxu1 }
 0xf5c   : > { %v979_v26 = vadd.f32 %v973_v25, %v1727_v16 }
 0xf5d   : > { %v1487_v27 = vpop.f32.mrf.mxu1 }
 0xf5e   : > { %1589 = vtanh.f32 %v979_v26  ;;  %v1364_v31 = vmul.f32 -1.442695, %v979_v26 }
 0xf5f   : > { %v976_v28 = vpop.f32.mrf.mxu1 }
 0xf60   : > { %1591 = vpow2.f32 %v1364_v31 }
 0xf61   : > { %v1488_v29 = vpop.f32.mrf.mxu1 }
 0xf6b   : > { %v1590_v30 = vpop.eup %1589 }
 0xf6c   : > { %989 = vrot.lane.b32.xlu1 %v1590_v30, %s1644_s15 }
 0xf6d   : > { %v1592_v32 = vpop.eup %1591 }
 0xf6e   : > { %v983_v33 = vadd.f32 1.0, %v1592_v32 }
 0xf70   : > { %1593 = vrcp.f32 %v983_v33 }
 0xf7d   : > { %v1594_v34 = vpop.eup %1593 }
 0xf7e   : > { %v987_v37 = vmul.f32 %v1594_v34, %v917_v15 }
 0xfde   : > { %v990_v35 = vpop.permute.xlu1 %989 }
 0xfdf   : > { %v992_v36 = vmul.f32 %v1594_v34, %v990_v35 }
 0xfe1   : > { %994 = vrot.lane.b32.xlu0 %v992_v36, %s1644_s15 }
0x1053   : > { %v995_v38 = vpop.permute.xlu0 %994 }
0x1054   : > { %v997_v16 = vadd.f32 %v995_v38, %v987_v37 }
0x1056   : > { %1595 = vtanh.f32 %v997_v16 }
0x1063   : > { %v1596_v39 = vpop.eup %1595 }
0x1064   : > { %1000 = vrot.lane.b32.xlu1 %v1596_v39, %s1644_s15 }
0x10d6   : > { %v1001_v40 = vpop.permute.xlu1 %1000 }
0x10d7   : > { %v1003_v41 = vmul.f32 %v1594_v34, %v1001_v40 }
0x10d9   : > { %v1004_v42 = vpack.c.bf16 %v1003_v41, %v1003_v41 }
0x10db   : > { %1013 = vrot.lane.b32.xlu0 %v1004_v42, %s1645_s19 }
0x114d   : > { %v1014_v43 = vpop.permute.xlu0 %1013 }
0x114e   : > { %1494 = vmatmul.mubr.msk.bf16.vlgmr.msra.gmra.mxu0 %vm830_vm4, %v1014_v43 }
0x120e   : > { %v1052_v44 = vpop.f32.mrf.mxu0 }
0x120f   : > { %v1058_v45 = vadd.f32 %v1052_v44, %v1733_v22 }
0x1210   : > { %v1495_v46 = vpop.f32.mrf.mxu0 }
0x1211   : > { %1597 = vtanh.f32 %v1058_v45  ;;  %v1368_v51 = vmul.f32 -1.442695, %v1058_v45 }
0x1212   : > { %v1055_v47 = vpop.f32.mrf.mxu0 }
0x1213   : > { %1599 = vpow2.f32 %v1368_v51 }
0x1214   : > { %v1496_v49 = vpop.f32.mrf.mxu0 }
0x121e   : > { %v1598_v50 = vpop.eup %1597 }
0x121f   : > { %1068 = vrot.lane.b32.xlu1 %v1598_v50, %s1644_s15 }
0x1220   : > { %v1600_v52 = vpop.eup %1599 }
0x1221   : > { %v1062_v48 = vadd.f32 1.0, %v1600_v52 }
0x1223   : > { %1601 = vrcp.f32 %v1062_v48 }
0x1230   : > { %v1602_v53 = vpop.eup %1601 }
0x1231   : > { %v1066_v56 = vmul.f32 %v1602_v53, %v997_v16 }
0x1291   : > { %v1069_v54 = vpop.permute.xlu1 %1068 }
0x1292   : > { %v1071_v55 = vmul.f32 %v1602_v53, %v1069_v54 }
0x1294   : > { %1073 = vrot.lane.b32.xlu0 %v1071_v55, %s1644_s15 }
0x1306   : > { %v1074_v57 = vpop.permute.xlu0 %1073 }
0x1307   : > { %v1076_v22 = vadd.f32 %v1074_v57, %v1066_v56 }
0x1309   : > { %1603 = vtanh.f32 %v1076_v22 }
0x1316   : > { %v1604_v58 = vpop.eup %1603 }
0x1317   : > { %1079 = vrot.lane.b32.xlu1 %v1604_v58, %s1644_s15 }
0x1389   : > { %v1080_v59 = vpop.permute.xlu1 %1079 }
0x138a   : > { %v1082_v60 = vmul.f32 %v1602_v53, %v1080_v59 }
0x138c   : > { %v1083_v61 = vpack.c.bf16 %v1082_v60, %v1082_v60 }
0x138e   : > { %1092 = vrot.lane.b32.xlu0 %v1083_v61, %s1645_s19 }
0x1400   : > { %v1093_v3 = vpop.permute.xlu0 %1092 }
0x1401   : > { %1502 = vmatmul.mubr.msk.bf16.vlgmr.msra.gmra.mxu1 %vm830_vm4, %v1093_v3 }
0x14c1   : > { %v1131_v4 = vpop.f32.mrf.mxu1 }
0x14c2   : > { %v1137_v1 = vadd.f32 %v1131_v4, %v1729_v18 }
0x14c3   : > { %v1503_v2 = vpop.f32.mrf.mxu1 }
0x14c4   : > { %1605 = vtanh.f32 %v1137_v1  ;;  %v1372_v5 = vmul.f32 -1.442695, %v1137_v1 }
0x14c5   : > { %v1134_v62 = vpop.f32.mrf.mxu1 }
0x14c6   : > { %1607 = vpow2.f32 %v1372_v5 }
0x14c7   : > { %v1504_v63 = vpop.f32.mrf.mxu1 }
0x14d1   : > { %v1606_v0 = vpop.eup %1605 }
0x14d2   : > { %1147 = vrot.lane.b32.xlu1 %v1606_v0, %s1644_s15 }
0x14d3   : > { %v1608_v6 = vpop.eup %1607 }
0x14d4   : > { %v1141_v7 = vadd.f32 1.0, %v1608_v6 }
0x14d6   : > { %1609 = vrcp.f32 %v1141_v7 }
0x14e3   : > { %v1610_v8 = vpop.eup %1609 }
0x14e4   : > { %v1145_v18 = vmul.f32 %v1610_v8, %v1076_v22 }
0x1544   : > { %v1148_v9 = vpop.permute.xlu1 %1147 }
0x1545   : > { %v1150_v10 = vmul.f32 %v1610_v8, %v1148_v9 }
0x1547   : > { %1152 = vrot.lane.b32.xlu0 %v1150_v10, %s1644_s15 }
0x154b   : > { %928 = vrot.lane.b32.xlu0 %v1805_v23, %s1645_s19 }
0x154f   : > { %1087 = vrot.lane.b32.xlu0 %v1083_v61, %s1645_s19 }
0x15b9   : > { %v1153_v11 = vpop.permute.xlu0 %1152 }
0x15ba   : > { %v1155_v12 = vadd.f32 %v1153_v11, %v1145_v18 }
0x15bc   : > { %1611 = vtanh.f32 %v1155_v12 }
0x15bd   : > { %v929_v20 = vpop.permute.xlu0 %928 }
0x15be   : > { %1362 = vst.msk [vmem:[%s1710_s6 + $0xc] sm:$0xf] %vm932_vm5, %v929_v20 }
0x15c1   : > { %v1088_v13 = vpop.permute.xlu0 %1087 }
0x15c2   : > { %1370 = vst.msk [vmem:[%s1710_s6 + $0x4] sm:$0xf] %vm932_vm5, %v1088_v13 }
0x15c9   : > { %v1612_v14 = vpop.eup %1611 }
0x15ca   : > { %1158 = vrot.lane.b32.xlu1 %v1612_v14, %s1644_s15 }
0x15ce   : > { %1008 = vrot.lane.b32.xlu1 %v1004_v42, %s1645_s19 }
0x163c   : > { %v1159_v15 = vpop.permute.xlu1 %1158 }
0x163d   : > { %v1161_v17 = vmul.f32 %v1610_v8, %v1159_v15 }
0x163f   : > { %v1386_v19 = vpack.c.bf16 %v1161_v17, %v1161_v17  ;;  %1171 = vrot.lane.b32.xlu0 %v1161_v17, %s1645_s19 }
0x1640   : > { %v1009_v21 = vpop.permute.xlu1 %1008 }
0x1641   : > { %1366 = vst.msk [vmem:[%s1710_s6 + $0x8] sm:$0xf] %vm932_vm5, %v1009_v21  ;;  %1166 = vrot.lane.b32.xlu1 %v1386_v19, %s1645_s19 }
0x1645   : > { %1176 = vrot.lane.b32.xlu1 %v1155_v12, %s1646_s20 }
0x16b1   : > { %v1172_v23 = vpop.permute.xlu0 %1171 }
0x16b2   : > { %1174 = vst.msk [vmem:[#allocation2 + $0x8] sm:$0xff] %vm830_vm4, %v1172_v23 }
0x16b3   : > { %v1167_v24 = vpop.permute.xlu1 %1166 }
0x16b4   : > { %1169 = vst.msk [vmem:[%s1710_s6] sm:$0xf] %vm932_vm5, %v1167_v24 }
0x16b7   : > { %v1177_v25 = vpop.permute.xlu1 %1176 }
0x16b8   : > { %1179 = vst.msk [vmem:[#allocation3 + $0x8] sm:$0xff] %vm830_vm4, %v1177_v25 }
0x16b9 PF: > { %s14_s17 = sadd.s32 1, %s1635_s17   ;;  %s1857_s15 = smov %s1631_s16 }
0x16ba   : > { %p11_p7 = scmp.ge.s32.totalorder %s14_s17, 4   ;;  %s1858_s16 = smov %s1860_s18 }
0x16bc   :  { %13 = sbr.rel (!%p11_p7) target bundleno = 2 (0x2), region = 101 }

// kernel: asr_ctc_forward.9
= control target key start
LH: loop header
LB: loop body
LE: loop exit
PB: predicated region body
PF: predicated region fallthrough
CT: control target
= control target key end

     0   :  { %s1713_s15 = smov 0   ;;  %s1715_s16 = smov 0   ;;  %s1903_s0 = inlined_call_operand.vmem [shape: bf16[2,4,8,32], index: 0, kind: input, shape index: {}]   ;;  %s1904_s1 = inlined_call_operand.vmem [shape: bf16[2,64,128], index: 1, kind: input, shape index: {}]   ;;  %s1905_s2 = inlined_call_operand.vmem [shape: bf16[2,32,128], index: 2, kind: input, shape index: {}]   ;;  %s1906_s3 = inlined_call_operand.vmem [shape: f32[2,1,128], index: 3, kind: input, shape index: {}]   ;;  %s1907_s4 = inlined_call_operand.vmem [shape: bf16[2,4,8,32], index: 4, kind: output, shape index: {}]  }
   0x1   :  { %s1717_s17 = smov 0  }
   0x2 LB: > { %s26_s18 = sadd.s32 1, %s1672_s16  ;;  %p1363_p0 = scmp.ge.s32.totalorder %s1676_s17, 1  ;;  %s1676_s17 = sphi %s1717_s17, %s14_s17   ;;  %s1672_s16 = sphi %s1715_s16, %s1909_s16   ;;  %s1668_s15 = sphi %s1713_s15, %s1908_s15  }
   0x3   : > { %p28_p1 = scmp.ge.s32.totalorder %s26_s18, 2  ;;  %p229_p2 = scmp.lt.s32.totalorder %s1676_s17, 3 }
   0x5   : > { %s1911_s18 = smov (%p28_p1, %s26_s18), 0  ;;  %p230_p3 = pnand %p1363_p0, %p229_p2 }
   0x6   : > { %p294_p4 = scmp.lt.s32.totalorder (!%p230_p3), %s1668_s15, 1  ;;  %p1387_p5 = scmp.ne.s32.totalorder (!%p230_p3), %s1668_s15, 0 }
   0x7   : > { %233 = sbr.rel (%p230_p3) target bundleno = 5796 (0x16a4), region = 36 }
   0xc   : > { %v1586_v0 = vld [vmem:[%s1903_s0 + $0x10] sm:$0xff]   ;;  %vm370_vm0 = vcmask 261120   ;;  %v1587_v1 = vld [vmem:[%s1903_s0] sm:$0xff]   ;;  %s1741_s23 = scalar_select %p294_p4, %s1668_s15, 1  ;;  %v1588_v10 = vld [vmem:[%s1903_s0 + $0x18] sm:$0xff]  }
   0xd   : > { %1472 = vmatprep.mubr.msk.bf16.mxu0 %vm370_vm0, %v1586_v0  ;;  %1480 = vmatprep.mubr.msk.bf16.mxu1 %vm370_vm0, %v1587_v1  ;;  %v1589_v11 = vld [vmem:[%s1903_s0 + $0x8] sm:$0xff]   ;;  %s1680_s20 = smov (!%p1387_p5), 32   ;;  %s1681_s21 = smov (!%p1387_p5), 64  }
   0xe   : > { %s1425_s24 = sshll.u32 %s1741_s23, 5  ;;  %s1426_s25 = sshll.u32 %s1741_s23, 4 }
   0xf   : > { %s298_s28 = scalar_lea.vmem %s1904_s1, %s1425_s24  ;;  %s303_s5 = scalar_lea.vmem %s1905_s2, %s1426_s25 }
  0x10   : > { %s1756_s8 = scalar_lea.vmem %s1907_s4, %s1426_s25  ;;  %v1758_v2 = vld [vmem:[%s303_s5] sm:$0xf]  ;;  %v1760_v3 = vld [vmem:[%s303_s5 + $0x4] sm:$0xf]  ;;  %v1762_v4 = vld [vmem:[%s303_s5 + $0x8] sm:$0xf]  ;;  %s306_s19 = scalar_lea.vmem %s1906_s3, %s1741_s23 }
  0x11   : > { %v1764_v5 = vld [vmem:[%s303_s5 + $0xc] sm:$0xf]  ;;  %v1582_v6 = vld [vmem:[%s298_s28 + $0x18] sm:$0xff]   ;;  %v1584_v8 = vld [vmem:[%s298_s28 + $0x10] sm:$0xff]   ;;  %s1682_s22 = smov (!%p1387_p5), 96  }
  0x12   : > { %v1583_v7 = vld [vmem:[%s298_s28 + $0x8] sm:$0xff]   ;;  %1468 = vmatprep.subr.bf16.mxu0 %v1582_v6  ;;  %v1585_v9 = vld [vmem:[%s298_s28] sm:$0xff]  }
  0x13   : > { %1476 = vmatprep.subr.bf16.mxu1 %v1583_v7  ;;  %1469 = vmatpush3.bf16.msra.mxu0 %v1582_v6  ;;  %v1386_v13 = vld [vmem:[%s306_s19] ss:$0 sm:$0xff] }
  0x14   : > { %1477 = vmatpush3.bf16.msra.mxu1 %v1583_v7  ;;  %1470 = vmatprep.subr.bf16.mxu0 %v1584_v8 }
  0x15   : > { %1478 = vmatprep.subr.bf16.mxu1 %v1585_v9 }
  0x17   : > { %1471 = vmatpush3.bf16.msra.mxu0 %v1584_v8 }
  0x18   : > { %1479 = vmatpush3.bf16.msra.mxu1 %v1585_v9 }
  0x1a   : > { %1473 = vmatmul.mubr.msk.bf16.vlgmr.msra.gmra.mxu0 %vm370_vm0, %v1588_v10 }
  0x1b   : > { %1481 = vmatmul.mubr.msk.bf16.vlgmr.msra.gmra.mxu1 %vm370_vm0, %v1589_v11 }
  0xda   : > { %v1474_v12 = vpop.f32.mrf.mxu0 }
  0xdb   : > { %v1482_v14 = vpop.f32.mrf.mxu1 }
  0xdc   : > { %v497_v15 = vadd.f32 %v1482_v14, %v1474_v12  ;;  %v411_v16 = vpop.f32.mrf.mxu0 }
  0xdd   : > { %v488_v17 = vpop.f32.mrf.mxu1 }
  0xde   : > { %v1778_v18 = vadd.f32 %v1386_v13, %v497_v15  ;;  %v489_v19 = vadd.f32 %v488_v17, %v411_v16  ;;  %v1475_v20 = vpop.f32.mrf.mxu0 }
  0xdf   : > { %v1483_v21 = vpop.f32.mrf.mxu1 }
  0xe0   : > { %v1780_v22 = vadd.f32 %v1386_v13, %v489_v19  ;;  %v500_v23 = vadd.f32 %v1483_v21, %v1475_v20  ;;  %v414_v24 = vpop.f32.mrf.mxu0  ;;  %516 = sbr.rel (%p1387_p5) target bundleno = 3009 (0xbc1), region = 40 }
  0xe1   : > { %v491_v25 = vpop.f32.mrf.mxu1 }
  0xe2   : > { %v1782_v26 = vadd.f32 %v1386_v13, %v500_v23  ;;  %v492_v27 = vadd.f32 %v491_v25, %v414_v24 }
  0xe4   : > { %v1784_v28 = vadd.f32 %v1386_v13, %v492_v27 }
  0xe5   : > { %v1389_v29 = vcombine.low %v1762_v4, %v1764_v5  ;;  %v1678_v30 = vmov 0.0   ;;  %vm1679_vm1 = vmmov 0   ;;  %v1388_v31 = vcombine.low %v1758_v2, %v1760_v3 }
  0xe6   : > { %1484 = vmatprep.subr.bf16.mxu0 %v1678_v30  ;;  %521 = vst.msk [vmem:[#allocation2] sm:$0xff] %vm370_vm0, %v1678_v30  ;;  %522 = vst.msk [vmem:[#allocation3] sm:$0xff] %vm370_vm0, %v1678_v30  ;;  %1488 = vmatprep.mubr.msk.bf16.mxu0 %vm1679_vm1, %v1678_v30  ;;  %vm617_vm2 = vcmask 257024  }
  0xe7   : > { %1485 = vmatpush3.bf16.msra.mxu0 %v1389_v29  ;;  %1492 = vmatprep.subr.bf16.mxu1 %v1678_v30 }
  0xe8   : > { %1486 = vmatprep.subr.bf16.mxu0 %v1678_v30  ;;  %1493 = vmatpush3.bf16.msra.mxu1 %v1389_v29 }
  0xe9   : > { %1494 = vmatprep.subr.bf16.mxu1 %v1678_v30  ;;  %1496 = vmatprep.mubr.msk.bf16.mxu1 %vm1679_vm1, %v1678_v30 }
  0xeb   : > { %1487 = vmatpush3.bf16.msra.mxu0 %v1388_v31 }
  0xec   : > { %1495 = vmatpush3.bf16.msra.mxu1 %v1388_v31  ;;  %1500 = vmatprep.subr.bf16.mxu0 %v1678_v30 }
  0xed   : > { %v523_v32 = vld [vmem:[#allocation2] sm:$0xff]  ;;  %1508 = vmatprep.subr.bf16.mxu1 %v1678_v30  ;;  %v524_v40 = vld [vmem:[#allocation3] sm:$0xff] }
  0xee   : > { %v525_v33 = vpack.c.bf16 %v523_v32, %v523_v32 }
  0xf0   : > { %1489 = vmatmul.mubr.msk.bf16.vlgmr.msra.gmra.mxu0 %vm370_vm0, %v525_v33 }
  0xf1   : > { %1501 = vmatpush3.bf16.msra.mxu0 %v1389_v29  ;;  %1504 = vmatprep.mubr.msk.bf16.mxu0 %vm1679_vm1, %v1678_v30 }
  0xf2   : > { %1502 = vmatprep.subr.bf16.mxu0 %v1678_v30 }
  0xf5   : > { %1503 = vmatpush3.bf16.msra.mxu0 %v1388_v31 }
 0x1b0   : > { %v575_v34 = vpop.f32.mrf.mxu0 }
 0x1b1   : > { %v581_v35 = vadd.f32 %v575_v34, %v1780_v22 }
 0x1b2   : > { %v1490_v36 = vpop.f32.mrf.mxu0 }
 0x1b3   : > { %1590 = vtanh.f32 %v581_v35  ;;  %v1391_v41 = vmul.f32 -1.442695, %v581_v35 }
 0x1b4   : > { %v578_v37 = vpop.f32.mrf.mxu0 }
 0x1b5   : > { %1592 = vpow2.f32 %v1391_v41 }
 0x1b6   : > { %v1491_v38 = vpop.f32.mrf.mxu0 }
 0x1c0   : > { %v1591_v39 = vpop.eup %1590 }
 0x1c1   : > { %595 = vrot.lane.b32.xlu0 %v1591_v39, %s1680_s20 }
 0x1c2   : > { %v1593_v42 = vpop.eup %1592 }
 0x1c3   : > { %v585_v43 = vadd.f32 1.0, %v1593_v42 }
 0x1c5   : > { %590 = vrot.lane.b32.xlu0 %v524_v40, %s1680_s20  ;;  %1594 = vrcp.f32 %v585_v43 }
 0x1d2   : > { %v1595_v44 = vpop.eup %1594 }
 0x233   : > { %v596_v45 = vpop.permute.xlu0 %595 }
 0x234   : > { %v598_v46 = vmul.f32 %v1595_v44, %v596_v45 }
 0x236   : > { %600 = vrot.lane.b32.xlu1 %v598_v46, %s1680_s20 }
 0x237   : > { %v591_v47 = vpop.permute.xlu0 %590 }
 0x238   : > { %v593_v48 = vmul.f32 %v1595_v44, %v591_v47 }
 0x2a8   : > { %v601_v49 = vpop.permute.xlu1 %600 }
 0x2a9   : > { %v603_v50 = vadd.f32 %v601_v49, %v593_v48 }
 0x2ab   : > { %1596 = vtanh.f32 %v603_v50 }
 0x2b8   : > { %v1597_v51 = vpop.eup %1596 }
 0x2b9   : > { %606 = vrot.lane.b32.xlu1 %v1597_v51, %s1680_s20 }
 0x32b   : > { %v607_v52 = vpop.permute.xlu1 %606 }
 0x32c   : > { %v609_v53 = vmul.f32 %v1595_v44, %v607_v52 }
 0x32e   : > { %v1802_v54 = vpack.c.bf16 %v609_v53, %v609_v53 }
 0x330   : > { %619 = vrot.lane.b32.xlu0 %v1802_v54, %s1681_s21 }
 0x3a2   : > { %v620_v55 = vpop.permute.xlu0 %619 }
 0x3a3   : > { %1497 = vmatmul.mubr.msk.bf16.vlgmr.msra.gmra.mxu1 %vm370_vm0, %v620_v55 }
 0x3a4   : > { %1509 = vmatpush3.bf16.msra.mxu1 %v1389_v29  ;;  %1512 = vmatprep.mubr.msk.bf16.mxu1 %vm1679_vm1, %v1678_v30 }
 0x3a5   : > { %1510 = vmatprep.subr.bf16.mxu1 %v1678_v30 }
 0x3a8   : > { %1511 = vmatpush3.bf16.msra.mxu1 %v1388_v31 }
 0x463   : > { %v658_v56 = vpop.f32.mrf.mxu1 }
 0x464   : > { %v664_v57 = vadd.f32 %v658_v56, %v1784_v28 }
 0x465   : > { %v1498_v58 = vpop.f32.mrf.mxu1 }
 0x466   : > { %1598 = vtanh.f32 %v664_v57  ;;  %v1394_v62 = vmul.f32 -1.442695, %v664_v57 }
 0x467   : > { %v661_v59 = vpop.f32.mrf.mxu1 }
 0x468   : > { %1600 = vpow2.f32 %v1394_v62 }
 0x469   : > { %v1499_v60 = vpop.f32.mrf.mxu1 }
 0x473   : > { %v1599_v61 = vpop.eup %1598 }
 0x474   : > { %674 = vrot.lane.b32.xlu1 %v1599_v61, %s1680_s20 }
 0x475   : > { %v1601_v63 = vpop.eup %1600 }
 0x476   : > { %v668_v0 = vadd.f32 1.0, %v1601_v63 }
 0x478   : > { %1602 = vrcp.f32 %v668_v0 }
 0x485   : > { %v1603_v1 = vpop.eup %1602 }
 0x486   : > { %v672_v8 = vmul.f32 %v1603_v1, %v603_v50 }
 0x4e6   : > { %v675_v6 = vpop.permute.xlu1 %674 }
 0x4e7   : > { %v677_v7 = vmul.f32 %v1603_v1, %v675_v6 }
 0x4e9   : > { %679 = vrot.lane.b32.xlu0 %v677_v7, %s1680_s20 }
 0x55b   : > { %v680_v9 = vpop.permute.xlu0 %679 }
 0x55c   : > { %v682_v10 = vadd.f32 %v680_v9, %v672_v8 }
 0x55e   : > { %1604 = vtanh.f32 %v682_v10 }
 0x56b   : > { %v1605_v11 = vpop.eup %1604 }
 0x56c   : > { %685 = vrot.lane.b32.xlu1 %v1605_v11, %s1680_s20 }
 0x5de   : > { %v686_v12 = vpop.permute.xlu1 %685 }
 0x5df   : > { %v688_v13 = vmul.f32 %v1603_v1, %v686_v12 }
 0x5e1   : > { %v689_v14 = vpack.c.bf16 %v688_v13, %v688_v13 }
 0x5e3   : > { %698 = vrot.lane.b32.xlu0 %v689_v14, %s1681_s21 }
 0x655   : > { %v699_v15 = vpop.permute.xlu0 %698 }
 0x656   : > { %1505 = vmatmul.mubr.msk.bf16.vlgmr.msra.gmra.mxu0 %vm370_vm0, %v699_v15 }
 0x716   : > { %v737_v16 = vpop.f32.mrf.mxu0 }
 0x717   : > { %v743_v17 = vadd.f32 %v737_v16, %v1778_v18 }
 0x718   : > { %v1506_v19 = vpop.f32.mrf.mxu0 }
 0x719   : > { %1606 = vtanh.f32 %v743_v17  ;;  %v1398_v24 = vmul.f32 -1.442695, %v743_v17 }
 0x71a   : > { %v740_v20 = vpop.f32.mrf.mxu0 }
 0x71b   : > { %1608 = vpow2.f32 %v1398_v24 }
 0x71c   : > { %v1507_v21 = vpop.f32.mrf.mxu0 }
 0x726   : > { %v1607_v23 = vpop.eup %1606 }
 0x727   : > { %753 = vrot.lane.b32.xlu1 %v1607_v23, %s1680_s20 }
 0x728   : > { %v1609_v25 = vpop.eup %1608 }
 0x729   : > { %v747_v27 = vadd.f32 1.0, %v1609_v25 }
 0x72b   : > { %1610 = vrcp.f32 %v747_v27 }
 0x738   : > { %v1611_v29 = vpop.eup %1610 }
 0x739   : > { %v751_v32 = vmul.f32 %v1611_v29, %v682_v10 }
 0x799   : > { %v754_v30 = vpop.permute.xlu1 %753 }
 0x79a   : > { %v756_v31 = vmul.f32 %v1611_v29, %v754_v30 }
 0x79c   : > { %758 = vrot.lane.b32.xlu0 %v756_v31, %s1680_s20 }
 0x80e   : > { %v759_v33 = vpop.permute.xlu0 %758 }
 0x80f   : > { %v761_v34 = vadd.f32 %v759_v33, %v751_v32 }
 0x811   : > { %1612 = vtanh.f32 %v761_v34 }
 0x81e   : > { %v1613_v35 = vpop.eup %1612 }
 0x81f   : > { %764 = vrot.lane.b32.xlu1 %v1613_v35, %s1680_s20 }
 0x891   : > { %v765_v36 = vpop.permute.xlu1 %764 }
 0x892   : > { %v767_v37 = vmul.f32 %v1611_v29, %v765_v36 }
 0x894   : > { %v768_v38 = vpack.c.bf16 %v767_v37, %v767_v37 }
 0x896   : > { %777 = vrot.lane.b32.xlu0 %v768_v38, %s1681_s21 }
 0x908   : > { %v778_v39 = vpop.permute.xlu0 %777 }
 0x909   : > { %1513 = vmatmul.mubr.msk.bf16.vlgmr.msra.gmra.mxu1 %vm370_vm0, %v778_v39 }
 0x9c9   : > { %v816_v40 = vpop.f32.mrf.mxu1 }
 0x9ca   : > { %v822_v41 = vadd.f32 %v816_v40, %v1782_v26 }
 0x9cb   : > { %v1514_v42 = vpop.f32.mrf.mxu1 }
 0x9cc   : > { %1614 = vtanh.f32 %v822_v41  ;;  %v1402_v46 = vmul.f32 -1.442695, %v822_v41 }
 0x9cd   : > { %v819_v43 = vpop.f32.mrf.mxu1 }
 0x9ce   : > { %1616 = vpow2.f32 %v1402_v46 }
 0x9cf   : > { %v1515_v44 = vpop.f32.mrf.mxu1 }
 0x9d9   : > { %v1615_v45 = vpop.eup %1614 }
 0x9da   : > { %832 = vrot.lane.b32.xlu1 %v1615_v45, %s1680_s20 }
 0x9db   : > { %v1617_v47 = vpop.eup %1616 }
 0x9dc   : > { %v826_v48 = vadd.f32 1.0, %v1617_v47 }
 0x9de   : > { %1618 = vrcp.f32 %v826_v48 }
 0x9eb   : > { %v1619_v49 = vpop.eup %1618 }
 0x9ec   : > { %v830_v52 = vmul.f32 %v1619_v49, %v761_v34 }
 0xa4c   : > { %v833_v50 = vpop.permute.xlu1 %832 }
 0xa4d   : > { %v835_v51 = vmul.f32 %v1619_v49, %v833_v50 }
 0xa4f   : > { %837 = vrot.lane.b32.xlu0 %v835_v51, %s1680_s20 }
 0xa53   : > { %614 = vrot.lane.b32.xlu0 %v1802_v54, %s1681_s21 }
 0xa57   : > { %772 = vrot.lane.b32.xlu0 %v768_v38, %s1681_s21 }
 0xac1   : > { %v838_v53 = vpop.permute.xlu0 %837 }
 0xac2   : > { %v840_v55 = vadd.f32 %v838_v53, %v830_v52 }
 0xac4   : > { %1620 = vtanh.f32 %v840_v55 }
 0xac5   : > { %v615_v56 = vpop.permute.xlu0 %614 }
 0xac6   : > { %618 = vst.msk [vmem:[%s1756_s8] sm:$0xf] %vm617_vm2, %v615_v56 }
 0xac9   : > { %v773_v57 = vpop.permute.xlu0 %772 }
 0xaca   : > { %1400 = vst.msk [vmem:[%s1756_s8 + $0x8] sm:$0xf] %vm617_vm2, %v773_v57 }
 0xad1   : > { %v1621_v58 = vpop.eup %1620 }
 0xad2   : > { %843 = vrot.lane.b32.xlu1 %v1621_v58, %s1680_s20 }
 0xad6   : > { %693 = vrot.lane.b32.xlu1 %v689_v14, %s1681_s21 }
 0xb44   : > { %v844_v54 = vpop.permute.xlu1 %843 }
 0xb45   : > { %v846_v59 = vmul.f32 %v1619_v49, %v844_v54 }
 0xb47   : > { %v1431_v60 = vpack.c.bf16 %v846_v59, %v846_v59  ;;  %857 = vrot.lane.b32.xlu0 %v846_v59, %s1681_s21 }
 0xb48   : > { %v694_v61 = vpop.permute.xlu1 %693 }
 0xb49   : > { %1396 = vst.msk [vmem:[%s1756_s8 + $0x4] sm:$0xf] %vm617_vm2, %v694_v61  ;;  %851 = vrot.lane.b32.xlu1 %v1431_v60, %s1681_s21 }
 0xb4d   : > { %862 = vrot.lane.b32.xlu1 %v840_v55, %s1682_s22 }
 0xbb9   : > { %v858_v62 = vpop.permute.xlu0 %857 }
 0xbba   : > { %860 = vst.msk [vmem:[#allocation2] sm:$0xff] %vm370_vm0, %v858_v62 }
 0xbbb   : > { %v852_v63 = vpop.permute.xlu1 %851 }
 0xbbc   : > { %1404 = vst.msk [vmem:[%s1756_s8 + $0xc] sm:$0xf] %vm617_vm2, %v852_v63 }
 0xbbf   : > { %v863_v0 = vpop.permute.xlu1 %862 }
 0xbc0   : > { %865 = vst.msk [vmem:[#allocation3] sm:$0xff] %vm370_vm0, %v863_v0 }
 0xbc1 PF: > { %p1405_p6 = scmp.ne.s32.totalorder %s1668_s15, 1 }
 0xbc2   : > { %s1685_s15 = smov (!%p1405_p6), 32   ;;  %s1686_s23 = smov (!%p1405_p6), 64  }
 0xbc3   : > { %869 = sbr.rel (%p1405_p6) target bundleno = 5796 (0x16a4), region = 48  ;;  %s1687_s24 = smov (!%p1405_p6), 96  }
 0xbc8   : > { %v1407_v1 = vcombine.low %v1762_v4, %v1764_v5  ;;  %v1683_v6 = vmov 0.0   ;;  %vm1684_vm3 = vmmov 0   ;;  %v1406_v7 = vcombine.low %v1758_v2, %v1760_v3 }
 0xbc9   : > { %1516 = vmatprep.subr.bf16.mxu0 %v1683_v6  ;;  %875 = vst.msk [vmem:[#allocation2 + $0x8] sm:$0xff] %vm370_vm0, %v1683_v6  ;;  %877 = vst.msk [vmem:[#allocation3 + $0x8] sm:$0xff] %vm370_vm0, %v1683_v6  ;;  %1520 = vmatprep.mubr.msk.bf16.mxu0 %vm1684_vm3, %v1683_v6  ;;  %vm975_vm4 = vcmask 257024  }
 0xbca   : > { %1517 = vmatpush3.bf16.msra.mxu0 %v1407_v1  ;;  %1524 = vmatprep.subr.bf16.mxu1 %v1683_v6 }
 0xbcb   : > { %1518 = vmatprep.subr.bf16.mxu0 %v1683_v6  ;;  %1525 = vmatpush3.bf16.msra.mxu1 %v1407_v1 }
 0xbcc   : > { %1526 = vmatprep.subr.bf16.mxu1 %v1683_v6  ;;  %1528 = vmatprep.mubr.msk.bf16.mxu1 %vm1684_vm3, %v1683_v6 }
 0xbce   : > { %1519 = vmatpush3.bf16.msra.mxu0 %v1406_v7 }
 0xbcf   : > { %1527 = vmatpush3.bf16.msra.mxu1 %v1406_v7  ;;  %1532 = vmatprep.subr.bf16.mxu0 %v1683_v6 }
 0xbd0   : > { %v879_v4 = vld [vmem:[#allocation2 + $0x8] sm:$0xff]  ;;  %1540 = vmatprep.subr.bf16.mxu1 %v1683_v6  ;;  %v881_v12 = vld [vmem:[#allocation3 + $0x8] sm:$0xff] }
 0xbd1   : > { %v882_v5 = vpack.c.bf16 %v879_v4, %v879_v4 }
 0xbd3   : > { %1521 = vmatmul.mubr.msk.bf16.vlgmr.msra.gmra.mxu0 %vm370_vm0, %v882_v5 }
 0xbd4   : > { %1533 = vmatpush3.bf16.msra.mxu0 %v1407_v1  ;;  %1536 = vmatprep.mubr.msk.bf16.mxu0 %vm1684_vm3, %v1683_v6 }
 0xbd5   : > { %1534 = vmatprep.subr.bf16.mxu0 %v1683_v6 }
 0xbd8   : > { %1535 = vmatpush3.bf16.msra.mxu0 %v1406_v7 }
 0xc93   : > { %v932_v2 = vpop.f32.mrf.mxu0 }
 0xc94   : > { %v938_v3 = vadd.f32 %v932_v2, %v1782_v26 }
 0xc95   : > { %v1522_v8 = vpop.f32.mrf.mxu0 }
 0xc96   : > { %1622 = vtanh.f32 %v938_v3  ;;  %v1409_v13 = vmul.f32 -1.442695, %v938_v3 }
 0xc97   : > { %v935_v9 = vpop.f32.mrf.mxu0 }
 0xc98   : > { %1624 = vpow2.f32 %v1409_v13 }
 0xc99   : > { %v1523_v10 = vpop.f32.mrf.mxu0 }
 0xca3   : > { %v1623_v11 = vpop.eup %1622 }
 0xca4   : > { %952 = vrot.lane.b32.xlu0 %v1623_v11, %s1685_s15 }
 0xca5   : > { %v1625_v14 = vpop.eup %1624 }
 0xca6   : > { %v942_v15 = vadd.f32 1.0, %v1625_v14 }
 0xca8   : > { %947 = vrot.lane.b32.xlu0 %v881_v12, %s1685_s15  ;;  %1626 = vrcp.f32 %v942_v15 }
 0xcb5   : > { %v1627_v16 = vpop.eup %1626 }
 0xd16   : > { %v953_v17 = vpop.permute.xlu0 %952 }
 0xd17   : > { %v955_v19 = vmul.f32 %v1627_v16, %v953_v17 }
 0xd19   : > { %957 = vrot.lane.b32.xlu1 %v955_v19, %s1685_s15 }
 0xd1a   : > { %v948_v26 = vpop.permute.xlu0 %947 }
 0xd1b   : > { %v950_v20 = vmul.f32 %v1627_v16, %v948_v26 }
 0xd8b   : > { %v958_v21 = vpop.permute.xlu1 %957 }
 0xd8c   : > { %v960_v23 = vadd.f32 %v958_v21, %v950_v20 }
 0xd8e   : > { %1628 = vtanh.f32 %v960_v23 }
 0xd9b   : > { %v1629_v24 = vpop.eup %1628 }
 0xd9c   : > { %963 = vrot.lane.b32.xlu1 %v1629_v24, %s1685_s15 }
 0xe0e   : > { %v964_v25 = vpop.permute.xlu1 %963 }
 0xe0f   : > { %v966_v27 = vmul.f32 %v1627_v16, %v964_v25 }
 0xe11   : > { %v1856_v29 = vpack.c.bf16 %v966_v27, %v966_v27 }
 0xe13   : > { %977 = vrot.lane.b32.xlu0 %v1856_v29, %s1686_s23 }
 0xe85   : > { %v978_v30 = vpop.permute.xlu0 %977 }
 0xe86   : > { %1529 = vmatmul.mubr.msk.bf16.vlgmr.msra.gmra.mxu1 %vm370_vm0, %v978_v30 }
 0xe87   : > { %1541 = vmatpush3.bf16.msra.mxu1 %v1407_v1  ;;  %1544 = vmatprep.mubr.msk.bf16.mxu1 %vm1684_vm3, %v1683_v6 }
 0xe88   : > { %1542 = vmatprep.subr.bf16.mxu1 %v1683_v6 }
 0xe8b   : > { %1543 = vmatpush3.bf16.msra.mxu1 %v1406_v7 }
 0xf46   : > { %v1016_v31 = vpop.f32.mrf.mxu1 }
 0xf47   : > { %v1022_v32 = vadd.f32 %v1016_v31, %v1778_v18 }
 0xf48   : > { %v1530_v33 = vpop.f32.mrf.mxu1 }
 0xf49   : > { %1630 = vtanh.f32 %v1022_v32  ;;  %v1413_v37 = vmul.f32 -1.442695, %v1022_v32 }
 0xf4a   : > { %v1019_v34 = vpop.f32.mrf.mxu1 }
 0xf4b   : > { %1632 = vpow2.f32 %v1413_v37 }
 0xf4c   : > { %v1531_v35 = vpop.f32.mrf.mxu1 }
 0xf56   : > { %v1631_v36 = vpop.eup %1630 }
 0xf57   : > { %1032 = vrot.lane.b32.xlu1 %v1631_v36, %s1685_s15 }
 0xf58   : > { %v1633_v38 = vpop.eup %1632 }
 0xf59   : > { %v1026_v39 = vadd.f32 1.0, %v1633_v38 }
 0xf5b   : > { %1634 = vrcp.f32 %v1026_v39 }
 0xf68   : > { %v1635_v40 = vpop.eup %1634 }
 0xf69   : > { %v1030_v43 = vmul.f32 %v1635_v40, %v960_v23 }
 0xfc9   : > { %v1033_v41 = vpop.permute.xlu1 %1032 }
 0xfca   : > { %v1035_v42 = vmul.f32 %v1635_v40, %v1033_v41 }
 0xfcc   : > { %1037 = vrot.lane.b32.xlu0 %v1035_v42, %s1685_s15 }
0x103e   : > { %v1038_v44 = vpop.permute.xlu0 %1037 }
0x103f   : > { %v1040_v18 = vadd.f32 %v1038_v44, %v1030_v43 }
0x1041   : > { %1636 = vtanh.f32 %v1040_v18 }
0x104e   : > { %v1637_v45 = vpop.eup %1636 }
0x104f   : > { %1043 = vrot.lane.b32.xlu1 %v1637_v45, %s1685_s15 }
0x10c1   : > { %v1044_v46 = vpop.permute.xlu1 %1043 }
0x10c2   : > { %v1046_v47 = vmul.f32 %v1635_v40, %v1044_v46 }
0x10c4   : > { %v1047_v48 = vpack.c.bf16 %v1046_v47, %v1046_v47 }
0x10c6   : > { %1056 = vrot.lane.b32.xlu0 %v1047_v48, %s1686_s23 }
0x1138   : > { %v1057_v49 = vpop.permute.xlu0 %1056 }
0x1139   : > { %1537 = vmatmul.mubr.msk.bf16.vlgmr.msra.gmra.mxu0 %vm370_vm0, %v1057_v49 }
0x11f9   : > { %v1095_v50 = vpop.f32.mrf.mxu0 }
0x11fa   : > { %v1101_v51 = vadd.f32 %v1095_v50, %v1784_v28 }
0x11fb   : > { %v1538_v52 = vpop.f32.mrf.mxu0 }
0x11fc   : > { %1638 = vtanh.f32 %v1101_v51  ;;  %v1417_v57 = vmul.f32 -1.442695, %v1101_v51 }
0x11fd   : > { %v1098_v53 = vpop.f32.mrf.mxu0 }
0x11fe   : > { %1640 = vpow2.f32 %v1417_v57 }
0x11ff   : > { %v1539_v55 = vpop.f32.mrf.mxu0 }
0x1209   : > { %v1639_v56 = vpop.eup %1638 }
0x120a   : > { %1111 = vrot.lane.b32.xlu1 %v1639_v56, %s1685_s15 }
0x120b   : > { %v1641_v58 = vpop.eup %1640 }
0x120c   : > { %v1105_v54 = vadd.f32 1.0, %v1641_v58 }
0x120e   : > { %1642 = vrcp.f32 %v1105_v54 }
0x121b   : > { %v1643_v59 = vpop.eup %1642 }
0x121c   : > { %v1109_v62 = vmul.f32 %v1643_v59, %v1040_v18 }
0x127c   : > { %v1112_v60 = vpop.permute.xlu1 %1111 }
0x127d   : > { %v1114_v61 = vmul.f32 %v1643_v59, %v1112_v60 }
0x127f   : > { %1116 = vrot.lane.b32.xlu0 %v1114_v61, %s1685_s15 }
0x12f1   : > { %v1117_v63 = vpop.permute.xlu0 %1116 }
0x12f2   : > { %v1119_v28 = vadd.f32 %v1117_v63, %v1109_v62 }
0x12f4   : > { %1644 = vtanh.f32 %v1119_v28 }
0x1301   : > { %v1645_v0 = vpop.eup %1644 }
0x1302   : > { %1122 = vrot.lane.b32.xlu1 %v1645_v0, %s1685_s15 }
0x1374   : > { %v1123_v1 = vpop.permute.xlu1 %1122 }
0x1375   : > { %v1125_v6 = vmul.f32 %v1643_v59, %v1123_v1 }
0x1377   : > { %v1126_v7 = vpack.c.bf16 %v1125_v6, %v1125_v6 }
0x1379   : > { %1135 = vrot.lane.b32.xlu0 %v1126_v7, %s1686_s23 }
0x13eb   : > { %v1136_v4 = vpop.permute.xlu0 %1135 }
0x13ec   : > { %1545 = vmatmul.mubr.msk.bf16.vlgmr.msra.gmra.mxu1 %vm370_vm0, %v1136_v4 }
0x14ac   : > { %v1174_v5 = vpop.f32.mrf.mxu1 }
0x14ad   : > { %v1180_v2 = vadd.f32 %v1174_v5, %v1780_v22 }
0x14ae   : > { %v1546_v3 = vpop.f32.mrf.mxu1 }
0x14af   : > { %1646 = vtanh.f32 %v1180_v2  ;;  %v1421_v11 = vmul.f32 -1.442695, %v1180_v2 }
0x14b0   : > { %v1177_v8 = vpop.f32.mrf.mxu1 }
0x14b1   : > { %1648 = vpow2.f32 %v1421_v11 }
0x14b2   : > { %v1547_v9 = vpop.f32.mrf.mxu1 }
0x14bc   : > { %v1647_v10 = vpop.eup %1646 }
0x14bd   : > { %1190 = vrot.lane.b32.xlu1 %v1647_v10, %s1685_s15 }
0x14be   : > { %v1649_v12 = vpop.eup %1648 }
0x14bf   : > { %v1184_v13 = vadd.f32 1.0, %v1649_v12 }
0x14c1   : > { %1650 = vrcp.f32 %v1184_v13 }
0x14ce   : > { %v1651_v14 = vpop.eup %1650 }
0x14cf   : > { %v1188_v22 = vmul.f32 %v1651_v14, %v1119_v28 }
0x152f   : > { %v1191_v15 = vpop.permute.xlu1 %1190 }
0x1530   : > { %v1193_v16 = vmul.f32 %v1651_v14, %v1191_v15 }
0x1532   : > { %1195 = vrot.lane.b32.xlu0 %v1193_v16, %s1685_s15 }
0x1536   : > { %971 = vrot.lane.b32.xlu0 %v1856_v29, %s1686_s23 }
0x153a   : > { %1130 = vrot.lane.b32.xlu0 %v1126_v7, %s1686_s23 }
0x15a4   : > { %v1196_v17 = vpop.permute.xlu0 %1195 }
0x15a5   : > { %v1198_v19 = vadd.f32 %v1196_v17, %v1188_v22 }
0x15a7   : > { %1652 = vtanh.f32 %v1198_v19 }
0x15a8   : > { %v972_v26 = vpop.permute.xlu0 %971 }
0x15a9   : > { %1411 = vst.msk [vmem:[%s1756_s8 + $0xc] sm:$0xf] %vm975_vm4, %v972_v26 }
0x15ac   : > { %v1131_v20 = vpop.permute.xlu0 %1130 }
0x15ad   : > { %1419 = vst.msk [vmem:[%s1756_s8 + $0x4] sm:$0xf] %vm975_vm4, %v1131_v20 }
0x15b4   : > { %v1653_v21 = vpop.eup %1652 }
0x15b5   : > { %1201 = vrot.lane.b32.xlu1 %v1653_v21, %s1685_s15 }
0x15b9   : > { %1051 = vrot.lane.b32.xlu1 %v1047_v48, %s1686_s23 }
0x1627   : > { %v1202_v23 = vpop.permute.xlu1 %1201 }
0x1628   : > { %v1204_v24 = vmul.f32 %v1651_v14, %v1202_v23 }
0x162a   : > { %v1435_v25 = vpack.c.bf16 %v1204_v24, %v1204_v24  ;;  %1214 = vrot.lane.b32.xlu0 %v1204_v24, %s1686_s23 }
0x162b   : > { %v1052_v27 = vpop.permute.xlu1 %1051 }
0x162c   : > { %1415 = vst.msk [vmem:[%s1756_s8 + $0x8] sm:$0xf] %vm975_vm4, %v1052_v27  ;;  %1209 = vrot.lane.b32.xlu1 %v1435_v25, %s1686_s23 }
0x1630   : > { %1219 = vrot.lane.b32.xlu1 %v1198_v19, %s1687_s24 }
0x169c   : > { %v1215_v29 = vpop.permute.xlu0 %1214 }
0x169d   : > { %1217 = vst.msk [vmem:[#allocation2 + $0x8] sm:$0xff] %vm370_vm0, %v1215_v29 }
0x169e   : > { %v1210_v30 = vpop.permute.xlu1 %1209 }
0x169f   : > { %1212 = vst.msk [vmem:[%s1756_s8] sm:$0xf] %vm975_vm4, %v1210_v30 }
0x16a2   : > { %v1220_v31 = vpop.permute.xlu1 %1219 }
0x16a3   : > { %1222 = vst.msk [vmem:[#allocation3 + $0x8] sm:$0xff] %vm370_vm0, %v1220_v31 }
0x16a4 PF: > { %s14_s17 = sadd.s32 1, %s1676_s17   ;;  %s1908_s15 = smov %s1672_s16 }
0x16a5   : > { %p11_p7 = scmp.ge.s32.totalorder %s14_s17, 4   ;;  %s1909_s16 = smov %s1911_s18 }
0x16a7   :  { %13 = sbr.rel (!%p11_p7) target bundleno = 2 (0x2), region = 102 }

// kernel: asr_ctc_forward.11
= control target key start
LH: loop header
LB: loop body
LE: loop exit
PB: predicated region body
PF: predicated region fallthrough
CT: control target
= control target key end

     0   :  { %vm59_vm0 = vcmask 261120   ;;  %s381_s3 = inlined_call_operand.vmem [shape: bf16[32,128], index: 3, kind: input, shape index: {}]   ;;  %s382_s2 = inlined_call_operand.vmem [shape: bf16[32,128], index: 2, kind: input, shape index: {}]   ;;  %s383_s1 = inlined_call_operand.vmem [shape: bf16[32,32], index: 1, kind: input, shape index: {}]   ;;  %s384_s0 = inlined_call_operand.vmem [shape: bf16[32,32], index: 0, kind: input, shape index: {}]   ;;  %s385_s4 = inlined_call_operand.vmem [shape: f32[1,128], index: 4, kind: input, shape index: {}]   ;;  %s386_s5 = inlined_call_operand.vmem [shape: f32[32,128], index: 5, kind: output, shape index: {}]  }
   0x1   :  { %v288_v0 = vld [vmem:[%s381_s3 + $0x8] sm:$0xff]   ;;  %v290_v2 = vld [vmem:[%s381_s3] sm:$0xff]  }
   0x2   :  { %v289_v1 = vld [vmem:[%s382_s2 + $0x8] sm:$0xff]   ;;  %272 = vmatprep.subr.bf16.mxu0 %v288_v0  ;;  %v291_v3 = vld [vmem:[%s382_s2] sm:$0xff]  }
   0x3   :  { %280 = vmatprep.subr.bf16.mxu1 %v289_v1  ;;  %273 = vmatpush3.bf16.msra.mxu0 %v288_v0  ;;  %v292_v4 = vld [vmem:[%s383_s1] sm:$0xff]   ;;  %v294_v6 = vld [vmem:[%s383_s1 + $0x8] sm:$0xff]  }
   0x4   :  { %281 = vmatpush3.bf16.msra.mxu1 %v289_v1  ;;  %274 = vmatprep.subr.bf16.mxu0 %v290_v2  ;;  %v293_v5 = vld [vmem:[%s384_s0] sm:$0xff]   ;;  %v295_v7 = vld [vmem:[%s384_s0 + $0x8] sm:$0xff]  }
   0x5   :  { %282 = vmatprep.subr.bf16.mxu1 %v291_v3  ;;  %276 = vmatprep.mubr.msk.bf16.mxu0 %vm59_vm0, %v292_v4  ;;  %v263_v10 = vld [vmem:[%s385_s4] ss:$0 sm:$0xff] }
   0x6   :  { %284 = vmatprep.mubr.msk.bf16.mxu1 %vm59_vm0, %v293_v5 }
   0x7   :  { %275 = vmatpush3.bf16.msra.mxu0 %v290_v2 }
   0x8   :  { %283 = vmatpush3.bf16.msra.mxu1 %v291_v3 }
   0xa   :  { %277 = vmatmul.mubr.msk.bf16.vlgmr.msra.gmra.mxu0 %vm59_vm0, %v294_v6 }
   0xb   :  { %285 = vmatmul.mubr.msk.bf16.vlgmr.msra.gmra.mxu1 %vm59_vm0, %v295_v7 }
  0xca   :  { %v278_v8 = vpop.f32.mrf.mxu0 }
  0xcb   :  { %v286_v9 = vpop.f32.mrf.mxu1 }
  0xcc   :  { %v186_v11 = vadd.f32 %v286_v9, %v278_v8  ;;  %v100_v12 = vpop.f32.mrf.mxu0 }
  0xcd   :  { %v177_v13 = vpop.f32.mrf.mxu1 }
  0xce   :  { %v178_v14 = vadd.f32 %v177_v13, %v100_v12  ;;  %v279_v15 = vpop.f32.mrf.mxu0  ;;  %v201_v16 = vadd.f32 %v263_v10, %v186_v11 }
  0xcf   :  { %v287_v17 = vpop.f32.mrf.mxu1 }
  0xd0   :  { %v189_v18 = vadd.f32 %v287_v17, %v279_v15  ;;  %207 = vmax.xlane.f32.xlu1 %v201_v16  ;;  %v103_v19 = vpop.f32.mrf.mxu0  ;;  %v199_v20 = vadd.f32 %v263_v10, %v178_v14 }
  0xd1   :  { %v180_v21 = vpop.f32.mrf.mxu1 }
  0xd2   :  { %v181_v22 = vadd.f32 %v180_v21, %v103_v19  ;;  %203 = vmax.xlane.f32.xlu0 %v199_v20  ;;  %v202_v23 = vadd.f32 %v263_v10, %v189_v18 }
  0xd4   :  { %209 = vmax.xlane.f32.xlu1 %v202_v23  ;;  %v200_v24 = vadd.f32 %v263_v10, %v181_v22 }
  0xd6   :  { %205 = vmax.xlane.f32.xlu0 %v200_v24 }
 0x159   :  { %v208_v25 = vpop.xlane.xlu1 %207 }
 0x15a   :  { %v213_v26 = vsub.f32 %v201_v16, %v208_v25 }
 0x15b   :  { %v204_v27 = vpop.xlane.xlu0 %203 }
 0x15c   :  { %v211_v28 = vsub.f32 %v199_v20, %v204_v27  ;;  %v219_v31 = vmul.f32 1.442695, %v213_v26 }
 0x15d   :  { %v210_v29 = vpop.xlane.xlu1 %209 }
 0x15e   :  { %v215_v30 = vmul.f32 1.442695, %v211_v28  ;;  %v214_v33 = vsub.f32 %v202_v23, %v210_v29 }
 0x15f   :  { %v206_v32 = vpop.xlane.xlu0 %205 }
 0x160   :  { %296 = vpow2.f32 %v215_v30  ;;  %v212_v34 = vsub.f32 %v200_v24, %v206_v32  ;;  %v221_v36 = vmul.f32 1.442695, %v214_v33 }
 0x161   :  { %298 = vpow2.f32 %v219_v31 }
 0x162   :  { %v217_v35 = vmul.f32 1.442695, %v212_v34 }
 0x164   :  { %300 = vpow2.f32 %v217_v35 }
 0x165   :  { %302 = vpow2.f32 %v221_v36 }
 0x16d   :  { %v297_v37 = vpop.eup %296 }
 0x16e   :  { %223 = vadd.xlane.f32.xlu0 %v297_v37  ;;  %v299_v38 = vpop.eup %298 }
 0x171   :  { %v301_v39 = vpop.eup %300 }
 0x172   :  { %227 = vadd.xlane.f32.xlu0 %v299_v38  ;;  %225 = vadd.xlane.f32.xlu1 %v301_v39  ;;  %v303_v40 = vpop.eup %302 }
 0x176   :  { %229 = vadd.xlane.f32.xlu1 %v303_v40 }
 0x1f7   :  { %v224_v41 = vpop.xlane.xlu0 %223 }
 0x1f8   :  { %304 = vlog2.f32 %v224_v41 }
 0x1fb   :  { %v226_v42 = vpop.xlane.xlu1 %225  ;;  %v228_v43 = vpop.xlane.xlu0 %227 }
 0x1fc   :  { %306 = vlog2.f32 %v226_v42 }
 0x1fd   :  { %308 = vlog2.f32 %v228_v43 }
 0x1ff   :  { %v230_v44 = vpop.xlane.xlu1 %229 }
 0x200   :  { %310 = vlog2.f32 %v230_v44 }
 0x205   :  { %v305_v45 = vpop.eup %304 }
 0x206   :  { %v232_v46 = vmul.f32 0.6931472, %v305_v45 }
 0x208   :  { %v239_v47 = vsub.f32 %v211_v28, %v232_v46 }
 0x209   :  { %v307_v48 = vpop.eup %306 }
 0x20a   :  { %v309_v49 = vpop.eup %308  ;;  %243 = vst [vmem:[%s386_s5] sm:$0xff] %v239_v47  ;;  %v234_v50 = vmul.f32 0.6931472, %v307_v48 }
 0x20b   :  { %v236_v51 = vmul.f32 0.6931472, %v309_v49 }
 0x20c   :  { %v240_v52 = vsub.f32 %v212_v34, %v234_v50 }
 0x20d   :  { %v311_v53 = vpop.eup %310  ;;  %v241_v54 = vsub.f32 %v213_v26, %v236_v51 }
 0x20e   :  { %244 = vst [vmem:[%s386_s5 + $0x8] sm:$0xff] %v240_v52  ;;  %v238_v55 = vmul.f32 0.6931472, %v311_v53 }
 0x20f   :  { %245 = vst [vmem:[%s386_s5 + $0x10] sm:$0xff] %v241_v54 }
 0x210   :  { %v242_v56 = vsub.f32 %v214_v33, %v238_v55 }
 0x212   :  { %246 = vst [vmem:[%s386_s5 + $0x18] sm:$0xff] %v242_v56 }

</bundles_post_ra>
